<compile_context>
chip_gen: v6e
topology: v6e:2x2x1
jax: 0.10.0
libtpu: 0.0.40
codegen_flags: <defaults>
</compile_context>

<pallas_src>
import math
import numpy as np
import jax
import jax.numpy as jnp
from jax import lax
from jax.experimental import pallas as pl
from jax.experimental.pallas import tpu as pltpu

# ---- small config (scaled-down but structurally identical to the torch module) ----
B = 2              # batch
S = 7              # input sequence length
L = S + 1          # sequence length after prepending the CLS token
D_IN = 64          # input model_dim   (386 in the original)
D_IN_PAD = 128     # zero-padded feature dim for full-lane MXU K
D = 128            # d_model after the input FFN (512 in the original)
N_HEAD = 8
D_HEAD = D // N_HEAD
N_LAYERS = 2       # (6 in the original)
OUT_DIM = 2
OUT_PAD = 128      # lane-dense padded head output
EPS = 1e-12        # matches the module's custom LayerNorm eps

# the lane-mask head trick relies on these relations; guard against silent breakage
assert N_HEAD * D_HEAD == D and D == 128 and L * N_HEAD == 64


# ----------------------------- fused kernel ----------------------------------------
def fused_kernel(x_ref, ffw1_ref, ffb1_ref, ffw2_ref, ffb2_ref, pe_ref, mask_ref,
                 wqkv_ref, bqkv_ref, wo_ref, bo_ref, g1_ref, be1_ref,
                 wf1_ref, bf1_ref, wf2_ref, bf2_ref, g2_ref, be2_ref,
                 hw_ref, hb_ref, out_ref):

    def mm(a, w):
        # bf16 MXU operands, f32 accumulation
        return jnp.dot(a.astype(jnp.bfloat16), w, preferred_element_type=jnp.float32)

    def layer_norm(t, g, b):
        mean = jnp.mean(t, axis=-1, keepdims=True)
        cent = t - mean
        var = jnp.mean(cent * cent, axis=-1, keepdims=True)   # unbiased=False
        return g * (cent * lax.rsqrt(var + EPS)) + b

    # ---- embed: input FFN + positional encoding ----
    xe = x_ref[...]                                            # (B*L, 128) zero-padded
    h = jnp.maximum(mm(xe, ffw1_ref[...]) + ffb1_ref[...], 0.0)
    h = mm(h, ffw2_ref[...]) + ffb2_ref[...]
    x = h + pe_ref[...]                                        # (B*L, D) f32, in regs

    head_mask = mask_ref[...]                                  # (H*L, D) bf16, constant

    # ---- encoder layers, fully unrolled (static layer index into stacked weights) ----
    for layer in range(N_LAYERS):
        # fused QKV: single (D, 3D) matmul; 1/sqrt(D_HEAD) is pre-folded into Q cols
        qkv = mm(x, wqkv_ref[layer]) + bqkv_ref[layer]         # (B*L, 3D)
        q3 = qkv[:, 0 * D:1 * D].reshape(B, L, D)              # 128-aligned lane slices
        k3 = qkv[:, 1 * D:2 * D].reshape(B, L, D).astype(jnp.bfloat16)
        v3 = qkv[:, 2 * D:3 * D].reshape(B, L, D).astype(jnp.bfloat16)

        # tiled+masked Q: row (h*L + l) keeps only head h's D_HEAD lanes (bf16 mask)
        q_rep = jnp.concatenate([q3] * N_HEAD, axis=1)         # (B, H*L, D)
        q_big = q_rep.astype(jnp.bfloat16) * head_mask[None]   # masked replica in bf16

        # all-head scores in one batched einsum: s[b, h*L+l, m] = q_h[b,l] . k_h[b,m]
        s = jnp.einsum('bxc,bmc->bxm', q_big, k3,
                       preferred_element_type=jnp.float32)     # (B, H*L, L)
        s = s - jnp.max(s, axis=-1, keepdims=True)             # softmax(dim=-1), f32
        prob = jnp.exp(s)
        prob = prob * pl.reciprocal(jnp.sum(prob, axis=-1, keepdims=True), approx=True)

        # all-head weighted sums in one batched einsum
        ctx = jnp.einsum('bxm,bmc->bxc', prob.astype(jnp.bfloat16), v3,
                         preferred_element_type=jnp.float32)   # (B, H*L, D) f32
        ctx = ctx * head_mask[None]                            # keep head h's lanes
        # concat heads: masked row groups occupy disjoint lane blocks, so summing the
        # H row-groups reconstructs the lane-concatenated attention output.
        attn3 = ctx[:, 0:L, :]
        for hh in range(1, N_HEAD):
            attn3 = attn3 + ctx[:, hh * L:(hh + 1) * L, :]
        attn = attn3.reshape(B * L, D)

        attn = mm(attn, wo_ref[layer]) + bo_ref[layer]                   # w_concat
        x1 = layer_norm(attn + x, g1_ref[layer], be1_ref[layer])         # res + norm1

        f = jnp.maximum(mm(x1, wf1_ref[layer]) + bf1_ref[layer], 0.0)    # ffn lin1+relu
        f = mm(f, wf2_ref[layer]) + bf2_ref[layer]                       # ffn lin2
        x = layer_norm(f + x1, g2_ref[layer], be2_ref[layer])            # res + norm2

    # ---- classification head: run over ALL rows (aligned (16,128) store); the CLS
    # rows (every L-th row) and first OUT_DIM lanes are selected host-side.
    out_ref[...] = mm(x, hw_ref[...]) + hb_ref[...]            # (B*L, OUT_PAD)


# ----------------------------- wrapper ----------------------------------------------
def transformer_forward(x_pad, p):
    c2 = lambda i: (0, 0)
    c3 = lambda i: (0, 0, 0)
    w3 = pl.BlockSpec((N_LAYERS, D, D), c3)
    b3 = pl.BlockSpec((N_LAYERS, 1, D), c3)
    out_pad = pl.pallas_call(
        fused_kernel,
        out_shape=jax.ShapeDtypeStruct((B * L, OUT_PAD), jnp.float32),
        grid_spec=pltpu.PrefetchScalarGridSpec(
            num_scalar_prefetch=0,
            grid=(1,),
            in_specs=[
                pl.BlockSpec((B * L, D_IN_PAD), c2),            # x (padded)
                pl.BlockSpec((D_IN_PAD, D), c2),                # ff_w1
                pl.BlockSpec((1, D), c2),                       # ff_b1
                pl.BlockSpec((D, D), c2),                       # ff_w2
                pl.BlockSpec((1, D), c2),                       # ff_b2
                pl.BlockSpec((B * L, D), c2),                   # pe
                pl.BlockSpec((N_HEAD * L, D), c2),              # head_mask (bf16)
                pl.BlockSpec((N_LAYERS, D, 3 * D), c3),         # wqkv (scaled Q cols)
                pl.BlockSpec((N_LAYERS, 1, 3 * D), c3),         # bqkv
                w3,                                             # wo
                b3,                                             # bo
                b3,                                             # norm1 gamma
                b3,                                             # norm1 beta
                w3,                                             # ffn w1
                b3,                                             # ffn b1
                w3,                                             # ffn w2
                b3,                                             # ffn b2
                b3,                                             # norm2 gamma
                b3,                                             # norm2 beta
                pl.BlockSpec((D, OUT_PAD), c2),                 # head_w (padded)
                pl.BlockSpec((1, OUT_PAD), c2),                 # head_b (padded)
            ],
            out_specs=pl.BlockSpec((B * L, OUT_PAD), c2),
        ),
        compiler_params=pltpu.CompilerParams(dimension_semantics=("arbitrary",)),
    )(x_pad, p['ff_w1'], p['ff_b1'], p['ff_w2'], p['ff_b2'], p['pe'], p['head_mask'],
      p['wqkv'], p['bqkv'], p['wo'], p['bo'], p['g1'], p['be1'],
      p['wf1'], p['bf1'], p['wf2'], p['bf2'], p['g2'], p['be2'],
      p['head_w'], p['head_b'])
    # CLS row of each sequence is row b*L; logits are the first OUT_DIM lanes
    return out_pad[0::L, :OUT_DIM]


# ----------------------------- parameters ------------------------------------------
def init_params(key):
    keys = iter(jax.random.split(key, 64))

    def lin(fan_in, fan_out):
        k1, k2 = jax.random.split(next(keys))
        bound = 1.0 / math.sqrt(fan_in)
        w = jax.random.uniform(k1, (fan_in, fan_out), jnp.float32, -bound, bound)
        b = jax.random.uniform(k2, (1, fan_out), jnp.float32, -bound, bound)
        return w, b

    p = {}
    p['cls_token'] = jax.random.normal(next(keys), (1, 1, D_IN), jnp.float32)

    w1, b1 = lin(D_IN, D)
    # zero-pad the input-feature rows 64 -> 128 (result unchanged, full-lane MXU K)
    p['ff_w1'] = jnp.pad(w1, ((0, D_IN_PAD - D_IN), (0, 0))).astype(jnp.bfloat16)
    p['ff_b1'] = b1
    w2, b2 = lin(D, D)
    p['ff_w2'] = w2.astype(jnp.bfloat16)
    p['ff_b2'] = b2

    # positional encoding: same (idiosyncratic) formula as the torch PositionalEncoder
    pe = np.zeros((L, D), np.float32)
    for pos in range(L):
        for i in range(0, D, 2):
            pe[pos, i] = math.sin(pos / 10000 ** (2 * i / D))
            pe[pos, i + 1] = math.cos(pos / 10000 ** (2 * (i + 1) / D))
    p['pe'] = jnp.asarray(np.tile(pe, (B, 1)))                 # (B*L, D)

    # head mask (constant): row (h*L + l) keeps head h's D_HEAD lanes
    lane_head = np.arange(D)[None, :] // D_HEAD                # (1, D)
    row_head = np.arange(N_HEAD * L)[:, None] // L             # (H*L, 1)
    p['head_mask'] = jnp.asarray((lane_head == row_head).astype(np.float32),
                                 dtype=jnp.bfloat16)           # (H*L, D)

    scale = 1.0 / math.sqrt(D_HEAD)                            # folded into Q proj
    wqkv, bqkv, wo, bo, wf1, bf1, wf2, bf2 = [], [], [], [], [], [], [], []
    for _ in range(N_LAYERS):
        wq, bq = lin(D, D)
        wk, bk = lin(D, D)
        wv, bv = lin(D, D)
        wqkv.append(jnp.concatenate([wq * scale, wk, wv], axis=1))   # fused QKV (D, 3D)
        bqkv.append(jnp.concatenate([bq * scale, bk, bv], axis=1))
        w, b = lin(D, D); wo.append(w);  bo.append(b)
        w, b = lin(D, D); wf1.append(w); bf1.append(b)
        w, b = lin(D, D); wf2.append(w); bf2.append(b)
    p['wqkv'] = jnp.stack(wqkv).astype(jnp.bfloat16)           # (NL, D, 3D)
    p['bqkv'] = jnp.stack(bqkv)                                # (NL, 1, 3D)
    p['wo'] = jnp.stack(wo).astype(jnp.bfloat16)
    p['bo'] = jnp.stack(bo)
    p['wf1'] = jnp.stack(wf1).astype(jnp.bfloat16)
    p['bf1'] = jnp.stack(bf1)
    p['wf2'] = jnp.stack(wf2).astype(jnp.bfloat16)
    p['bf2'] = jnp.stack(bf2)
    # LayerNorm params: gamma = ones, beta = zeros
    p['g1'] = jnp.ones((N_LAYERS, 1, D), jnp.float32)
    p['be1'] = jnp.zeros((N_LAYERS, 1, D), jnp.float32)
    p['g2'] = jnp.ones((N_LAYERS, 1, D), jnp.float32)
    p['be2'] = jnp.zeros((N_LAYERS, 1, D), jnp.float32)

    hw, hb = lin(D, OUT_DIM)
    # lane-dense head: pad output columns 2 -> 128, slice host-side
    p['head_w'] = jnp.pad(hw, ((0, 0), (0, OUT_PAD - OUT_DIM))).astype(jnp.bfloat16)
    p['head_b'] = jnp.pad(hb, ((0, 0), (0, OUT_PAD - OUT_DIM)))
    return p


# ----------------------------- driver ----------------------------------------------
if __name__ == "__main__":
    key = jax.random.PRNGKey(0)
    pkey, xkey = jax.random.split(key)
    params = init_params(pkey)

    x = jax.random.normal(xkey, (B, S, D_IN), jnp.float32)

    # glue: prepend CLS token, flatten to (B*L, D_IN) and zero-pad features to 128
    cls = jnp.broadcast_to(params['cls_token'], (B, 1, D_IN))
    x_cat = jnp.concatenate([cls, x], axis=1).reshape(B * L, D_IN)
    x_pad = jnp.pad(x_cat, ((0, 0), (0, D_IN_PAD - D_IN)))

    logits = transformer_forward(x_pad, params)                # (B, OUT_DIM)

    jax.block_until_ready(logits)
    assert logits.shape == (B, OUT_DIM)
    # TODO(synk): per-layer attention-map post-processing (.cpu()/.detach(), squaring)
    # has no effect on the returned logits and is not reproduced.
    print("KERNEL_OK")
</pallas_src>

<mosaic_0001>
module attributes {stable_mosaic.version = 11 : i64} {
  func.func @fused_kernel(%arg0: i32, %arg1: memref<16x128xf32, #tpu.memory_space<vmem>>, %arg2: memref<128x128xbf16, #tpu.memory_space<vmem>>, %arg3: memref<1x128xf32, #tpu.memory_space<vmem>>, %arg4: memref<128x128xbf16, #tpu.memory_space<vmem>>, %arg5: memref<1x128xf32, #tpu.memory_space<vmem>>, %arg6: memref<16x128xf32, #tpu.memory_space<vmem>>, %arg7: memref<64x128xbf16, #tpu.memory_space<vmem>>, %arg8: memref<2x128x384xbf16, #tpu.memory_space<vmem>>, %arg9: memref<2x1x384xf32, #tpu.memory_space<vmem>>, %arg10: memref<2x128x128xbf16, #tpu.memory_space<vmem>>, %arg11: memref<2x1x128xf32, #tpu.memory_space<vmem>>, %arg12: memref<2x1x128xf32, #tpu.memory_space<vmem>>, %arg13: memref<2x1x128xf32, #tpu.memory_space<vmem>>, %arg14: memref<2x128x128xbf16, #tpu.memory_space<vmem>>, %arg15: memref<2x1x128xf32, #tpu.memory_space<vmem>>, %arg16: memref<2x128x128xbf16, #tpu.memory_space<vmem>>, %arg17: memref<2x1x128xf32, #tpu.memory_space<vmem>>, %arg18: memref<2x1x128xf32, #tpu.memory_space<vmem>>, %arg19: memref<2x1x128xf32, #tpu.memory_space<vmem>>, %arg20: memref<128x128xbf16, #tpu.memory_space<vmem>>, %arg21: memref<1x128xf32, #tpu.memory_space<vmem>>, %arg22: memref<16x128xf32, #tpu.memory_space<vmem>>) attributes {dimension_semantics = [#tpu.dimension_semantics<arbitrary>], iteration_bounds = array<i64: 1>, scalar_prefetch = 0 : i64, scratch_operands = 0 : i64, tpu.core_type = #tpu.core_type<tc>, window_params = [{pipeline_mode = #tpu.pipeline_mode<synchronous>, transform_indices = @transform_0, window_bounds = array<i64: 16, 128>}, {pipeline_mode = #tpu.pipeline_mode<synchronous>, transform_indices = @transform_1, window_bounds = array<i64: 128, 128>}, {pipeline_mode = #tpu.pipeline_mode<synchronous>, transform_indices = @transform_2, window_bounds = array<i64: 1, 128>}, {pipeline_mode = #tpu.pipeline_mode<synchronous>, transform_indices = @transform_3, window_bounds = array<i64: 128, 128>}, {pipeline_mode = #tpu.pipeline_mode<synchronous>, transform_indices = @transform_4, window_bounds = array<i64: 1, 128>}, {pipeline_mode = #tpu.pipeline_mode<synchronous>, transform_indices = @transform_5, window_bounds = array<i64: 16, 128>}, {pipeline_mode = #tpu.pipeline_mode<synchronous>, transform_indices = @transform_6, window_bounds = array<i64: 64, 128>}, {pipeline_mode = #tpu.pipeline_mode<synchronous>, transform_indices = @transform_7, window_bounds = array<i64: 2, 128, 384>}, {pipeline_mode = #tpu.pipeline_mode<synchronous>, transform_indices = @transform_8, window_bounds = array<i64: 2, 1, 384>}, {pipeline_mode = #tpu.pipeline_mode<synchronous>, transform_indices = @transform_9, window_bounds = array<i64: 2, 128, 128>}, {pipeline_mode = #tpu.pipeline_mode<synchronous>, transform_indices = @transform_10, window_bounds = array<i64: 2, 1, 128>}, {pipeline_mode = #tpu.pipeline_mode<synchronous>, transform_indices = @transform_11, window_bounds = array<i64: 2, 1, 128>}, {pipeline_mode = #tpu.pipeline_mode<synchronous>, transform_indices = @transform_12, window_bounds = array<i64: 2, 1, 128>}, {pipeline_mode = #tpu.pipeline_mode<synchronous>, transform_indices = @transform_13, window_bounds = array<i64: 2, 128, 128>}, {pipeline_mode = #tpu.pipeline_mode<synchronous>, transform_indices = @transform_14, window_bounds = array<i64: 2, 1, 128>}, {pipeline_mode = #tpu.pipeline_mode<synchronous>, transform_indices = @transform_15, window_bounds = array<i64: 2, 128, 128>}, {pipeline_mode = #tpu.pipeline_mode<synchronous>, transform_indices = @transform_16, window_bounds = array<i64: 2, 1, 128>}, {pipeline_mode = #tpu.pipeline_mode<synchronous>, transform_indices = @transform_17, window_bounds = array<i64: 2, 1, 128>}, {pipeline_mode = #tpu.pipeline_mode<synchronous>, transform_indices = @transform_18, window_bounds = array<i64: 2, 1, 128>}, {pipeline_mode = #tpu.pipeline_mode<synchronous>, transform_indices = @transform_19, window_bounds = array<i64: 128, 128>}, {pipeline_mode = #tpu.pipeline_mode<synchronous>, transform_indices = @transform_20, window_bounds = array<i64: 1, 128>}, {pipeline_mode = #tpu.pipeline_mode<synchronous>, transform_indices = @transform_21, window_bounds = array<i64: 16, 128>}]} {
    %c0 = arith.constant 0 : index
    %c0_0 = arith.constant 0 : index
    %0 = vector.load %arg1[%c0, %c0_0] : memref<16x128xf32, #tpu.memory_space<vmem>>, vector<16x128xf32>
    %c0_1 = arith.constant 0 : index
    %c0_2 = arith.constant 0 : index
    %1 = vector.load %arg2[%c0_1, %c0_2] : memref<128x128xbf16, #tpu.memory_space<vmem>>, vector<128x128xbf16>
    %2 = arith.truncf %0 : vector<16x128xf32> to vector<16x128xbf16>
    %cst = arith.constant dense<0.000000e+00> : vector<16x128xf32>
    %3 = tpu.matmul %2, %1, %cst {dimension_numbers = #tpu.dot_dimension_numbers<[1], [0], [0], [1], [0, 0, 1, 1], [], []>} : vector<16x128xbf16>, vector<128x128xbf16>, vector<16x128xf32> -> vector<16x128xf32>
    %c0_3 = arith.constant 0 : index
    %c0_4 = arith.constant 0 : index
    %4 = vector.load %arg3[%c0_3, %c0_4] : memref<1x128xf32, #tpu.memory_space<vmem>>, vector<1x128xf32>
    %5 = vector.broadcast %4 : vector<1x128xf32> to vector<16x128xf32>
    %6 = arith.addf %3, %5 : vector<16x128xf32>
    %cst_5 = arith.constant 0.000000e+00 : f32
    %7 = vector.broadcast %cst_5 : f32 to vector<16x128xf32>
    %8 = arith.maximumf %6, %7 : vector<16x128xf32>
    %c0_6 = arith.constant 0 : index
    %c0_7 = arith.constant 0 : index
    %9 = vector.load %arg4[%c0_6, %c0_7] : memref<128x128xbf16, #tpu.memory_space<vmem>>, vector<128x128xbf16>
    %10 = arith.truncf %8 : vector<16x128xf32> to vector<16x128xbf16>
    %cst_8 = arith.constant dense<0.000000e+00> : vector<16x128xf32>
    %11 = tpu.matmul %10, %9, %cst_8 {dimension_numbers = #tpu.dot_dimension_numbers<[1], [0], [0], [1], [0, 0, 1, 1], [], []>} : vector<16x128xbf16>, vector<128x128xbf16>, vector<16x128xf32> -> vector<16x128xf32>
    %c0_9 = arith.constant 0 : index
    %c0_10 = arith.constant 0 : index
    %12 = vector.load %arg5[%c0_9, %c0_10] : memref<1x128xf32, #tpu.memory_space<vmem>>, vector<1x128xf32>
    %13 = vector.broadcast %12 : vector<1x128xf32> to vector<16x128xf32>
    %14 = arith.addf %11, %13 : vector<16x128xf32>
    %c0_11 = arith.constant 0 : index
    %c0_12 = arith.constant 0 : index
    %15 = vector.load %arg6[%c0_11, %c0_12] : memref<16x128xf32, #tpu.memory_space<vmem>>, vector<16x128xf32>
    %16 = arith.addf %14, %15 : vector<16x128xf32>
    %c0_13 = arith.constant 0 : index
    %c0_14 = arith.constant 0 : index
    %17 = vector.load %arg7[%c0_13, %c0_14] : memref<64x128xbf16, #tpu.memory_space<vmem>>, vector<64x128xbf16>
    %c0_15 = arith.constant 0 : index
    %c0_16 = arith.constant 0 : index
    %c0_17 = arith.constant 0 : index
    %18 = vector.load %arg8[%c0_15, %c0_16, %c0_17] : memref<2x128x384xbf16, #tpu.memory_space<vmem>>, vector<1x128x384xbf16>
    %19 = vector.shape_cast %18 : vector<1x128x384xbf16> to vector<128x384xbf16>
    %20 = arith.truncf %16 : vector<16x128xf32> to vector<16x128xbf16>
    %cst_18 = arith.constant dense<0.000000e+00> : vector<16x384xf32>
    %21 = tpu.matmul %20, %19, %cst_18 {dimension_numbers = #tpu.dot_dimension_numbers<[1], [0], [0], [1], [0, 0, 1, 1], [], []>} : vector<16x128xbf16>, vector<128x384xbf16>, vector<16x384xf32> -> vector<16x384xf32>
    %c0_19 = arith.constant 0 : index
    %c0_20 = arith.constant 0 : index
    %c0_21 = arith.constant 0 : index
    %22 = vector.load %arg9[%c0_19, %c0_20, %c0_21] : memref<2x1x384xf32, #tpu.memory_space<vmem>>, vector<1x1x384xf32>
    %23 = vector.shape_cast %22 : vector<1x1x384xf32> to vector<1x384xf32>
    %24 = vector.broadcast %23 : vector<1x384xf32> to vector<16x384xf32>
    %25 = arith.addf %21, %24 : vector<16x384xf32>
    %26 = vector.extract_strided_slice %25 {offsets = [0, 0], sizes = [16, 128], strides = [1, 1]} : vector<16x384xf32> to vector<16x128xf32>
    %27 = vector.shape_cast %26 : vector<16x128xf32> to vector<2x8x128xf32>
    %28 = vector.extract_strided_slice %25 {offsets = [0, 128], sizes = [16, 128], strides = [1, 1]} : vector<16x384xf32> to vector<16x128xf32>
    %29 = vector.shape_cast %28 : vector<16x128xf32> to vector<2x8x128xf32>
    %30 = arith.truncf %29 : vector<2x8x128xf32> to vector<2x8x128xbf16>
    %31 = vector.extract_strided_slice %25 {offsets = [0, 256], sizes = [16, 128], strides = [1, 1]} : vector<16x384xf32> to vector<16x128xf32>
    %32 = vector.shape_cast %31 : vector<16x128xf32> to vector<2x8x128xf32>
    %33 = arith.truncf %32 : vector<2x8x128xf32> to vector<2x8x128xbf16>
    %34 = tpu.concatenate %27, %27, %27, %27, %27, %27, %27, %27 in 1 : vector<2x8x128xf32>, vector<2x8x128xf32>, vector<2x8x128xf32>, vector<2x8x128xf32>, vector<2x8x128xf32>, vector<2x8x128xf32>, vector<2x8x128xf32>, vector<2x8x128xf32> -> vector<2x64x128xf32>
    %35 = arith.truncf %34 : vector<2x64x128xf32> to vector<2x64x128xbf16>
    %36 = vector.shape_cast %17 : vector<64x128xbf16> to vector<1x64x128xbf16>
    %37 = vector.broadcast %36 : vector<1x64x128xbf16> to vector<2x64x128xbf16>
    %38 = arith.mulf %35, %37 : vector<2x64x128xbf16>
    "tpu.trace_start"() <{level = 10 : i32, message = "bxc,bmc->bxm"}> : () -> ()
    %cst_22 = arith.constant dense<0.000000e+00> : vector<2x64x8xf32>
    %39 = tpu.matmul %38, %30, %cst_22 {dimension_numbers = #tpu.dot_dimension_numbers<[2], [2], [1], [1], [0, 0, 0, 1, 1, 1], [0], [0]>} : vector<2x64x128xbf16>, vector<2x8x128xbf16>, vector<2x64x8xf32> -> vector<2x64x8xf32>
    "tpu.trace_stop"() : () -> ()
    %cst_23 = arith.constant dense<0xFF800000> : vector<2x64xf32>
    %40 = vector.multi_reduction <maximumf>, %39, %cst_23 [2] : vector<2x64x8xf32> to vector<2x64xf32>
    %41 = vector.shape_cast %40 : vector<2x64xf32> to vector<2x64x1xf32>
    %42 = vector.broadcast %41 : vector<2x64x1xf32> to vector<2x64x8xf32>
    %43 = arith.subf %39, %42 : vector<2x64x8xf32>
    %44 = math.exp %43 : vector<2x64x8xf32>
    %cst_24 = arith.constant dense<0.000000e+00> : vector<2x64xf32>
    %45 = vector.multi_reduction <add>, %44, %cst_24 [2] : vector<2x64x8xf32> to vector<2x64xf32>
    %46 = vector.shape_cast %45 : vector<2x64xf32> to vector<2x64x1xf32>
    %47 = tpu.reciprocal %46 {approx = true} : vector<2x64x1xf32> -> vector<2x64x1xf32>
    %48 = vector.broadcast %47 : vector<2x64x1xf32> to vector<2x64x8xf32>
    %49 = arith.mulf %44, %48 : vector<2x64x8xf32>
    %50 = arith.truncf %49 : vector<2x64x8xf32> to vector<2x64x8xbf16>
    "tpu.trace_start"() <{level = 10 : i32, message = "bxm,bmc->bxc"}> : () -> ()
    %cst_25 = arith.constant dense<0.000000e+00> : vector<2x64x128xf32>
    %51 = tpu.matmul %50, %33, %cst_25 {dimension_numbers = #tpu.dot_dimension_numbers<[2], [1], [1], [2], [0, 0, 0, 1, 1, 2], [0], [0]>} : vector<2x64x8xbf16>, vector<2x8x128xbf16>, vector<2x64x128xf32> -> vector<2x64x128xf32>
    "tpu.trace_stop"() : () -> ()
    %52 = vector.shape_cast %17 : vector<64x128xbf16> to vector<1x64x128xbf16>
    %53 = arith.extf %52 : vector<1x64x128xbf16> to vector<1x64x128xf32>
    %54 = vector.broadcast %53 : vector<1x64x128xf32> to vector<2x64x128xf32>
    %55 = arith.mulf %51, %54 : vector<2x64x128xf32>
    %56 = vector.extract_strided_slice %55 {offsets = [0, 0, 0], sizes = [2, 8, 128], strides = [1, 1, 1]} : vector<2x64x128xf32> to vector<2x8x128xf32>
    %57 = vector.extract_strided_slice %55 {offsets = [0, 8, 0], sizes = [2, 8, 128], strides = [1, 1, 1]} : vector<2x64x128xf32> to vector<2x8x128xf32>
    %58 = arith.addf %56, %57 : vector<2x8x128xf32>
    %59 = vector.extract_strided_slice %55 {offsets = [0, 16, 0], sizes = [2, 8, 128], strides = [1, 1, 1]} : vector<2x64x128xf32> to vector<2x8x128xf32>
    %60 = arith.addf %58, %59 : vector<2x8x128xf32>
    %61 = vector.extract_strided_slice %55 {offsets = [0, 24, 0], sizes = [2, 8, 128], strides = [1, 1, 1]} : vector<2x64x128xf32> to vector<2x8x128xf32>
    %62 = arith.addf %60, %61 : vector<2x8x128xf32>
    %63 = vector.extract_strided_slice %55 {offsets = [0, 32, 0], sizes = [2, 8, 128], strides = [1, 1, 1]} : vector<2x64x128xf32> to vector<2x8x128xf32>
    %64 = arith.addf %62, %63 : vector<2x8x128xf32>
    %65 = vector.extract_strided_slice %55 {offsets = [0, 40, 0], sizes = [2, 8, 128], strides = [1, 1, 1]} : vector<2x64x128xf32> to vector<2x8x128xf32>
    %66 = arith.addf %64, %65 : vector<2x8x128xf32>
    %67 = vector.extract_strided_slice %55 {offsets = [0, 48, 0], sizes = [2, 8, 128], strides = [1, 1, 1]} : vector<2x64x128xf32> to vector<2x8x128xf32>
    %68 = arith.addf %66, %67 : vector<2x8x128xf32>
    %69 = vector.extract_strided_slice %55 {offsets = [0, 56, 0], sizes = [2, 8, 128], strides = [1, 1, 1]} : vector<2x64x128xf32> to vector<2x8x128xf32>
    %70 = arith.addf %68, %69 : vector<2x8x128xf32>
    %71 = vector.shape_cast %70 : vector<2x8x128xf32> to vector<16x128xf32>
    %c0_26 = arith.constant 0 : index
    %c0_27 = arith.constant 0 : index
    %c0_28 = arith.constant 0 : index
    %72 = vector.load %arg10[%c0_26, %c0_27, %c0_28] : memref<2x128x128xbf16, #tpu.memory_space<vmem>>, vector<1x128x128xbf16>
    %73 = vector.shape_cast %72 : vector<1x128x128xbf16> to vector<128x128xbf16>
    %74 = arith.truncf %71 : vector<16x128xf32> to vector<16x128xbf16>
    %cst_29 = arith.constant dense<0.000000e+00> : vector<16x128xf32>
    %75 = tpu.matmul %74, %73, %cst_29 {dimension_numbers = #tpu.dot_dimension_numbers<[1], [0], [0], [1], [0, 0, 1, 1], [], []>} : vector<16x128xbf16>, vector<128x128xbf16>, vector<16x128xf32> -> vector<16x128xf32>
    %c0_30 = arith.constant 0 : index
    %c0_31 = arith.constant 0 : index
    %c0_32 = arith.constant 0 : index
    %76 = vector.load %arg11[%c0_30, %c0_31, %c0_32] : memref<2x1x128xf32, #tpu.memory_space<vmem>>, vector<1x1x128xf32>
    %77 = vector.shape_cast %76 : vector<1x1x128xf32> to vector<1x128xf32>
    %78 = vector.broadcast %77 : vector<1x128xf32> to vector<16x128xf32>
    %79 = arith.addf %75, %78 : vector<16x128xf32>
    %80 = arith.addf %79, %16 : vector<16x128xf32>
    %c0_33 = arith.constant 0 : index
    %c0_34 = arith.constant 0 : index
    %c0_35 = arith.constant 0 : index
    %81 = vector.load %arg12[%c0_33, %c0_34, %c0_35] : memref<2x1x128xf32, #tpu.memory_space<vmem>>, vector<1x1x128xf32>
    %82 = vector.shape_cast %81 : vector<1x1x128xf32> to vector<1x128xf32>
    %c0_36 = arith.constant 0 : index
    %c0_37 = arith.constant 0 : index
    %c0_38 = arith.constant 0 : index
    %83 = vector.load %arg13[%c0_36, %c0_37, %c0_38] : memref<2x1x128xf32, #tpu.memory_space<vmem>>, vector<1x1x128xf32>
    %84 = vector.shape_cast %83 : vector<1x1x128xf32> to vector<1x128xf32>
    %cst_39 = arith.constant dense<0.000000e+00> : vector<16xf32>
    %85 = vector.multi_reduction <add>, %80, %cst_39 [1] : vector<16x128xf32> to vector<16xf32>
    %86 = vector.shape_cast %85 : vector<16xf32> to vector<16x1xf32>
    %cst_40 = arith.constant 1.280000e+02 : f32
    %87 = vector.broadcast %cst_40 : f32 to vector<16x1xf32>
    %88 = arith.divf %86, %87 : vector<16x1xf32>
    %89 = vector.broadcast %88 : vector<16x1xf32> to vector<16x128xf32>
    %90 = arith.subf %80, %89 : vector<16x128xf32>
    %91 = arith.mulf %90, %90 : vector<16x128xf32>
    %cst_41 = arith.constant dense<0.000000e+00> : vector<16xf32>
    %92 = vector.multi_reduction <add>, %91, %cst_41 [1] : vector<16x128xf32> to vector<16xf32>
    %93 = vector.shape_cast %92 : vector<16xf32> to vector<16x1xf32>
    %cst_42 = arith.constant 1.280000e+02 : f32
    %94 = vector.broadcast %cst_42 : f32 to vector<16x1xf32>
    %95 = arith.divf %93, %94 : vector<16x1xf32>
    %cst_43 = arith.constant 9.99999996E-13 : f32
    %96 = vector.broadcast %cst_43 : f32 to vector<16x1xf32>
    %97 = arith.addf %95, %96 : vector<16x1xf32>
    %98 = math.rsqrt %97 : vector<16x1xf32>
    %99 = vector.broadcast %98 : vector<16x1xf32> to vector<16x128xf32>
    %100 = arith.mulf %90, %99 : vector<16x128xf32>
    %101 = vector.broadcast %82 : vector<1x128xf32> to vector<16x128xf32>
    %102 = arith.mulf %101, %100 : vector<16x128xf32>
    %103 = vector.broadcast %84 : vector<1x128xf32> to vector<16x128xf32>
    %104 = arith.addf %102, %103 : vector<16x128xf32>
    %c0_44 = arith.constant 0 : index
    %c0_45 = arith.constant 0 : index
    %c0_46 = arith.constant 0 : index
    %105 = vector.load %arg14[%c0_44, %c0_45, %c0_46] : memref<2x128x128xbf16, #tpu.memory_space<vmem>>, vector<1x128x128xbf16>
    %106 = vector.shape_cast %105 : vector<1x128x128xbf16> to vector<128x128xbf16>
    %107 = arith.truncf %104 : vector<16x128xf32> to vector<16x128xbf16>
    %cst_47 = arith.constant dense<0.000000e+00> : vector<16x128xf32>
    %108 = tpu.matmul %107, %106, %cst_47 {dimension_numbers = #tpu.dot_dimension_numbers<[1], [0], [0], [1], [0, 0, 1, 1], [], []>} : vector<16x128xbf16>, vector<128x128xbf16>, vector<16x128xf32> -> vector<16x128xf32>
    %c0_48 = arith.constant 0 : index
    %c0_49 = arith.constant 0 : index
    %c0_50 = arith.constant 0 : index
    %109 = vector.load %arg15[%c0_48, %c0_49, %c0_50] : memref<2x1x128xf32, #tpu.memory_space<vmem>>, vector<1x1x128xf32>
    %110 = vector.shape_cast %109 : vector<1x1x128xf32> to vector<1x128xf32>
    %111 = vector.broadcast %110 : vector<1x128xf32> to vector<16x128xf32>
    %112 = arith.addf %108, %111 : vector<16x128xf32>
    %cst_51 = arith.constant 0.000000e+00 : f32
    %113 = vector.broadcast %cst_51 : f32 to vector<16x128xf32>
    %114 = arith.maximumf %112, %113 : vector<16x128xf32>
    %c0_52 = arith.constant 0 : index
    %c0_53 = arith.constant 0 : index
    %c0_54 = arith.constant 0 : index
    %115 = vector.load %arg16[%c0_52, %c0_53, %c0_54] : memref<2x128x128xbf16, #tpu.memory_space<vmem>>, vector<1x128x128xbf16>
    %116 = vector.shape_cast %115 : vector<1x128x128xbf16> to vector<128x128xbf16>
    %117 = arith.truncf %114 : vector<16x128xf32> to vector<16x128xbf16>
    %cst_55 = arith.constant dense<0.000000e+00> : vector<16x128xf32>
    %118 = tpu.matmul %117, %116, %cst_55 {dimension_numbers = #tpu.dot_dimension_numbers<[1], [0], [0], [1], [0, 0, 1, 1], [], []>} : vector<16x128xbf16>, vector<128x128xbf16>, vector<16x128xf32> -> vector<16x128xf32>
    %c0_56 = arith.constant 0 : index
    %c0_57 = arith.constant 0 : index
    %c0_58 = arith.constant 0 : index
    %119 = vector.load %arg17[%c0_56, %c0_57, %c0_58] : memref<2x1x128xf32, #tpu.memory_space<vmem>>, vector<1x1x128xf32>
    %120 = vector.shape_cast %119 : vector<1x1x128xf32> to vector<1x128xf32>
    %121 = vector.broadcast %120 : vector<1x128xf32> to vector<16x128xf32>
    %122 = arith.addf %118, %121 : vector<16x128xf32>
    %123 = arith.addf %122, %104 : vector<16x128xf32>
    %c0_59 = arith.constant 0 : index
    %c0_60 = arith.constant 0 : index
    %c0_61 = arith.constant 0 : index
    %124 = vector.load %arg18[%c0_59, %c0_60, %c0_61] : memref<2x1x128xf32, #tpu.memory_space<vmem>>, vector<1x1x128xf32>
    %125 = vector.shape_cast %124 : vector<1x1x128xf32> to vector<1x128xf32>
    %c0_62 = arith.constant 0 : index
    %c0_63 = arith.constant 0 : index
    %c0_64 = arith.constant 0 : index
    %126 = vector.load %arg19[%c0_62, %c0_63, %c0_64] : memref<2x1x128xf32, #tpu.memory_space<vmem>>, vector<1x1x128xf32>
    %127 = vector.shape_cast %126 : vector<1x1x128xf32> to vector<1x128xf32>
    %cst_65 = arith.constant dense<0.000000e+00> : vector<16xf32>
    %128 = vector.multi_reduction <add>, %123, %cst_65 [1] : vector<16x128xf32> to vector<16xf32>
    %129 = vector.shape_cast %128 : vector<16xf32> to vector<16x1xf32>
    %cst_66 = arith.constant 1.280000e+02 : f32
    %130 = vector.broadcast %cst_66 : f32 to vector<16x1xf32>
    %131 = arith.divf %129, %130 : vector<16x1xf32>
    %132 = vector.broadcast %131 : vector<16x1xf32> to vector<16x128xf32>
    %133 = arith.subf %123, %132 : vector<16x128xf32>
    %134 = arith.mulf %133, %133 : vector<16x128xf32>
    %cst_67 = arith.constant dense<0.000000e+00> : vector<16xf32>
    %135 = vector.multi_reduction <add>, %134, %cst_67 [1] : vector<16x128xf32> to vector<16xf32>
    %136 = vector.shape_cast %135 : vector<16xf32> to vector<16x1xf32>
    %cst_68 = arith.constant 1.280000e+02 : f32
    %137 = vector.broadcast %cst_68 : f32 to vector<16x1xf32>
    %138 = arith.divf %136, %137 : vector<16x1xf32>
    %cst_69 = arith.constant 9.99999996E-13 : f32
    %139 = vector.broadcast %cst_69 : f32 to vector<16x1xf32>
    %140 = arith.addf %138, %139 : vector<16x1xf32>
    %141 = math.rsqrt %140 : vector<16x1xf32>
    %142 = vector.broadcast %141 : vector<16x1xf32> to vector<16x128xf32>
    %143 = arith.mulf %133, %142 : vector<16x128xf32>
    %144 = vector.broadcast %125 : vector<1x128xf32> to vector<16x128xf32>
    %145 = arith.mulf %144, %143 : vector<16x128xf32>
    %146 = vector.broadcast %127 : vector<1x128xf32> to vector<16x128xf32>
    %147 = arith.addf %145, %146 : vector<16x128xf32>
    %c1 = arith.constant 1 : index
    %c0_70 = arith.constant 0 : index
    %c0_71 = arith.constant 0 : index
    %148 = vector.load %arg8[%c1, %c0_70, %c0_71] : memref<2x128x384xbf16, #tpu.memory_space<vmem>>, vector<1x128x384xbf16>
    %149 = vector.shape_cast %148 : vector<1x128x384xbf16> to vector<128x384xbf16>
    %150 = arith.truncf %147 : vector<16x128xf32> to vector<16x128xbf16>
    %cst_72 = arith.constant dense<0.000000e+00> : vector<16x384xf32>
    %151 = tpu.matmul %150, %149, %cst_72 {dimension_numbers = #tpu.dot_dimension_numbers<[1], [0], [0], [1], [0, 0, 1, 1], [], []>} : vector<16x128xbf16>, vector<128x384xbf16>, vector<16x384xf32> -> vector<16x384xf32>
    %c1_73 = arith.constant 1 : index
    %c0_74 = arith.constant 0 : index
    %c0_75 = arith.constant 0 : index
    %152 = vector.load %arg9[%c1_73, %c0_74, %c0_75] : memref<2x1x384xf32, #tpu.memory_space<vmem>>, vector<1x1x384xf32>
    %153 = vector.shape_cast %152 : vector<1x1x384xf32> to vector<1x384xf32>
    %154 = vector.broadcast %153 : vector<1x384xf32> to vector<16x384xf32>
    %155 = arith.addf %151, %154 : vector<16x384xf32>
    %156 = vector.extract_strided_slice %155 {offsets = [0, 0], sizes = [16, 128], strides = [1, 1]} : vector<16x384xf32> to vector<16x128xf32>
    %157 = vector.shape_cast %156 : vector<16x128xf32> to vector<2x8x128xf32>
    %158 = vector.extract_strided_slice %155 {offsets = [0, 128], sizes = [16, 128], strides = [1, 1]} : vector<16x384xf32> to vector<16x128xf32>
    %159 = vector.shape_cast %158 : vector<16x128xf32> to vector<2x8x128xf32>
    %160 = arith.truncf %159 : vector<2x8x128xf32> to vector<2x8x128xbf16>
    %161 = vector.extract_strided_slice %155 {offsets = [0, 256], sizes = [16, 128], strides = [1, 1]} : vector<16x384xf32> to vector<16x128xf32>
    %162 = vector.shape_cast %161 : vector<16x128xf32> to vector<2x8x128xf32>
    %163 = arith.truncf %162 : vector<2x8x128xf32> to vector<2x8x128xbf16>
    %164 = tpu.concatenate %157, %157, %157, %157, %157, %157, %157, %157 in 1 : vector<2x8x128xf32>, vector<2x8x128xf32>, vector<2x8x128xf32>, vector<2x8x128xf32>, vector<2x8x128xf32>, vector<2x8x128xf32>, vector<2x8x128xf32>, vector<2x8x128xf32> -> vector<2x64x128xf32>
    %165 = arith.truncf %164 : vector<2x64x128xf32> to vector<2x64x128xbf16>
    %166 = vector.shape_cast %17 : vector<64x128xbf16> to vector<1x64x128xbf16>
    %167 = vector.broadcast %166 : vector<1x64x128xbf16> to vector<2x64x128xbf16>
    %168 = arith.mulf %165, %167 : vector<2x64x128xbf16>
    "tpu.trace_start"() <{level = 10 : i32, message = "bxc,bmc->bxm"}> : () -> ()
    %cst_76 = arith.constant dense<0.000000e+00> : vector<2x64x8xf32>
    %169 = tpu.matmul %168, %160, %cst_76 {dimension_numbers = #tpu.dot_dimension_numbers<[2], [2], [1], [1], [0, 0, 0, 1, 1, 1], [0], [0]>} : vector<2x64x128xbf16>, vector<2x8x128xbf16>, vector<2x64x8xf32> -> vector<2x64x8xf32>
    "tpu.trace_stop"() : () -> ()
    %cst_77 = arith.constant dense<0xFF800000> : vector<2x64xf32>
    %170 = vector.multi_reduction <maximumf>, %169, %cst_77 [2] : vector<2x64x8xf32> to vector<2x64xf32>
    %171 = vector.shape_cast %170 : vector<2x64xf32> to vector<2x64x1xf32>
    %172 = vector.broadcast %171 : vector<2x64x1xf32> to vector<2x64x8xf32>
    %173 = arith.subf %169, %172 : vector<2x64x8xf32>
    %174 = math.exp %173 : vector<2x64x8xf32>
    %cst_78 = arith.constant dense<0.000000e+00> : vector<2x64xf32>
    %175 = vector.multi_reduction <add>, %174, %cst_78 [2] : vector<2x64x8xf32> to vector<2x64xf32>
    %176 = vector.shape_cast %175 : vector<2x64xf32> to vector<2x64x1xf32>
    %177 = tpu.reciprocal %176 {approx = true} : vector<2x64x1xf32> -> vector<2x64x1xf32>
    %178 = vector.broadcast %177 : vector<2x64x1xf32> to vector<2x64x8xf32>
    %179 = arith.mulf %174, %178 : vector<2x64x8xf32>
    %180 = arith.truncf %179 : vector<2x64x8xf32> to vector<2x64x8xbf16>
    "tpu.trace_start"() <{level = 10 : i32, message = "bxm,bmc->bxc"}> : () -> ()
    %cst_79 = arith.constant dense<0.000000e+00> : vector<2x64x128xf32>
    %181 = tpu.matmul %180, %163, %cst_79 {dimension_numbers = #tpu.dot_dimension_numbers<[2], [1], [1], [2], [0, 0, 0, 1, 1, 2], [0], [0]>} : vector<2x64x8xbf16>, vector<2x8x128xbf16>, vector<2x64x128xf32> -> vector<2x64x128xf32>
    "tpu.trace_stop"() : () -> ()
    %182 = vector.shape_cast %17 : vector<64x128xbf16> to vector<1x64x128xbf16>
    %183 = arith.extf %182 : vector<1x64x128xbf16> to vector<1x64x128xf32>
    %184 = vector.broadcast %183 : vector<1x64x128xf32> to vector<2x64x128xf32>
    %185 = arith.mulf %181, %184 : vector<2x64x128xf32>
    %186 = vector.extract_strided_slice %185 {offsets = [0, 0, 0], sizes = [2, 8, 128], strides = [1, 1, 1]} : vector<2x64x128xf32> to vector<2x8x128xf32>
    %187 = vector.extract_strided_slice %185 {offsets = [0, 8, 0], sizes = [2, 8, 128], strides = [1, 1, 1]} : vector<2x64x128xf32> to vector<2x8x128xf32>
    %188 = arith.addf %186, %187 : vector<2x8x128xf32>
    %189 = vector.extract_strided_slice %185 {offsets = [0, 16, 0], sizes = [2, 8, 128], strides = [1, 1, 1]} : vector<2x64x128xf32> to vector<2x8x128xf32>
    %190 = arith.addf %188, %189 : vector<2x8x128xf32>
    %191 = vector.extract_strided_slice %185 {offsets = [0, 24, 0], sizes = [2, 8, 128], strides = [1, 1, 1]} : vector<2x64x128xf32> to vector<2x8x128xf32>
    %192 = arith.addf %190, %191 : vector<2x8x128xf32>
    %193 = vector.extract_strided_slice %185 {offsets = [0, 32, 0], sizes = [2, 8, 128], strides = [1, 1, 1]} : vector<2x64x128xf32> to vector<2x8x128xf32>
    %194 = arith.addf %192, %193 : vector<2x8x128xf32>
    %195 = vector.extract_strided_slice %185 {offsets = [0, 40, 0], sizes = [2, 8, 128], strides = [1, 1, 1]} : vector<2x64x128xf32> to vector<2x8x128xf32>
    %196 = arith.addf %194, %195 : vector<2x8x128xf32>
    %197 = vector.extract_strided_slice %185 {offsets = [0, 48, 0], sizes = [2, 8, 128], strides = [1, 1, 1]} : vector<2x64x128xf32> to vector<2x8x128xf32>
    %198 = arith.addf %196, %197 : vector<2x8x128xf32>
    %199 = vector.extract_strided_slice %185 {offsets = [0, 56, 0], sizes = [2, 8, 128], strides = [1, 1, 1]} : vector<2x64x128xf32> to vector<2x8x128xf32>
    %200 = arith.addf %198, %199 : vector<2x8x128xf32>
    %201 = vector.shape_cast %200 : vector<2x8x128xf32> to vector<16x128xf32>
    %c1_80 = arith.constant 1 : index
    %c0_81 = arith.constant 0 : index
    %c0_82 = arith.constant 0 : index
    %202 = vector.load %arg10[%c1_80, %c0_81, %c0_82] : memref<2x128x128xbf16, #tpu.memory_space<vmem>>, vector<1x128x128xbf16>
    %203 = vector.shape_cast %202 : vector<1x128x128xbf16> to vector<128x128xbf16>
    %204 = arith.truncf %201 : vector<16x128xf32> to vector<16x128xbf16>
    %cst_83 = arith.constant dense<0.000000e+00> : vector<16x128xf32>
    %205 = tpu.matmul %204, %203, %cst_83 {dimension_numbers = #tpu.dot_dimension_numbers<[1], [0], [0], [1], [0, 0, 1, 1], [], []>} : vector<16x128xbf16>, vector<128x128xbf16>, vector<16x128xf32> -> vector<16x128xf32>
    %c1_84 = arith.constant 1 : index
    %c0_85 = arith.constant 0 : index
    %c0_86 = arith.constant 0 : index
    %206 = vector.load %arg11[%c1_84, %c0_85, %c0_86] : memref<2x1x128xf32, #tpu.memory_space<vmem>>, vector<1x1x128xf32>
    %207 = vector.shape_cast %206 : vector<1x1x128xf32> to vector<1x128xf32>
    %208 = vector.broadcast %207 : vector<1x128xf32> to vector<16x128xf32>
    %209 = arith.addf %205, %208 : vector<16x128xf32>
    %210 = arith.addf %209, %147 : vector<16x128xf32>
    %c1_87 = arith.constant 1 : index
    %c0_88 = arith.constant 0 : index
    %c0_89 = arith.constant 0 : index
    %211 = vector.load %arg12[%c1_87, %c0_88, %c0_89] : memref<2x1x128xf32, #tpu.memory_space<vmem>>, vector<1x1x128xf32>
    %212 = vector.shape_cast %211 : vector<1x1x128xf32> to vector<1x128xf32>
    %c1_90 = arith.constant 1 : index
    %c0_91 = arith.constant 0 : index
    %c0_92 = arith.constant 0 : index
    %213 = vector.load %arg13[%c1_90, %c0_91, %c0_92] : memref<2x1x128xf32, #tpu.memory_space<vmem>>, vector<1x1x128xf32>
    %214 = vector.shape_cast %213 : vector<1x1x128xf32> to vector<1x128xf32>
    %cst_93 = arith.constant dense<0.000000e+00> : vector<16xf32>
    %215 = vector.multi_reduction <add>, %210, %cst_93 [1] : vector<16x128xf32> to vector<16xf32>
    %216 = vector.shape_cast %215 : vector<16xf32> to vector<16x1xf32>
    %cst_94 = arith.constant 1.280000e+02 : f32
    %217 = vector.broadcast %cst_94 : f32 to vector<16x1xf32>
    %218 = arith.divf %216, %217 : vector<16x1xf32>
    %219 = vector.broadcast %218 : vector<16x1xf32> to vector<16x128xf32>
    %220 = arith.subf %210, %219 : vector<16x128xf32>
    %221 = arith.mulf %220, %220 : vector<16x128xf32>
    %cst_95 = arith.constant dense<0.000000e+00> : vector<16xf32>
    %222 = vector.multi_reduction <add>, %221, %cst_95 [1] : vector<16x128xf32> to vector<16xf32>
    %223 = vector.shape_cast %222 : vector<16xf32> to vector<16x1xf32>
    %cst_96 = arith.constant 1.280000e+02 : f32
    %224 = vector.broadcast %cst_96 : f32 to vector<16x1xf32>
    %225 = arith.divf %223, %224 : vector<16x1xf32>
    %cst_97 = arith.constant 9.99999996E-13 : f32
    %226 = vector.broadcast %cst_97 : f32 to vector<16x1xf32>
    %227 = arith.addf %225, %226 : vector<16x1xf32>
    %228 = math.rsqrt %227 : vector<16x1xf32>
    %229 = vector.broadcast %228 : vector<16x1xf32> to vector<16x128xf32>
    %230 = arith.mulf %220, %229 : vector<16x128xf32>
    %231 = vector.broadcast %212 : vector<1x128xf32> to vector<16x128xf32>
    %232 = arith.mulf %231, %230 : vector<16x128xf32>
    %233 = vector.broadcast %214 : vector<1x128xf32> to vector<16x128xf32>
    %234 = arith.addf %232, %233 : vector<16x128xf32>
    %c1_98 = arith.constant 1 : index
    %c0_99 = arith.constant 0 : index
    %c0_100 = arith.constant 0 : index
    %235 = vector.load %arg14[%c1_98, %c0_99, %c0_100] : memref<2x128x128xbf16, #tpu.memory_space<vmem>>, vector<1x128x128xbf16>
    %236 = vector.shape_cast %235 : vector<1x128x128xbf16> to vector<128x128xbf16>
    %237 = arith.truncf %234 : vector<16x128xf32> to vector<16x128xbf16>
    %cst_101 = arith.constant dense<0.000000e+00> : vector<16x128xf32>
    %238 = tpu.matmul %237, %236, %cst_101 {dimension_numbers = #tpu.dot_dimension_numbers<[1], [0], [0], [1], [0, 0, 1, 1], [], []>} : vector<16x128xbf16>, vector<128x128xbf16>, vector<16x128xf32> -> vector<16x128xf32>
    %c1_102 = arith.constant 1 : index
    %c0_103 = arith.constant 0 : index
    %c0_104 = arith.constant 0 : index
    %239 = vector.load %arg15[%c1_102, %c0_103, %c0_104] : memref<2x1x128xf32, #tpu.memory_space<vmem>>, vector<1x1x128xf32>
    %240 = vector.shape_cast %239 : vector<1x1x128xf32> to vector<1x128xf32>
    %241 = vector.broadcast %240 : vector<1x128xf32> to vector<16x128xf32>
    %242 = arith.addf %238, %241 : vector<16x128xf32>
    %cst_105 = arith.constant 0.000000e+00 : f32
    %243 = vector.broadcast %cst_105 : f32 to vector<16x128xf32>
    %244 = arith.maximumf %242, %243 : vector<16x128xf32>
    %c1_106 = arith.constant 1 : index
    %c0_107 = arith.constant 0 : index
    %c0_108 = arith.constant 0 : index
    %245 = vector.load %arg16[%c1_106, %c0_107, %c0_108] : memref<2x128x128xbf16, #tpu.memory_space<vmem>>, vector<1x128x128xbf16>
    %246 = vector.shape_cast %245 : vector<1x128x128xbf16> to vector<128x128xbf16>
    %247 = arith.truncf %244 : vector<16x128xf32> to vector<16x128xbf16>
    %cst_109 = arith.constant dense<0.000000e+00> : vector<16x128xf32>
    %248 = tpu.matmul %247, %246, %cst_109 {dimension_numbers = #tpu.dot_dimension_numbers<[1], [0], [0], [1], [0, 0, 1, 1], [], []>} : vector<16x128xbf16>, vector<128x128xbf16>, vector<16x128xf32> -> vector<16x128xf32>
    %c1_110 = arith.constant 1 : index
    %c0_111 = arith.constant 0 : index
    %c0_112 = arith.constant 0 : index
    %249 = vector.load %arg17[%c1_110, %c0_111, %c0_112] : memref<2x1x128xf32, #tpu.memory_space<vmem>>, vector<1x1x128xf32>
    %250 = vector.shape_cast %249 : vector<1x1x128xf32> to vector<1x128xf32>
    %251 = vector.broadcast %250 : vector<1x128xf32> to vector<16x128xf32>
    %252 = arith.addf %248, %251 : vector<16x128xf32>
    %253 = arith.addf %252, %234 : vector<16x128xf32>
    %c1_113 = arith.constant 1 : index
    %c0_114 = arith.constant 0 : index
    %c0_115 = arith.constant 0 : index
    %254 = vector.load %arg18[%c1_113, %c0_114, %c0_115] : memref<2x1x128xf32, #tpu.memory_space<vmem>>, vector<1x1x128xf32>
    %255 = vector.shape_cast %254 : vector<1x1x128xf32> to vector<1x128xf32>
    %c1_116 = arith.constant 1 : index
    %c0_117 = arith.constant 0 : index
    %c0_118 = arith.constant 0 : index
    %256 = vector.load %arg19[%c1_116, %c0_117, %c0_118] : memref<2x1x128xf32, #tpu.memory_space<vmem>>, vector<1x1x128xf32>
    %257 = vector.shape_cast %256 : vector<1x1x128xf32> to vector<1x128xf32>
    %cst_119 = arith.constant dense<0.000000e+00> : vector<16xf32>
    %258 = vector.multi_reduction <add>, %253, %cst_119 [1] : vector<16x128xf32> to vector<16xf32>
    %259 = vector.shape_cast %258 : vector<16xf32> to vector<16x1xf32>
    %cst_120 = arith.constant 1.280000e+02 : f32
    %260 = vector.broadcast %cst_120 : f32 to vector<16x1xf32>
    %261 = arith.divf %259, %260 : vector<16x1xf32>
    %262 = vector.broadcast %261 : vector<16x1xf32> to vector<16x128xf32>
    %263 = arith.subf %253, %262 : vector<16x128xf32>
    %264 = arith.mulf %263, %263 : vector<16x128xf32>
    %cst_121 = arith.constant dense<0.000000e+00> : vector<16xf32>
    %265 = vector.multi_reduction <add>, %264, %cst_121 [1] : vector<16x128xf32> to vector<16xf32>
    %266 = vector.shape_cast %265 : vector<16xf32> to vector<16x1xf32>
    %cst_122 = arith.constant 1.280000e+02 : f32
    %267 = vector.broadcast %cst_122 : f32 to vector<16x1xf32>
    %268 = arith.divf %266, %267 : vector<16x1xf32>
    %cst_123 = arith.constant 9.99999996E-13 : f32
    %269 = vector.broadcast %cst_123 : f32 to vector<16x1xf32>
    %270 = arith.addf %268, %269 : vector<16x1xf32>
    %271 = math.rsqrt %270 : vector<16x1xf32>
    %272 = vector.broadcast %271 : vector<16x1xf32> to vector<16x128xf32>
    %273 = arith.mulf %263, %272 : vector<16x128xf32>
    %274 = vector.broadcast %255 : vector<1x128xf32> to vector<16x128xf32>
    %275 = arith.mulf %274, %273 : vector<16x128xf32>
    %276 = vector.broadcast %257 : vector<1x128xf32> to vector<16x128xf32>
    %277 = arith.addf %275, %276 : vector<16x128xf32>
    %c0_124 = arith.constant 0 : index
    %c0_125 = arith.constant 0 : index
    %278 = vector.load %arg20[%c0_124, %c0_125] : memref<128x128xbf16, #tpu.memory_space<vmem>>, vector<128x128xbf16>
    %279 = arith.truncf %277 : vector<16x128xf32> to vector<16x128xbf16>
    %cst_126 = arith.constant dense<0.000000e+00> : vector<16x128xf32>
    %280 = tpu.matmul %279, %278, %cst_126 {dimension_numbers = #tpu.dot_dimension_numbers<[1], [0], [0], [1], [0, 0, 1, 1], [], []>} : vector<16x128xbf16>, vector<128x128xbf16>, vector<16x128xf32> -> vector<16x128xf32>
    %c0_127 = arith.constant 0 : index
    %c0_128 = arith.constant 0 : index
    %281 = vector.load %arg21[%c0_127, %c0_128] : memref<1x128xf32, #tpu.memory_space<vmem>>, vector<1x128xf32>
    %282 = vector.broadcast %281 : vector<1x128xf32> to vector<16x128xf32>
    %283 = arith.addf %280, %282 : vector<16x128xf32>
    %c0_129 = arith.constant 0 : index
    %c0_130 = arith.constant 0 : index
    %284 = vector.load %arg22[%c0_129, %c0_130] : memref<16x128xf32, #tpu.memory_space<vmem>>, vector<16x128xf32>
    tpu.vector_store %arg22[%c0_129, %c0_130], %283 {strides = array<i32>} : memref<16x128xf32, #tpu.memory_space<vmem>>, vector<16x128xf32>,
    return
  }
  func.func @transform_0(%arg0: i32) -> (i32, i32) {
    %c0_i32 = arith.constant 0 : i32
    %c0_i32_0 = arith.constant 0 : i32
    %c0_i32_1 = arith.constant 0 : i32
    return %c0_i32, %c0_i32_0 : i32, i32
  }
  func.func @transform_1(%arg0: i32) -> (i32, i32) {
    %c0_i32 = arith.constant 0 : i32
    %c0_i32_0 = arith.constant 0 : i32
    %c0_i32_1 = arith.constant 0 : i32
    return %c0_i32, %c0_i32_0 : i32, i32
  }
  func.func @transform_2(%arg0: i32) -> (i32, i32) {
    %c0_i32 = arith.constant 0 : i32
    %c0_i32_0 = arith.constant 0 : i32
    %c0_i32_1 = arith.constant 0 : i32
    return %c0_i32, %c0_i32_0 : i32, i32
  }
  func.func @transform_3(%arg0: i32) -> (i32, i32) {
    %c0_i32 = arith.constant 0 : i32
    %c0_i32_0 = arith.constant 0 : i32
    %c0_i32_1 = arith.constant 0 : i32
    return %c0_i32, %c0_i32_0 : i32, i32
  }
  func.func @transform_4(%arg0: i32) -> (i32, i32) {
    %c0_i32 = arith.constant 0 : i32
    %c0_i32_0 = arith.constant 0 : i32
    %c0_i32_1 = arith.constant 0 : i32
    return %c0_i32, %c0_i32_0 : i32, i32
  }
  func.func @transform_5(%arg0: i32) -> (i32, i32) {
    %c0_i32 = arith.constant 0 : i32
    %c0_i32_0 = arith.constant 0 : i32
    %c0_i32_1 = arith.constant 0 : i32
    return %c0_i32, %c0_i32_0 : i32, i32
  }
  func.func @transform_6(%arg0: i32) -> (i32, i32) {
    %c0_i32 = arith.constant 0 : i32
    %c0_i32_0 = arith.constant 0 : i32
    %c0_i32_1 = arith.constant 0 : i32
    return %c0_i32, %c0_i32_0 : i32, i32
  }
  func.func @transform_7(%arg0: i32) -> (i32, i32, i32) {
    %c0_i32 = arith.constant 0 : i32
    %c0_i32_0 = arith.constant 0 : i32
    %c0_i32_1 = arith.constant 0 : i32
    %c0_i32_2 = arith.constant 0 : i32
    return %c0_i32, %c0_i32_0, %c0_i32_1 : i32, i32, i32
  }
  func.func @transform_8(%arg0: i32) -> (i32, i32, i32) {
    %c0_i32 = arith.constant 0 : i32
    %c0_i32_0 = arith.constant 0 : i32
    %c0_i32_1 = arith.constant 0 : i32
    %c0_i32_2 = arith.constant 0 : i32
    return %c0_i32, %c0_i32_0, %c0_i32_1 : i32, i32, i32
  }
  func.func @transform_9(%arg0: i32) -> (i32, i32, i32) {
    %c0_i32 = arith.constant 0 : i32
    %c0_i32_0 = arith.constant 0 : i32
    %c0_i32_1 = arith.constant 0 : i32
    %c0_i32_2 = arith.constant 0 : i32
    return %c0_i32, %c0_i32_0, %c0_i32_1 : i32, i32, i32
  }
  func.func @transform_10(%arg0: i32) -> (i32, i32, i32) {
    %c0_i32 = arith.constant 0 : i32
    %c0_i32_0 = arith.constant 0 : i32
    %c0_i32_1 = arith.constant 0 : i32
    %c0_i32_2 = arith.constant 0 : i32
    return %c0_i32, %c0_i32_0, %c0_i32_1 : i32, i32, i32
  }
  func.func @transform_11(%arg0: i32) -> (i32, i32, i32) {
    %c0_i32 = arith.constant 0 : i32
    %c0_i32_0 = arith.constant 0 : i32
    %c0_i32_1 = arith.constant 0 : i32
    %c0_i32_2 = arith.constant 0 : i32
    return %c0_i32, %c0_i32_0, %c0_i32_1 : i32, i32, i32
  }
  func.func @transform_12(%arg0: i32) -> (i32, i32, i32) {
    %c0_i32 = arith.constant 0 : i32
    %c0_i32_0 = arith.constant 0 : i32
    %c0_i32_1 = arith.constant 0 : i32
    %c0_i32_2 = arith.constant 0 : i32
    return %c0_i32, %c0_i32_0, %c0_i32_1 : i32, i32, i32
  }
  func.func @transform_13(%arg0: i32) -> (i32, i32, i32) {
    %c0_i32 = arith.constant 0 : i32
    %c0_i32_0 = arith.constant 0 : i32
    %c0_i32_1 = arith.constant 0 : i32
    %c0_i32_2 = arith.constant 0 : i32
    return %c0_i32, %c0_i32_0, %c0_i32_1 : i32, i32, i32
  }
  func.func @transform_14(%arg0: i32) -> (i32, i32, i32) {
    %c0_i32 = arith.constant 0 : i32
    %c0_i32_0 = arith.constant 0 : i32
    %c0_i32_1 = arith.constant 0 : i32
    %c0_i32_2 = arith.constant 0 : i32
    return %c0_i32, %c0_i32_0, %c0_i32_1 : i32, i32, i32
  }
  func.func @transform_15(%arg0: i32) -> (i32, i32, i32) {
    %c0_i32 = arith.constant 0 : i32
    %c0_i32_0 = arith.constant 0 : i32
    %c0_i32_1 = arith.constant 0 : i32
    %c0_i32_2 = arith.constant 0 : i32
    return %c0_i32, %c0_i32_0, %c0_i32_1 : i32, i32, i32
  }
  func.func @transform_16(%arg0: i32) -> (i32, i32, i32) {
    %c0_i32 = arith.constant 0 : i32
    %c0_i32_0 = arith.constant 0 : i32
    %c0_i32_1 = arith.constant 0 : i32
    %c0_i32_2 = arith.constant 0 : i32
    return %c0_i32, %c0_i32_0, %c0_i32_1 : i32, i32, i32
  }
  func.func @transform_17(%arg0: i32) -> (i32, i32, i32) {
    %c0_i32 = arith.constant 0 : i32
    %c0_i32_0 = arith.constant 0 : i32
    %c0_i32_1 = arith.constant 0 : i32
    %c0_i32_2 = arith.constant 0 : i32
    return %c0_i32, %c0_i32_0, %c0_i32_1 : i32, i32, i32
  }
  func.func @transform_18(%arg0: i32) -> (i32, i32, i32) {
    %c0_i32 = arith.constant 0 : i32
    %c0_i32_0 = arith.constant 0 : i32
    %c0_i32_1 = arith.constant 0 : i32
    %c0_i32_2 = arith.constant 0 : i32
    return %c0_i32, %c0_i32_0, %c0_i32_1 : i32, i32, i32
  }
  func.func @transform_19(%arg0: i32) -> (i32, i32) {
    %c0_i32 = arith.constant 0 : i32
    %c0_i32_0 = arith.constant 0 : i32
    %c0_i32_1 = arith.constant 0 : i32
    return %c0_i32, %c0_i32_0 : i32, i32
  }
  func.func @transform_20(%arg0: i32) -> (i32, i32) {
    %c0_i32 = arith.constant 0 : i32
    %c0_i32_0 = arith.constant 0 : i32
    %c0_i32_1 = arith.constant 0 : i32
    return %c0_i32, %c0_i32_0 : i32, i32
  }
  func.func @transform_21(%arg0: i32) -> (i32, i32) {
    %c0_i32 = arith.constant 0 : i32
    %c0_i32_0 = arith.constant 0 : i32
    %c0_i32_1 = arith.constant 0 : i32
    return %c0_i32, %c0_i32_0 : i32, i32
  }
}

</mosaic_0001>

<bundles_post_ra>
// kernel: tpu_custom_call.1
= control target key start
LH: loop header
LB: loop body
LE: loop exit
PB: predicated region body
PF: predicated region fallthrough
CT: control target
= control target key end

     0   :  { %s5027_s0 = inlined_call_operand.hbm [shape: f32[16,128], index: 0, kind: input, shape index: {}]   ;;  %s5028_s1 = inlined_call_operand.hbm [shape: bf16[128,128], index: 1, kind: input, shape index: {}]   ;;  %s5029_s2 = inlined_call_operand.hbm [shape: f32[1,128], index: 2, kind: input, shape index: {}]   ;;  %s5030_s3 = inlined_call_operand.hbm [shape: bf16[128,128], index: 3, kind: input, shape index: {}]   ;;  %s5031_s4 = inlined_call_operand.hbm [shape: f32[1,128], index: 4, kind: input, shape index: {}]   ;;  %s5032_s5 = inlined_call_operand.hbm [shape: f32[16,128], index: 5, kind: input, shape index: {}]   ;;  %s5033_s6 = inlined_call_operand.hbm [shape: bf16[64,128], index: 6, kind: input, shape index: {}]   ;;  %s5034_s7 = inlined_call_operand.hbm [shape: bf16[2,128,384], index: 7, kind: input, shape index: {}]   ;;  %s5035_s8 = inlined_call_operand.vmem [shape: f32[2,1,384], index: 8, kind: input, shape index: {}]   ;;  %s5036_s9 = inlined_call_operand.hbm [shape: bf16[2,128,128], index: 9, kind: input, shape index: {}]   ;;  %s5037_s10 = inlined_call_operand.vmem [shape: f32[2,1,128], index: 10, kind: input, shape index: {}]   ;;  %s5038_s11 = inlined_call_operand.vmem [shape: f32[2,1,128], index: 11, kind: input, shape index: {}]   ;;  %s5039_s12 = inlined_call_operand.vmem [shape: f32[2,1,128], index: 12, kind: input, shape index: {}]   ;;  %s5040_s13 = inlined_call_operand.hbm [shape: bf16[2,128,128], index: 13, kind: input, shape index: {}]   ;;  %s5041_s14 = inlined_call_operand.vmem [shape: f32[2,1,128], index: 14, kind: input, shape index: {}]   ;;  %s5042_s15 = inlined_call_operand.hbm [shape: bf16[2,128,128], index: 15, kind: input, shape index: {}]   ;;  %s5043_s16 = inlined_call_operand.vmem [shape: f32[2,1,128], index: 16, kind: input, shape index: {}]   ;;  %s5044_s17 = inlined_call_operand.vmem [shape: f32[2,1,128], index: 17, kind: input, shape index: {}]   ;;  %s5045_s18 = inlined_call_operand.vmem [shape: f32[2,1,128], index: 18, kind: input, shape index: {}]   ;;  %s5046_s19 = inlined_call_operand.hbm [shape: bf16[128,128], index: 19, kind: input, shape index: {}]   ;;  %s5047_s20 = inlined_call_operand.vmem [shape: f32[1,128], index: 20, kind: input, shape index: {}]   ;;  %s5048_s21 = inlined_call_operand.hbm [shape: f32[16,128], index: 21, kind: output, shape index: {}]  }
   0x1   :  { %5053 = sst [smem:[#allocation31_spill]] %s5027_s0 }
   0x2   :  { %5054 = sst [smem:[#allocation32_spill]] %s5028_s1 }
   0x3   :  { %5055 = sst [smem:[#allocation33_spill]] %s5029_s2 }
   0x4   :  { %5056 = sst [smem:[#allocation34_spill]] %s5030_s3 }
   0x5   :  { %5057 = sst [smem:[#allocation35_spill]] %s5031_s4 }
   0x6   :  { %5058 = sst [smem:[#allocation36_spill]] %s5032_s5 }
   0x7   :  { %5059 = sst [smem:[#allocation37_spill]] %s5048_s21 }
   0x8   :  { %26 = vsyncpa [#allocation3], 0 }
   0x9   :  { %27 = vsyncpa [#allocation6], 0 }
   0xa   :  { %28 = vsyncpa [#allocation9], 0 }
   0xb   :  { %29 = vsyncpa [#allocation12], 0 }
   0xc   :  { %30 = vsyncpa [#allocation15], 0 }
   0xd   :  { %31 = vsyncpa [#allocation18], 0 }
   0xe   :  { %32 = vsyncpa [#allocation21], 0 }
   0xf   :  { %33 = vsyncpa [#allocation4], 0  ;;  %s4260_s2 = smov [#allocation5]  }
  0x10   :  { %s51_s25 = sshll.u32 %s4260_s2, 4  ;;  %s52_s25 = int_to_ptr.vmem [resolvable:$true] %s51_s25 }
  0x11   :  { %s3992_s26 = scalar_lea.vmem %s52_s25, 1024  ;;  %p3997_p1 = scmp.lt.s32.totalorder %s52_s25, %s52_s25 }
  0x12   :  { %p3993_p0 = scmp.ne.s32.totalorder %s52_s25, %s3992_s26  ;;  %p3998_p2 = scmp.lt.s32.totalorder %s3992_s26, %s3992_s26 }
  0x14   :  { %p3999_p3 = por %p3998_p2, %p3997_p1 }
  0x16   :  { %p4000_p4 = pnand %p3999_p3, %p3993_p0 }
  0x18   :  { %4003 = shalt.err (!%p4000_p4)
}
  0x19   :  { %s5049_s27 = smov 64   ;;  %s5051_s3 = smov 4  }
  0x1a   :  { %s5060_s0 = sld [smem:[#allocation32_spill]]  ;;  %s4263_s4 = smov [#allocation8]  }
  0x1b   :  { %s73_s30 = sshll.u32 %s4263_s4, 4  ;;  %s74_s30 = int_to_ptr.vmem [resolvable:$true] %s73_s30 }
  0x1c   :  { %s4012_s5 = scalar_lea.vmem %s74_s30, 1024  ;;  %p4017_p6 = scmp.lt.s32.totalorder %s74_s30, %s74_s30 }
  0x1d   :  { %p4013_p5 = scmp.ne.s32.totalorder %s74_s30, %s4012_s5  ;;  %p4018_p7 = scmp.lt.s32.totalorder %s4012_s5, %s4012_s5 }
  0x1f   :  { %p4019_p8 = por %p4018_p7, %p4017_p6 }
  0x20   :  { %57 = dma.hbm_to_vmem [thread:$0]  %s5060_s0, 1024, %s52_s25, [#allocation6], %s5049_s27, %s5049_s27, %s5051_s3  }
  0x21   :  { %p4020_p9 = pnand %p4019_p8, %p4013_p5 }
  0x23   :  { %4023 = shalt.err (!%p4020_p9)
}
  0x24   :  { %s5061_s1 = sld [smem:[#allocation34_spill]]  ;;  %s4264_s24 = smov [#allocation11]  }
  0x25   :  { %s95_s2 = sshll.u32 %s4264_s24, 4  ;;  %s4265_s25 = smov [#allocation14]   ;;  %s96_s2 = int_to_ptr.vmem [resolvable:$true] %s95_s2 }
  0x26   :  { %s119_s26 = sshll.u32 %s4265_s25, 4  ;;  %s4032_s28 = scalar_lea.vmem %s96_s2, 256  ;;  %s120_s26 = int_to_ptr.vmem [resolvable:$true] %s119_s26 }
  0x27   :  { %p4033_p10 = scmp.ne.s32.totalorder %s96_s2, %s4032_s28  ;;  %p4037_p11 = scmp.lt.s32.totalorder %s96_s2, %s96_s2 }
  0x28   :  { %p4038_p12 = scmp.lt.s32.totalorder %s4032_s28, %s4032_s28 }
  0x2a   :  { %79 = dma.hbm_to_vmem [thread:$0]  %s5061_s1, 1024, %s74_s30, [#allocation9], %s5049_s27, %s5049_s27, %s5051_s3  }
  0x2b   :  { %p4039_p13 = por %p4038_p12, %p4037_p11 }
  0x2d   :  { %p4040_p0 = pnand %p4039_p13, %p4033_p10 }
  0x2f   :  { %4043 = shalt.err (!%p4040_p0)
}
  0x30   :  { %s4266_s29 = smov 128   ;;  %s4267_s0 = smov 8  }
  0x31   :  { %s5062_s5 = sld [smem:[#allocation36_spill]]  ;;  %s4052_s22 = scalar_lea.vmem %s120_s26, 6144 }
  0x32   :  { %p4053_p1 = scmp.ne.s32.totalorder %s120_s26, %s4052_s22  ;;  %p4057_p2 = scmp.lt.s32.totalorder %s120_s26, %s120_s26 }
  0x33   :  { %p4058_p3 = scmp.lt.s32.totalorder %s4052_s22, %s4052_s22 }
  0x35   :  { %p4059_p4 = por %p4058_p3, %p4057_p2 }
  0x37   :  { %101 = dma.hbm_to_vmem [thread:$0]  %s5062_s5, 256, %s96_s2, [#allocation12], %s4266_s29, %s4266_s29, %s4267_s0  }
  0x38   :  { %p4060_p5 = pnand %p4059_p4, %p4053_p1 }
  0x3a   :  { %4063 = shalt.err (!%p4060_p5)
}
  0x3b   :  { %s4268_s23 = smov 192   ;;  %s4269_s1 = smov 12  }
  0x3c   :  { %125 = dma.hbm_to_vmem [thread:$0]  %s5034_s7, 6144, %s120_s26, [#allocation15], %s4268_s23, %s4268_s23, %s4269_s1  }
  0x3d   :  { %s4270_s28 = smov [#allocation17]   ;;  %s4271_s3 = smov [#allocation2]  }
  0x3e   :  { %s151_s27 = sshll.u32 %s4270_s28, 4  ;;  %s39_s21 = sshll.u32 %s4271_s3, 4  ;;  %s152_s27 = int_to_ptr.vmem [resolvable:$true] %s151_s27  ;;  %s40_s21 = int_to_ptr.vmem [resolvable:$true] %s39_s21 }
  0x3f   :  { %s4072_s2 = scalar_lea.vmem %s152_s27, 2048  ;;  %p4077_p7 = scmp.lt.s32.totalorder %s152_s27, %s152_s27 }
  0x40   :  { %p4073_p6 = scmp.ne.s32.totalorder %s152_s27, %s4072_s2  ;;  %p4078_p8 = scmp.lt.s32.totalorder %s4072_s2, %s4072_s2 }
  0x42   :  { %p4079_p9 = por %p4078_p8, %p4077_p7 }
  0x44   :  { %p4080_p10 = pnand %p4079_p9, %p4073_p6 }
  0x46   :  { %4083 = shalt.err (!%p4080_p10)
}
  0x47   :  { %s5063_s4 = smov 4   ;;  %s5064_s30 = smov 64  }
  0x48   :  { %157 = dma.hbm_to_vmem [thread:$0]  %s5040_s13, 2048, %s152_s27, [#allocation18], %s5064_s30, %s5064_s30, %s5063_s4  }
  0x49   :  { %s4092_s7 = scalar_lea.vmem %s40_s21, 256  ;;  %p4097_p12 = scmp.lt.s32.totalorder %s40_s21, %s40_s21 }
  0x4a   :  { %p4093_p11 = scmp.ne.s32.totalorder %s40_s21, %s4092_s7  ;;  %p4098_p13 = scmp.lt.s32.totalorder %s4092_s7, %s4092_s7 }
  0x4c   :  { %p4099_p0 = por %p4098_p13, %p4097_p12 }
  0x4e   :  { %p4100_p1 = pnand %p4099_p0, %p4093_p11 }
  0x50   :  { %4103 = shalt.err (!%p4100_p1)
}
  0x51   :  { %s5065_s23 = sld [smem:[#allocation31_spill]]  ;;  %s4272_s1 = smov [#allocation7]  }
  0x52   :  { %s64_s24 = sshll.u32 %s4272_s1, 4  ;;  %s4273_s25 = smov [#allocation10]   ;;  %s65_s24 = int_to_ptr.vmem [resolvable:$true] %s64_s24 }
  0x53   :  { %s86_s28 = sshll.u32 %s4273_s25, 4  ;;  %s4112_s13 = scalar_lea.vmem %s65_s24, 16  ;;  %s87_s28 = int_to_ptr.vmem [resolvable:$true] %s86_s28 }
  0x54   :  { %p4113_p2 = scmp.ne.s32.totalorder %s65_s24, %s4112_s13  ;;  %s4116_s27 = scalar_lea.vmem %s65_s24, 32 }
  0x55   :  { %p4117_p3 = scmp.lt.s32.totalorder %s65_s24, %s65_s24  ;;  %p4118_p4 = scmp.lt.s32.totalorder %s4116_s27, %s4112_s13 }
  0x57   :  { %45 = dma.hbm_to_vmem [thread:$0]  %s5065_s23, 256, %s40_s21, [#allocation3], %s4266_s29, %s4266_s29, %s4267_s0  }
  0x58   :  { %p4119_p5 = por %p4118_p4, %p4117_p3 }
  0x5a   :  { %p4120_p6 = pnand %p4119_p5, %p4113_p2 }
  0x5c   :  { %4123 = shalt.err (!%p4120_p6)
}
  0x5d   :  { %s5066_s22 = sld [smem:[#allocation33_spill]]  ;;  %s4132_s7 = scalar_lea.vmem %s87_s28, 16 }
  0x5e   :  { %p4133_p7 = scmp.ne.s32.totalorder %s87_s28, %s4132_s7  ;;  %s4136_s21 = scalar_lea.vmem %s87_s28, 32 }
  0x5f   :  { %p4137_p8 = scmp.lt.s32.totalorder %s87_s28, %s87_s28  ;;  %p4138_p9 = scmp.lt.s32.totalorder %s4136_s21, %s4132_s7 }
  0x61   :  { %p4139_p10 = por %p4138_p9, %p4137_p8 }
  0x63   :  { %67 = dma.hbm_to_vmem [thread:$0]  %s5066_s22, 16, %s65_s24, [#allocation6]  }
  0x64   :  { %p4140_p11 = pnand %p4139_p10, %p4133_p7 }
  0x66   :  { %4143 = shalt.err (!%p4140_p11)
}
  0x67   :  { %s5067_s23 = sld [smem:[#allocation35_spill]]  ;;  %s4274_s1 = smov [#allocation13]  }
  0x68   :  { %s107_s25 = sshll.u32 %s4274_s1, 4  ;;  %s4275_s13 = smov [#allocation16]   ;;  %s108_s25 = int_to_ptr.vmem [resolvable:$true] %s107_s25 }
  0x69   :  { %s133_s27 = sshll.u32 %s4275_s13, 4  ;;  %s4152_s2 = scalar_lea.vmem %s108_s25, 512  ;;  %s134_s27 = int_to_ptr.vmem [resolvable:$true] %s133_s27 }
  0x6a   :  { %p4153_p12 = scmp.ne.s32.totalorder %s108_s25, %s4152_s2  ;;  %p4157_p13 = scmp.lt.s32.totalorder %s108_s25, %s108_s25 }
  0x6b   :  { %p4158_p0 = scmp.lt.s32.totalorder %s4152_s2, %s4152_s2 }
  0x6d   :  { %89 = dma.hbm_to_vmem [thread:$0]  %s5067_s23, 16, %s87_s28, [#allocation9]  }
  0x6e   :  { %p4159_p1 = por %p4158_p0, %p4157_p13 }
  0x70   :  { %p4160_p2 = pnand %p4159_p1, %p4153_p12 }
  0x72   :  { %4163 = shalt.err (!%p4160_p2)
}
  0x73   :  { %113 = dma.hbm_to_vmem [thread:$0]  %s5033_s6, 512, %s108_s25, [#allocation12], %s5064_s30, %s5064_s30, %s5063_s4  }
  0x74   :  { %s4172_s28 = scalar_lea.vmem %s134_s27, 2048  ;;  %p4177_p4 = scmp.lt.s32.totalorder %s134_s27, %s134_s27 }
  0x75   :  { %p4173_p3 = scmp.ne.s32.totalorder %s134_s27, %s4172_s28  ;;  %p4178_p5 = scmp.lt.s32.totalorder %s4172_s28, %s4172_s28 }
  0x77   :  { %p4179_p6 = por %p4178_p5, %p4177_p4 }
  0x79   :  { %p4180_p7 = pnand %p4179_p6, %p4173_p3 }
  0x7b   :  { %4183 = shalt.err (!%p4180_p7)
}
  0x7c   :  { %139 = dma.hbm_to_vmem [thread:$0]  %s5036_s9, 2048, %s134_s27, [#allocation15], %s5064_s30, %s5064_s30, %s5063_s4  }
  0x7d   :  { %s4276_s21 = smov [#allocation19]   ;;  %s4277_s26 = smov [#allocation20]  }
  0x7e   :  { %s165_s3 = sshll.u32 %s4276_s21, 4  ;;  %s183_s23 = sshll.u32 %s4277_s26, 4  ;;  %s166_s3 = int_to_ptr.vmem [resolvable:$true] %s165_s3  ;;  %s184_s23 = int_to_ptr.vmem [resolvable:$true] %s183_s23 }
  0x7f   :  { %s4192_s6 = scalar_lea.vmem %s166_s3, 2048  ;;  %p4197_p9 = scmp.lt.s32.totalorder %s166_s3, %s166_s3 }
  0x80   :  { %p4193_p8 = scmp.ne.s32.totalorder %s166_s3, %s4192_s6  ;;  %p4198_p10 = scmp.lt.s32.totalorder %s4192_s6, %s4192_s6 }
  0x82   :  { %p4199_p11 = por %p4198_p10, %p4197_p9 }
  0x84   :  { %p4200_p12 = pnand %p4199_p11, %p4193_p8 }
  0x86   :  { %4203 = shalt.err (!%p4200_p12)
}
  0x87   :  { %171 = dma.hbm_to_vmem [thread:$0]  %s5042_s15, 2048, %s166_s3, [#allocation18], %s5064_s30, %s5064_s30, %s5063_s4  }
  0x88   :  { %s4212_s9 = scalar_lea.vmem %s184_s23, 1024  ;;  %p4217_p0 = scmp.lt.s32.totalorder %s184_s23, %s184_s23 }
  0x89   :  { %p4213_p13 = scmp.ne.s32.totalorder %s184_s23, %s4212_s9  ;;  %p4218_p1 = scmp.lt.s32.totalorder %s4212_s9, %s4212_s9 }
  0x8b   :  { %p4219_p2 = por %p4218_p1, %p4217_p0 }
  0x8d   :  { %p4220_p3 = pnand %p4219_p2, %p4213_p13 }
  0x8f   :  { %4223 = shalt.err (!%p4220_p3)
}
  0x90   :  { %189 = dma.hbm_to_vmem [thread:$0]  %s5046_s19, 1024, %s184_s23, [#allocation21], %s5064_s30, %s5064_s30, %s5063_s4  }
  0x91   :  { %4244 = dma.done.wait [#allocation3], 256  }
  0x92   :  { %4245 = vsyncadd [#allocation3], 4294967040 }
  0x93   :  { %4246 = dma.done.wait [#allocation6], 1040  }
  0x94   :  { %4247 = vsyncadd [#allocation6], 4294966256 }
  0x95   :  { %4248 = dma.done.wait [#allocation9], 1040  }
  0x96   :  { %4249 = vsyncadd [#allocation9], 4294966256 }
  0x97   :  { %4250 = dma.done.wait [#allocation12], 768  }
  0x98   :  { %4251 = vsyncadd [#allocation12], 4294966528 }
  0x99   :  { %4252 = dma.done.wait [#allocation15], 8192  }
  0x9a   :  { %4253 = vsyncadd [#allocation15], 4294959104 }
  0x9b   :  { %4254 = dma.done.wait [#allocation18], 4096  }
  0x9c   :  { %4255 = vsyncadd [#allocation18], 4294963200 }
  0x9d   :  { %4256 = dma.done.wait [#allocation21], 1024  }
  0x9e   :  { %4257 = vsyncadd [#allocation21], 4294966272  ;;  %v4278_v0 = vmov 0.0   ;;  %vm4279_vm0 = vmmov 0   ;;  %v3696_v1 = vld [vmem:[#allocation5 + $0x38] sm:$0xff]   ;;  %v3697_v2 = vld [vmem:[#allocation5 + $0x30] sm:$0xff]  }
  0x9f   :  { %3370 = vmatprep.subr.bf16.mxu0 %v4278_v0  ;;  %3386 = vmatprep.mubr.msk.bf16.mxu0 %vm4279_vm0, %v4278_v0  ;;  %v3698_v3 = vld [vmem:[#allocation5 + $0x28] sm:$0xff]   ;;  %v3704_v4 = vld [vmem:[#allocation8 + $0x38] sm:$0xff]   ;;  %v3705_v6 = vld [vmem:[#allocation8 + $0x30] sm:$0xff]   ;;  %v4280_v54 = vmov 0   ;;  %vm1098_vm1 = vcmask 1043456   ;;  %vm901_vm2 = vcmask 64512  }
  0xa0   :  { %3390 = vmatprep.subr.bf16.mxu1 %v4278_v0  ;;  %3406 = vmatprep.mubr.msk.bf16.mxu1 %vm4279_vm0, %v4278_v0  ;;  %v3699_v5 = vld [vmem:[#allocation5 + $0x20] sm:$0xff]   ;;  %v3700_v7 = vld [vmem:[#allocation5 + $0x18] sm:$0xff]   ;;  %v3706_v8 = vld [vmem:[#allocation8 + $0x28] sm:$0xff]  }
  0xa1   :  { %3371 = vmatpush3.bf16.msra.mxu0 %v3696_v1  ;;  %3391 = vmatpush3.bf16.msra.mxu1 %v3704_v4  ;;  %v3701_v9 = vld [vmem:[#allocation5 + $0x10] sm:$0xff]   ;;  %v3707_v10 = vld [vmem:[#allocation8 + $0x20] sm:$0xff]   ;;  %v3708_v12 = vld [vmem:[#allocation8 + $0x18] sm:$0xff]   ;;  %v506_v4 = vlaneseq }
  0xa2   :  { %3372 = vmatprep.subr.bf16.mxu0 %v4278_v0  ;;  %3392 = vmatprep.subr.bf16.mxu1 %v4278_v0  ;;  %v3702_v11 = vld [vmem:[#allocation5 + $0x8] sm:$0xff]   ;;  %v3703_v13 = vld [vmem:[#allocation5] sm:$0xff]   ;;  %v229_v14 = vld [vmem:[#allocation2] sm:$0xff] }
  0xa3   :  { %v230_v15 = vld [vmem:[#allocation2 + $0x8] sm:$0xff]  ;;  %v3710_v18 = vld [vmem:[#allocation8 + $0x8] sm:$0xff]   ;;  %v3711_v19 = vld [vmem:[#allocation8] sm:$0xff]  }
  0xa4   :  { %v247_v16 = vpack.c.bf16 %v230_v15, %v229_v14  ;;  %v3709_v17 = vld [vmem:[#allocation8 + $0x10] sm:$0xff]   ;;  %v3712_v20 = vld [vmem:[#allocation14 + $0xa8] ss:$12 sps:$4 sm:$0xff]   ;;  %v3714_v21 = vld [vmem:[#allocation14 + $0xac] ss:$12 sps:$4 sm:$0xff]  }
  0xa5   :  { %3373 = vmatpush3.bf16.msra.mxu0 %v3697_v2  ;;  %3393 = vmatpush3.bf16.msra.mxu1 %v3705_v6  ;;  %v3718_v22 = vld [vmem:[#allocation14 + $0x94] ss:$12 sps:$4 sm:$0xff]   ;;  %v3716_v23 = vld [vmem:[#allocation14 + $0x90] ss:$12 sps:$4 sm:$0xff]   ;;  %v3720_v25 = vld [vmem:[#allocation14 + $0x78] ss:$12 sps:$4 sm:$0xff]  }
  0xa6   :  { %3374 = vmatprep.subr.bf16.mxu0 %v4278_v0  ;;  %3394 = vmatprep.subr.bf16.mxu1 %v4278_v0  ;;  %v3722_v24 = vld [vmem:[#allocation14 + $0x7c] ss:$12 sps:$4 sm:$0xff]   ;;  %v3726_v26 = vld [vmem:[#allocation14 + $0x64] ss:$12 sps:$4 sm:$0xff]   ;;  %v3724_v27 = vld [vmem:[#allocation14 + $0x60] ss:$12 sps:$4 sm:$0xff]  }
  0xa7   :  { %v3730_v28 = vld [vmem:[#allocation14 + $0x4c] ss:$12 sps:$4 sm:$0xff]   ;;  %v3728_v29 = vld [vmem:[#allocation14 + $0x48] ss:$12 sps:$4 sm:$0xff]   ;;  %v3732_v31 = vld [vmem:[#allocation14 + $0x30] ss:$12 sps:$4 sm:$0xff]  }
  0xa8   :  { %v3734_v30 = vld [vmem:[#allocation14 + $0x34] ss:$12 sps:$4 sm:$0xff]   ;;  %v3066_v32 = vld [vmem:[#allocation7] ss:$0 sm:$0xff]  ;;  %v3715_v41 = vld [vmem:[#allocation14 + $0xb0] ss:$12 sps:$4 sm:$0xff]  }
  0xa9   :  { %3375 = vmatpush3.bf16.msra.mxu0 %v3698_v3  ;;  %3395 = vmatpush3.bf16.msra.mxu1 %v3706_v8  ;;  %v3719_v43 = vld [vmem:[#allocation14 + $0x98] ss:$12 sps:$4 sm:$0xff]   ;;  %v3723_v44 = vld [vmem:[#allocation14 + $0x80] ss:$12 sps:$4 sm:$0xff]   ;;  %v3727_v45 = vld [vmem:[#allocation14 + $0x68] ss:$12 sps:$4 sm:$0xff]  }
  0xaa   :  { %3376 = vmatprep.subr.bf16.mxu0 %v4278_v0  ;;  %3396 = vmatprep.subr.bf16.mxu1 %v4278_v0  ;;  %v3731_v46 = vld [vmem:[#allocation14 + $0x50] ss:$12 sps:$4 sm:$0xff]   ;;  %v3735_v47 = vld [vmem:[#allocation14 + $0x38] ss:$12 sps:$4 sm:$0xff]   ;;  %v3739_v50 = vld [vmem:[#allocation14 + $0x20] ss:$12 sps:$4 sm:$0xff]  }
  0xab   :  { %v3738_v48 = vld [vmem:[#allocation14 + $0x1c] ss:$12 sps:$4 sm:$0xff]   ;;  %v3736_v49 = vld [vmem:[#allocation14 + $0x18] ss:$12 sps:$4 sm:$0xff]   ;;  %v3740_v52 = vld [vmem:[#allocation14] ss:$12 sps:$4 sm:$0xff]  }
  0xac   :  { %v3742_v51 = vld [vmem:[#allocation14 + $0x4] ss:$12 sps:$4 sm:$0xff]   ;;  %v3743_v53 = vld [vmem:[#allocation14 + $0x8] ss:$12 sps:$4 sm:$0xff]   ;;  %v3075_v55 = vld [vmem:[#allocation10] ss:$0 sm:$0xff] }
  0xad   :  { %3377 = vmatpush3.bf16.msra.mxu0 %v3699_v5  ;;  %3397 = vmatpush3.bf16.msra.mxu1 %v3707_v10  ;;  %v459_v59 = vld [vmem:[#allocation11] sm:$0xff]  ;;  %v460_v61 = vld [vmem:[#allocation11 + $0x8] sm:$0xff]  ;;  %v4492_v5 = vshrl.u32 %v506_v4, 7 }
  0xae   :  { %3378 = vmatprep.subr.bf16.mxu0 %v4278_v0  ;;  %3398 = vmatprep.subr.bf16.mxu1 %v4278_v0 }
  0xaf   :  { %v508_v6 = vsub.s32 0, %v4492_v5  ;;  %v516_v8 = vsub.s32 2, %v4492_v5 }
  0xb1   :  { %3379 = vmatpush3.bf16.msra.mxu0 %v3700_v7  ;;  %3399 = vmatpush3.bf16.msra.mxu1 %v3708_v12  ;;  %v504_v7 = vld [vmem:[%s5035_s8] sm:$0x7] }
  0xb2   :  { %3380 = vmatprep.subr.bf16.mxu0 %v4278_v0  ;;  %3400 = vmatprep.subr.bf16.mxu1 %v4278_v0  ;;  %v509_v10 = vrot.slane %v504_v7, %v508_v6 }
  0xb5   :  { %3381 = vmatpush3.bf16.msra.mxu0 %v3701_v9  ;;  %3401 = vmatpush3.bf16.msra.mxu1 %v3709_v17  ;;  %v512_v9 = vsub.s32 1, %v4492_v5 }
  0xb6   :  { %3382 = vmatprep.subr.bf16.mxu0 %v4278_v0  ;;  %3402 = vmatprep.subr.bf16.mxu1 %v4278_v0 }
  0xb7   :  { %v513_v12 = vrot.slane %v504_v7, %v512_v9 }
  0xb9   :  { %3383 = vmatpush3.bf16.msra.mxu0 %v3702_v11  ;;  %3403 = vmatpush3.bf16.msra.mxu1 %v3710_v18  ;;  %v517_v11 = vrot.slane %v504_v7, %v516_v8 }
  0xba   :  { %3384 = vmatprep.subr.bf16.mxu0 %v4278_v0  ;;  %3404 = vmatprep.subr.bf16.mxu1 %v4278_v0 }
  0xbd   :  { %3385 = vmatpush3.bf16.msra.mxu0 %v3703_v13  ;;  %3405 = vmatpush3.bf16.msra.mxu1 %v3711_v19  ;;  %v4506_v13 = vld [vmem:[#allocation13] sm:$0xff]  }
  0xbe   :  { %3410 = vmatprep.subr.bf16.mxu1 %v4278_v0  ;;  %649 = vmatprep.subr.bf16.mxu0 %v3714_v21 }
  0xc0   :  { %3387 = vmatmul.mubr.bf16.vlgmr.msra.gmra.mxu0 %v247_v16 }
  0xc1   :  { %650 = vmatpush1.bf16.msra.mxu0 %v3712_v20  ;;  %681 = vmatprep.mubr.bf16.mxu0 %v4280_v54 }
  0xc2   :  { %651 = vmatprep.subr.bf16.mxu0 %v3718_v22 }
  0xc5   :  { %652 = vmatpush1.bf16.msra.mxu0 %v3716_v23 }
  0xc6   :  { %653 = vmatprep.subr.bf16.mxu0 %v3722_v24 }
  0xc9   :  { %654 = vmatpush1.bf16.msra.mxu0 %v3720_v25 }
  0xca   :  { %655 = vmatprep.subr.bf16.mxu0 %v3726_v26 }
  0xcd   :  { %656 = vmatpush1.bf16.msra.mxu0 %v3724_v27 }
  0xce   :  { %657 = vmatprep.subr.bf16.mxu0 %v3730_v28 }
  0xd1   :  { %658 = vmatpush1.bf16.msra.mxu0 %v3728_v29  ;;  %v4509_v29 = vld [vmem:[#allocation13 + $0x8] sm:$0xff]  }
  0xd2   :  { %659 = vmatprep.subr.bf16.mxu0 %v3734_v30 }
  0xd5   :  { %660 = vmatpush1.bf16.msra.mxu0 %v3732_v31 }
  0xd6   :  { %661 = vmatprep.subr.bf16.mxu0 %v3738_v48 }
  0xd9   :  { %662 = vmatpush1.bf16.msra.mxu0 %v3736_v49 }
  0xda   :  { %663 = vmatprep.subr.bf16.mxu0 %v3742_v51 }
  0xdd   :  { %664 = vmatpush1.bf16.msra.mxu0 %v3740_v52 }
 0x180   :  { %v337_v33 = vpop.f32.mrf.mxu0 }
 0x181   :  { %v338_v35 = vadd.f32 %v3066_v32, %v337_v33 }
 0x182   :  { %v3388_v34 = vpop.f32.mrf.mxu0 }
 0x183   :  { %v344_v39 = vmax.f32 %v338_v35, 0.0  ;;  %v4511_v34 = vld [vmem:[#allocation13 + $0x10] sm:$0xff]  }
 0x184   :  { %v340_v36 = vpop.f32.mrf.mxu0 }
 0x185   :  { %v341_v37 = vadd.f32 %v3066_v32, %v340_v36 }
 0x186   :  { %v3389_v38 = vpop.f32.mrf.mxu0 }
 0x187   :  { %v345_v40 = vmax.f32 %v341_v37, 0.0 }
 0x189   :  { %v362_v42 = vpack.c.bf16 %v345_v40, %v344_v39  ;;  %v4518_v40 = vld [vmem:[#allocation13 + $0x18] sm:$0xff]  }
 0x18b   :  { %3407 = vmatmul.mubr.bf16.vlgmr.msra.gmra.mxu1 %v362_v42 }
 0x18c   :  { %3411 = vmatpush3.bf16.msra.mxu1 %v3715_v41  ;;  %3426 = vmatprep.mubr.msk.bf16.mxu1 %vm4279_vm0, %v4278_v0 }
 0x18d   :  { %3412 = vmatprep.subr.bf16.mxu1 %v4278_v0 }
 0x190   :  { %3413 = vmatpush3.bf16.msra.mxu1 %v3719_v43 }
 0x191   :  { %3414 = vmatprep.subr.bf16.mxu1 %v4278_v0 }
 0x194   :  { %3415 = vmatpush3.bf16.msra.mxu1 %v3723_v44 }
 0x195   :  { %3416 = vmatprep.subr.bf16.mxu1 %v4278_v0 }
 0x198   :  { %3417 = vmatpush3.bf16.msra.mxu1 %v3727_v45 }
 0x199   :  { %3418 = vmatprep.subr.bf16.mxu1 %v4278_v0 }
 0x19c   :  { %3419 = vmatpush3.bf16.msra.mxu1 %v3731_v46 }
 0x19d   :  { %3420 = vmatprep.subr.bf16.mxu1 %v4278_v0 }
 0x1a0   :  { %3421 = vmatpush3.bf16.msra.mxu1 %v3735_v47 }
 0x1a1   :  { %3422 = vmatprep.subr.bf16.mxu1 %v4278_v0 }
 0x1a4   :  { %3423 = vmatpush3.bf16.msra.mxu1 %v3739_v50 }
 0x1a5   :  { %3424 = vmatprep.subr.bf16.mxu1 %v4278_v0 }
 0x1a8   :  { %3425 = vmatpush3.bf16.msra.mxu1 %v3743_v53 }
 0x24b   :  { %v452_v56 = vpop.f32.mrf.mxu1 }
 0x24c   :  { %v453_v58 = vadd.f32 %v3075_v55, %v452_v56 }
 0x24d   :  { %v3408_v57 = vpop.f32.mrf.mxu1 }
 0x24e   :  { %v4486_v1 = vadd.f32 %v459_v59, %v453_v58 }
 0x24f   :  { %v455_v60 = vpop.f32.mrf.mxu1 }
 0x250   :  { %v456_v62 = vadd.f32 %v3075_v55, %v455_v60 }
 0x251   :  { %v3409_v63 = vpop.f32.mrf.mxu1 }
 0x252   :  { %v4488_v2 = vadd.f32 %v460_v61, %v456_v62 }
 0x254   :  { %v503_v3 = vpack.c.bf16 %v4488_v2, %v4486_v1 }
 0x256   :  { %682 = vmatmul.mubr.bf16.vlgmr.msra.gmra.mxu0 %v503_v3  ;;  %3427 = vmatmul.mubr.bf16.vlgmr.msra.gmra.mxu1 %v503_v3 }
 0x316   :  { %v683_v14 = vpop.f32.mrf.mxu0  ;;  %v726_v15 = vpop.f32.mrf.mxu1 }
 0x317   :  { %v684_v16 = vadd.f32 %v683_v14, %v509_v10  ;;  %v727_v20 = vadd.f32 %v726_v15, %v517_v11 }
 0x318   :  { %v685_v17 = vpop.f32.mrf.mxu0  ;;  %v3428_v18 = vpop.f32.mrf.mxu1 }
 0x319   :  { %v737_v19 = vpack.c.bf16 %v684_v16, %v684_v16  ;;  %v686_v21 = vadd.f32 %v685_v17, %v513_v12  ;;  %v735_v30 = vpack.c.bf16 %v727_v20, %v727_v20 }
 0x31a   :  { %v687_v22 = vpop.f32.mrf.mxu0  ;;  %v729_v23 = vpop.f32.mrf.mxu1 }
 0x31b   :  { %v733_v24 = vpack.c.bf16 %v686_v21, %v686_v21  ;;  %v688_v25 = vadd.f32 %v687_v22, %v509_v10  ;;  %v763_v28 = vmul.bf16 %v737_v19, %v4506_v13  ;;  %v730_v32 = vadd.f32 %v729_v23, %v517_v11 }
 0x31c   :  { %v689_v26 = vpop.f32.mrf.mxu0  ;;  %v3429_v27 = vpop.f32.mrf.mxu1  ;;  %v764_v38 = vmul.bf16 %v737_v19, %v4509_v29  ;;  %v765_v39 = vmul.bf16 %v737_v19, %v4511_v34  ;;  %v1100_v41 = vsel %vm1098_vm1, %v735_v30, 0  ;;  %v766_v45 = vmul.bf16 %v737_v19, %v4518_v40 }
 0x31d   :  { %v738_v31 = vpack.c.bf16 %v688_v25, %v688_v25  ;;  %v690_v33 = vadd.f32 %v689_v26, %v513_v12  ;;  %3430 = vmatprep.subr.bf16.mxu0 %v733_v24  ;;  %3432 = vmatprep.mubr.bf16.mxu0 %v763_v28  ;;  %v736_v37 = vpack.c.bf16 %v730_v32, %v730_v32 }
 0x31e   :  { %3431 = vmatpush3.bf16.xpose.msra.mxu0 %v733_v24 }
 0x31f   :  { %v734_v35 = vpack.c.bf16 %v690_v33, %v690_v33  ;;  %3670 = vmatprep.subr.msk.bf16.mxu0 %vm1098_vm1, %v735_v30  ;;  %v767_v36 = vmul.bf16 %v738_v31, %v4506_v13  ;;  %v768_v42 = vmul.bf16 %v738_v31, %v4509_v29  ;;  %v769_v43 = vmul.bf16 %v738_v31, %v4511_v34 }
 0x320   :  { %v1180_v44 = vsel %vm1098_vm1, %v736_v37, 0  ;;  %v770_v46 = vmul.bf16 %v738_v31, %v4518_v40 }
 0x321   :  { %3440 = vmatprep.subr.bf16.mxu1 %v734_v35  ;;  %3442 = vmatprep.mubr.bf16.mxu1 %v767_v36 }
 0x322   :  { %3441 = vmatpush3.bf16.xpose.msra.mxu1 %v734_v35 }
 0x323   :  { %3671 = vmatprep.subr.msk.bf16.mxu1 %vm1098_vm1, %v736_v37 }
 0x325   :  { %3433 = vmatmul.mubr.bf16.vlgmr.msra.gmra.mxu0 %v764_v38 }
 0x326   :  { %3436 = vmatprep.mubr.bf16.mxu0 %v765_v39  ;;  %3451 = vmatpush3.bf16.msra.mxu0 %v1100_v41 }
 0x327   :  { %3470 = vmatprep.subr.bf16.mxu0 %v4278_v0 }
 0x329   :  { %3443 = vmatmul.mubr.bf16.vlgmr.msra.gmra.mxu1 %v768_v42 }
 0x32a   :  { %3446 = vmatprep.mubr.bf16.mxu1 %v769_v43  ;;  %3461 = vmatpush3.bf16.msra.mxu1 %v1180_v44 }
 0x32b   :  { %3490 = vmatprep.subr.bf16.mxu1 %v4278_v0 }
 0x32d   :  { %3437 = vmatmul.mubr.bf16.gmra.mxu0 %v766_v45 }
 0x331   :  { %3447 = vmatmul.mubr.bf16.gmra.mxu1 %v770_v46 }
 0x3e5   :  { %v3434_v47 = vpop.f32.mrf.mxu0 }
 0x3e6   :  { %v908_v48 = vsel %vm901_vm2, %v3434_v47, -inf }
 0x3e7   :  { %909 = vmax.xlane.f32.xlu0 %v908_v48  ;;  %v805_v49 = vpop.f32.mrf.mxu0 }
 0x3e8   :  { %v902_v52 = vsel %vm901_vm2, %v805_v49, -inf }
 0x3e9   :  { %v3435_v50 = vpop.f32.mrf.mxu0  ;;  %v3444_v51 = vpop.f32.mrf.mxu1 }
 0x3ea   :  { %v911_v53 = vsel %vm901_vm2, %v3435_v50, -inf  ;;  %v932_v58 = vsel %vm901_vm2, %v3444_v51, -inf }
 0x3eb   :  { %v870_v55 = vpop.f32.mrf.mxu1  ;;  %903 = vmax.xlane.f32.xlu0 %v902_v52  ;;  %912 = vmax.xlane.f32.xlu1 %v911_v53  ;;  %v808_v56 = vpop.f32.mrf.mxu0 }
 0x3ec   :  { %v926_v59 = vsel %vm901_vm2, %v870_v55, -inf  ;;  %v905_v63 = vsel %vm901_vm2, %v808_v56, -inf }
 0x3ed   :  { %v3445_v57 = vpop.f32.mrf.mxu1  ;;  %v4533_v60 = vpop.f32.mrf.mxu0 }
 0x3ee   :  { %v935_v62 = vsel %vm901_vm2, %v3445_v57, -inf  ;;  %v920_v10 = vsel %vm901_vm2, %v4533_v60, -inf }
 0x3ef   :  { %v4535_v61 = vpop.f32.mrf.mxu1  ;;  %933 = vmax.xlane.f32.xlu0 %v932_v58  ;;  %927 = vmax.xlane.f32.xlu1 %v926_v59  ;;  %v4539_v3 = vpop.f32.mrf.mxu0 }
 0x3f0   :  { %v929_v7 = vsel %vm901_vm2, %v4535_v61, -inf  ;;  %v914_v14 = vsel %vm901_vm2, %v4539_v3, -inf }
 0x3f1   :  { %v4541_v4 = vpop.f32.mrf.mxu1  ;;  %v4547_v11 = vpop.f32.mrf.mxu0 }
 0x3f2   :  { %v923_v15 = vsel %vm901_vm2, %v4547_v11, -inf  ;;  %v944_v21 = vsel %vm901_vm2, %v4541_v4, -inf }
 0x3f3   :  { %936 = vmax.xlane.f32.xlu1 %v935_v62  ;;  %906 = vmax.xlane.f32.xlu0 %v905_v63  ;;  %v4549_v12 = vpop.f32.mrf.mxu1  ;;  %v4555_v16 = vpop.f32.mrf.mxu0 }
 0x3f4   :  { %v938_v18 = vsel %vm901_vm2, %v4549_v12, -inf  ;;  %v917_v19 = vsel %vm901_vm2, %v4555_v16, -inf }
 0x3f5   :  { %v4557_v17 = vpop.f32.mrf.mxu1 }
 0x3f6   :  { %v947_v23 = vsel %vm901_vm2, %v4557_v17, -inf }
 0x3f7   :  { %930 = vmax.xlane.f32.xlu1 %v929_v7  ;;  %921 = vmax.xlane.f32.xlu0 %v920_v10  ;;  %v4563_v20 = vpop.f32.mrf.mxu1 }
 0x3f8   :  { %v941_v22 = vsel %vm901_vm2, %v4563_v20, -inf }
 0x3fb   :  { %915 = vmax.xlane.f32.xlu0 %v914_v14  ;;  %924 = vmax.xlane.f32.xlu1 %v923_v15 }
 0x3ff   :  { %939 = vmax.xlane.f32.xlu0 %v938_v18  ;;  %918 = vmax.xlane.f32.xlu1 %v917_v19 }
 0x403   :  { %945 = vmax.xlane.f32.xlu0 %v944_v21  ;;  %942 = vmax.xlane.f32.xlu1 %v941_v22 }
 0x407   :  { %948 = vmax.xlane.f32.xlu1 %v947_v23 }
 0x470   :  { %v910_v24 = vpop.xlane.xlu0 %909 }
 0x471   :  { %v952_v25 = vsub.f32 %v3434_v47, %v910_v24 }
 0x473   :  { %v970_v26 = vmul.f32 1.442695, %v952_v25 }
 0x474   :  { %v904_v27 = vpop.xlane.xlu0 %903  ;;  %v913_v28 = vpop.xlane.xlu1 %912 }
 0x475   :  { %3840 = vpow2.f32 %v970_v26  ;;  %v950_v30 = vsub.f32 %v805_v49, %v904_v27  ;;  %v953_v31 = vsub.f32 %v3435_v50, %v913_v28 }
 0x477   :  { %v966_v32 = vmul.f32 1.442695, %v950_v30  ;;  %v972_v33 = vmul.f32 1.442695, %v953_v31 }
 0x478   :  { %v934_v35 = vpop.xlane.xlu0 %933  ;;  %v928_v36 = vpop.xlane.xlu1 %927 }
 0x479   :  { %3842 = vpow2.f32 %v966_v32  ;;  %v960_v37 = vsub.f32 %v3444_v51, %v934_v35  ;;  %v958_v38 = vsub.f32 %v870_v55, %v928_v36 }
 0x47a   :  { %3844 = vpow2.f32 %v972_v33 }
 0x47b   :  { %v986_v39 = vmul.f32 1.442695, %v960_v37  ;;  %v982_v41 = vmul.f32 1.442695, %v958_v38 }
 0x47c   :  { %v937_v42 = vpop.xlane.xlu1 %936  ;;  %v907_v43 = vpop.xlane.xlu0 %906 }
 0x47d   :  { %3846 = vpow2.f32 %v986_v39  ;;  %v961_v44 = vsub.f32 %v3445_v57, %v937_v42  ;;  %v951_v45 = vsub.f32 %v808_v56, %v907_v43 }
 0x47e   :  { %3848 = vpow2.f32 %v982_v41 }
 0x47f   :  { %v968_v46 = vmul.f32 1.442695, %v951_v45  ;;  %v988_v47 = vmul.f32 1.442695, %v961_v44 }
 0x480   :  { %v931_v48 = vpop.xlane.xlu1 %930  ;;  %v922_v49 = vpop.xlane.xlu0 %921 }
 0x481   :  { %v959_v50 = vsub.f32 %v4535_v61, %v931_v48  ;;  %v956_v52 = vsub.f32 %v4533_v60, %v922_v49  ;;  %3850 = vpow2.f32 %v968_v46 }
 0x482   :  { %v4573_v53 = vpop.eup %3840  ;;  %3852 = vpow2.f32 %v988_v47 }
 0x483   :  { %v978_v51 = vmul.f32 1.442695, %v956_v52  ;;  %v1004_v55 = vsel %vm901_vm2, %v4573_v53, 0.0  ;;  %v984_v58 = vmul.f32 1.442695, %v959_v50 }
 0x484   :  { %1005 = vadd.xlane.f32.xlu0 %v1004_v55  ;;  %v916_v56 = vpop.xlane.xlu0 %915  ;;  %v925_v57 = vpop.xlane.xlu1 %924 }
 0x485   :  { %v954_v59 = vsub.f32 %v4539_v3, %v916_v56  ;;  %v957_v62 = vsub.f32 %v4547_v11, %v925_v57  ;;  %3854 = vpow2.f32 %v978_v51 }
 0x486   :  { %v4579_v63 = vpop.eup %3842  ;;  %3856 = vpow2.f32 %v984_v58 }
 0x487   :  { %v4581_v60 = vpop.eup %3844  ;;  %v974_v61 = vmul.f32 1.442695, %v954_v59  ;;  %v998_v7 = vsel %vm901_vm2, %v4579_v63, 0.0  ;;  %v980_v10 = vmul.f32 1.442695, %v957_v62 }
 0x488   :  { %999 = vadd.xlane.f32.xlu0 %v998_v7  ;;  %v940_v14 = vpop.xlane.xlu0 %939  ;;  %v1007_v15 = vsel %vm901_vm2, %v4581_v60, 0.0  ;;  %v919_v18 = vpop.xlane.xlu1 %918 }
 0x489   :  { %3858 = vpow2.f32 %v974_v61  ;;  %v962_v3 = vsub.f32 %v4549_v12, %v940_v14  ;;  %1008 = vadd.xlane.f32.xlu1 %v1007_v15  ;;  %v955_v11 = vsub.f32 %v4555_v16, %v919_v18 }
 0x48a   :  { %v4589_v19 = vpop.eup %3846  ;;  %3860 = vpow2.f32 %v980_v10 }
 0x48b   :  { %v990_v21 = vmul.f32 1.442695, %v962_v3  ;;  %v1028_v22 = vsel %vm901_vm2, %v4589_v19, 0.0  ;;  %v4593_v23 = vpop.eup %3848  ;;  %v976_v24 = vmul.f32 1.442695, %v955_v11 }
 0x48c   :  { %1029 = vadd.xlane.f32.xlu0 %v1028_v22  ;;  %v946_v25 = vpop.xlane.xlu0 %945  ;;  %v943_v26 = vpop.xlane.xlu1 %942  ;;  %v1022_v30 = vsel %vm901_vm2, %v4593_v23, 0.0 }
 0x48d   :  { %3862 = vpow2.f32 %v990_v21  ;;  %v964_v27 = vsub.f32 %v4541_v4, %v946_v25  ;;  %v963_v12 = vsub.f32 %v4563_v20, %v943_v26 }
 0x48e   :  { %v4597_v28 = vpop.eup %3850  ;;  %3864 = vpow2.f32 %v976_v24 }
 0x48f   :  { %v994_v16 = vmul.f32 1.442695, %v964_v27  ;;  %v992_v31 = vmul.f32 1.442695, %v963_v12  ;;  %v1001_v32 = vsel %vm901_vm2, %v4597_v28, 0.0  ;;  %v4603_v35 = vpop.eup %3852 }
 0x490   :  { %1023 = vadd.xlane.f32.xlu0 %v1022_v30  ;;  %v949_v33 = vpop.xlane.xlu1 %948  ;;  %1002 = vadd.xlane.f32.xlu1 %v1001_v32  ;;  %v1031_v38 = vsel %vm901_vm2, %v4603_v35, 0.0 }
 0x491   :  { %3866 = vpow2.f32 %v994_v16  ;;  %v965_v4 = vsub.f32 %v4557_v17, %v949_v33 }
 0x492   :  { %v4606_v20 = vpop.eup %3854  ;;  %3868 = vpow2.f32 %v992_v31 }
 0x493   :  { %v996_v36 = vmul.f32 1.442695, %v965_v4  ;;  %v1016_v37 = vsel %vm901_vm2, %v4606_v20, 0.0  ;;  %v4612_v39 = vpop.eup %3856 }
 0x494   :  { %1017 = vadd.xlane.f32.xlu0 %v1016_v37  ;;  %1032 = vadd.xlane.f32.xlu1 %v1031_v38  ;;  %v1025_v17 = vsel %vm901_vm2, %v4612_v39, 0.0 }
 0x495   :  { %3870 = vpow2.f32 %v996_v36 }
 0x496   :  { %v4614_v41 = vpop.eup %3858 }
 0x497   :  { %v1010_v42 = vsel %vm901_vm2, %v4614_v41, 0.0  ;;  %v4620_v43 = vpop.eup %3860 }
 0x498   :  { %1011 = vadd.xlane.f32.xlu0 %v1010_v42  ;;  %1026 = vadd.xlane.f32.xlu1 %v1025_v17  ;;  %v1019_v46 = vsel %vm901_vm2, %v4620_v43, 0.0 }
 0x49a   :  { %v4622_v44 = vpop.eup %3862 }
 0x49b   :  { %v1034_v45 = vsel %vm901_vm2, %v4622_v44, 0.0  ;;  %v4628_v47 = vpop.eup %3864 }
 0x49c   :  { %1035 = vadd.xlane.f32.xlu0 %v1034_v45  ;;  %1020 = vadd.xlane.f32.xlu1 %v1019_v46  ;;  %v1013_v50 = vsel %vm901_vm2, %v4628_v47, 0.0 }
 0x49e   :  { %v4630_v48 = vpop.eup %3866 }
 0x49f   :  { %v1040_v49 = vsel %vm901_vm2, %v4630_v48, 0.0  ;;  %v4636_v52 = vpop.eup %3868 }
 0x4a0   :  { %1041 = vadd.xlane.f32.xlu0 %v1040_v49  ;;  %1014 = vadd.xlane.f32.xlu1 %v1013_v50  ;;  %v1037_v51 = vsel %vm901_vm2, %v4636_v52, 0.0 }
 0x4a2   :  { %v4640_v55 = vpop.eup %3870 }
 0x4a3   :  { %v1043_v58 = vsel %vm901_vm2, %v4640_v55, 0.0 }
 0x4a4   :  { %1038 = vadd.xlane.f32.xlu1 %v1037_v51 }
 0x4a8   :  { %1044 = vadd.xlane.f32.xlu1 %v1043_v58 }
 0x50d   :  { %v1006_v56 = vpop.xlane.xlu0 %1005 }
 0x511   :  { %v1000_v57 = vpop.xlane.xlu0 %999 }
 0x512   :  { %v1009_v59 = vpop.xlane.xlu1 %1008 }
 0x513   :  { %3872 = vrcp.f32 %v1009_v59 }
 0x514   :  { %3874 = vrcp.f32 %v1000_v57 }
 0x515   :  { %v1030_v62 = vpop.xlane.xlu0 %1029  ;;  %3876 = vrcp.f32 %v1006_v56 }
 0x519   :  { %v1024_v61 = vpop.xlane.xlu0 %1023  ;;  %v1003_v7 = vpop.xlane.xlu1 %1002 }
 0x51a   :  { %3878 = vrcp.f32 %v1003_v7 }
 0x51d   :  { %v1018_v10 = vpop.xlane.xlu0 %1017  ;;  %v1033_v14 = vpop.xlane.xlu1 %1032 }
 0x51e   :  { %3880 = vrcp.f32 %v1033_v14 }
 0x51f   :  { %3882 = vrcp.f32 %v1024_v61 }
 0x520   :  { %3884 = vrcp.f32 %v1030_v62  ;;  %v3873_v3 = vpop.eup %3872 }
 0x521   :  { %v1012_v15 = vpop.xlane.xlu0 %1011  ;;  %v1027_v18 = vpop.xlane.xlu1 %1026  ;;  %v1065_v25 = vmul.f32 %v3873_v3, %v4581_v60  ;;  %v3754_v3 = vld [vmem:[#allocation16 + $0x8] sm:$0xff]  }
 0x522   :  { %3886 = vrcp.f32 %v1027_v18  ;;  %v3875_v11 = vpop.eup %3874  ;;  %v3753_v18 = vld [vmem:[#allocation16 + $0x10] sm:$0xff]  }
 0x523   :  { %v3877_v22 = vpop.eup %3876  ;;  %v1062_v27 = vmul.f32 %v3875_v11, %v4579_v63  ;;  %v3755_v11 = vld [vmem:[#allocation16] sm:$0xff]  }
 0x524   :  { %v1064_v16 = vmul.f32 %v3877_v22, %v4573_v53 }
 0x525   :  { %v1021_v21 = vpop.xlane.xlu1 %1020  ;;  %v1036_v26 = vpop.xlane.xlu0 %1035 }
 0x526   :  { %3888 = vrcp.f32 %v1021_v21  ;;  %v1079_v32 = vpack.c.bf16 %v1065_v25, %v1064_v16  ;;  %v4681_v25 = vunpack.c.h.bf16 %v4506_v13 }
 0x527   :  { %v3879_v24 = vpop.eup %3878  ;;  %3890 = vrcp.f32 %v1012_v15  ;;  %v3750_v15 = vld [vmem:[#allocation16 + $0x28] sm:$0xff]  }
 0x528   :  { %v1063_v12 = vmul.f32 %v3879_v24, %v4597_v28  ;;  %3892 = vrcp.f32 %v1018_v10 }
 0x529   :  { %v1015_v30 = vpop.xlane.xlu1 %1014  ;;  %v1042_v4 = vpop.xlane.xlu0 %1041 }
 0x52a   :  { %v1078_v31 = vpack.c.bf16 %v1063_v12, %v1062_v27  ;;  %3894 = vrcp.f32 %v1015_v30  ;;  %v4684_v12 = vunpack.c.l.bf16 %v4506_v13 }
 0x52b   :  { %3896 = vrcp.f32 %v1036_v26  ;;  %v3881_v33 = vpop.eup %3880 }
 0x52c   :  { %3452 = vmatprep.mubr.msk.bf16.mxu0 %vm901_vm2, %v1078_v31  ;;  %v3883_v36 = vpop.eup %3882  ;;  %v1073_v53 = vmul.f32 %v3881_v33, %v4603_v35 }
 0x52d   :  { %3453 = vmatmul.mubr.msk.bf16.vlgmr.msra.gmra.mxu0 %vm901_vm2, %v1079_v32  ;;  %v1039_v60 = vpop.xlane.xlu1 %1038  ;;  %v3885_v63 = vpop.eup %3884  ;;  %v1070_v38 = vmul.f32 %v3883_v36, %v4593_v23  ;;  %v4688_v32 = vunpack.c.l.bf16 %v4509_v29 }
 0x52e   :  { %3898 = vrcp.f32 %v1039_v60  ;;  %v1072_v17 = vmul.f32 %v3885_v63, %v4589_v19 }
 0x52f   :  { %v3887_v28 = vpop.eup %3886  ;;  %3900 = vrcp.f32 %v1042_v4 }
 0x530   :  { %v1071_v42 = vmul.f32 %v3887_v28, %v4612_v39  ;;  %v1083_v46 = vpack.c.bf16 %v1073_v53, %v1072_v17  ;;  %v4694_v53 = vunpack.c.h.bf16 %v4509_v29 }
 0x531   :  { %v1045_v37 = vpop.xlane.xlu1 %1044 }
 0x532   :  { %3902 = vrcp.f32 %v1045_v37  ;;  %v1082_v45 = vpack.c.bf16 %v1071_v42, %v1070_v38  ;;  %v4698_v38 = vunpack.c.l.bf16 %v4511_v34 }
 0x533   :  { %v3889_v49 = vpop.eup %3888 }
 0x534   :  { %3462 = vmatprep.mubr.msk.bf16.mxu1 %vm901_vm2, %v1082_v45  ;;  %v3891_v50 = vpop.eup %3890  ;;  %v1069_v35 = vmul.f32 %v3889_v49, %v4620_v43 }
 0x535   :  { %3463 = vmatmul.mubr.msk.bf16.vlgmr.msra.gmra.mxu1 %vm901_vm2, %v1083_v46  ;;  %v3893_v51 = vpop.eup %3892  ;;  %v1066_v23 = vmul.f32 %v3891_v50, %v4614_v41  ;;  %v4701_v46 = vunpack.c.h.bf16 %v4511_v34 }
 0x536   :  { %v1068_v19 = vmul.f32 %v3893_v51, %v4606_v20 }
 0x537   :  { %v3895_v58 = vpop.eup %3894 }
 0x538   :  { %v3897_v56 = vpop.eup %3896  ;;  %v1067_v39 = vmul.f32 %v3895_v58, %v4628_v47  ;;  %v1081_v62 = vpack.c.bf16 %v1069_v35, %v1068_v19 }
 0x539   :  { %v1074_v61 = vmul.f32 %v3897_v56, %v4622_v44  ;;  %v3748_v44 = vld [vmem:[#allocation16 + $0x38] sm:$0xff]  }
 0x53a   :  { %v1080_v59 = vpack.c.bf16 %v1067_v39, %v1066_v23  ;;  %3471 = vmatpush3.bf16.msra.mxu0 %v3748_v44 }
 0x53b   :  { %v3899_v57 = vpop.eup %3898  ;;  %3472 = vmatprep.subr.bf16.mxu0 %v4278_v0 }
 0x53c   :  { %v1075_v7 = vmul.f32 %v3899_v57, %v4636_v52  ;;  %v3901_v10 = vpop.eup %3900  ;;  %3456 = vmatprep.mubr.msk.bf16.mxu0 %vm901_vm2, %v1080_v59  ;;  %v3749_v52 = vld [vmem:[#allocation16 + $0x30] sm:$0xff]  }
 0x53d   :  { %3457 = vmatmul.mubr.msk.bf16.gmra.mxu0 %vm901_vm2, %v1081_v62  ;;  %v1076_v20 = vmul.f32 %v3901_v10, %v4630_v48  ;;  %v3751_v48 = vld [vmem:[#allocation16 + $0x20] sm:$0xff]   ;;  %v4709_v62 = vunpack.c.l.bf16 %v4518_v40 }
 0x53e   :  { %v1084_v43 = vpack.c.bf16 %v1075_v7, %v1074_v61  ;;  %3486 = vmatprep.mubr.msk.bf16.mxu0 %vm4279_vm0, %v4278_v0  ;;  %3473 = vmatpush3.bf16.msra.mxu0 %v3749_v52 }
 0x53f   :  { %v3903_v14 = vpop.eup %3902  ;;  %3474 = vmatprep.subr.bf16.mxu0 %v4278_v0 }
 0x540   :  { %3466 = vmatprep.mubr.msk.bf16.mxu1 %vm901_vm2, %v1084_v43  ;;  %v1077_v41 = vmul.f32 %v3903_v14, %v4640_v55  ;;  %v3752_v55 = vld [vmem:[#allocation16 + $0x18] sm:$0xff]  }
 0x542   :  { %v1085_v47 = vpack.c.bf16 %v1077_v41, %v1076_v20  ;;  %3475 = vmatpush3.bf16.msra.mxu0 %v3750_v15 }
 0x543   :  { %3476 = vmatprep.subr.bf16.mxu0 %v4278_v0 }
 0x544   :  { %3467 = vmatmul.mubr.msk.bf16.gmra.mxu1 %vm901_vm2, %v1085_v47  ;;  %v4714_v47 = vunpack.c.h.bf16 %v4518_v40 }
 0x545   :  { %3506 = vmatprep.mubr.msk.bf16.mxu1 %vm4279_vm0, %v4278_v0 }
 0x546   :  { %3477 = vmatpush3.bf16.msra.mxu0 %v3751_v48 }
 0x547   :  { %3478 = vmatprep.subr.bf16.mxu0 %v4278_v0 }
 0x54a   :  { %3479 = vmatpush3.bf16.msra.mxu0 %v3752_v55 }
 0x54b   :  { %3480 = vmatprep.subr.bf16.mxu0 %v4278_v0 }
 0x54e   :  { %3481 = vmatpush3.bf16.msra.mxu0 %v3753_v18 }
 0x54f   :  { %3482 = vmatprep.subr.bf16.mxu0 %v4278_v0 }
 0x552   :  { %3483 = vmatpush3.bf16.msra.mxu0 %v3754_v3 }
 0x553   :  { %3484 = vmatprep.subr.bf16.mxu0 %v4278_v0 }
 0x556   :  { %3485 = vmatpush3.bf16.msra.mxu0 %v3755_v11 }
 0x557   :  { %3510 = vmatprep.subr.bf16.mxu0 %v4278_v0 }
 0x5ed   :  { %v3454_v21 = vpop.f32.mrf.mxu0 }
 0x5ee   :  { %v1257_v28 = vmul.f32 %v3454_v21, %v4688_v32 }
 0x5ef   :  { %v1136_v22 = vpop.f32.mrf.mxu0 }
 0x5f0   :  { %v1255_v33 = vmul.f32 %v4684_v12, %v1136_v22 }
 0x5f1   :  { %v3455_v24 = vpop.f32.mrf.mxu0 }
 0x5f2   :  { %v1258_v50 = vmul.f32 %v3455_v24, %v4694_v53 }
 0x5f3   :  { %v1139_v26 = vpop.f32.mrf.mxu0 }
 0x5f4   :  { %v1256_v30 = vmul.f32 %v4681_v25, %v1139_v26  ;;  %v3120_v26 = vld [vmem:[%s5037_s10] ss:$0 sm:$0xff] }
 0x5f5   :  { %v3464_v27 = vpop.f32.mrf.mxu1 }
 0x5f6   :  { %v1271_v60 = vadd.f32 %v1256_v30, %v1255_v33  ;;  %v1265_v51 = vmul.f32 %v3464_v27, %v4688_v32 }
 0x5f7   :  { %v1216_v16 = vpop.f32.mrf.mxu1 }
 0x5f8   :  { %v1263_v37 = vmul.f32 %v4684_v12, %v1216_v16  ;;  %v1273_v17 = vadd.f32 %v1271_v60, %v1257_v28 }
 0x5f9   :  { %v3465_v31 = vpop.f32.mrf.mxu1 }
 0x5fa   :  { %v1275_v39 = vadd.f32 %v1273_v17, %v1258_v50  ;;  %v1266_v59 = vmul.f32 %v3465_v31, %v4694_v53 }
 0x5fb   :  { %v1219_v4 = vpop.f32.mrf.mxu1 }
 0x5fc   :  { %v1264_v36 = vmul.f32 %v4681_v25, %v1219_v4 }
 0x5fd   :  { %v3458_v63 = vpop.f32.mrf.mxu0 }
 0x5fe   :  { %v1272_v45 = vadd.f32 %v1264_v36, %v1263_v37  ;;  %v1261_v41 = vmul.f32 %v3458_v63, %v4709_v62  ;;  %v3756_v63 = vld [vmem:[#allocation17 + $0x38] sm:$0xff]  }
 0x5ff   :  { %v1152_v42 = vpop.f32.mrf.mxu0  ;;  %3491 = vmatpush3.bf16.msra.mxu1 %v3756_v63 }
 0x600   :  { %v1259_v58 = vmul.f32 %v4698_v38, %v1152_v42  ;;  %v1274_v23 = vadd.f32 %v1272_v45, %v1265_v51  ;;  %3492 = vmatprep.subr.bf16.mxu1 %v4278_v0  ;;  %v3757_v51 = vld [vmem:[#allocation17 + $0x30] sm:$0xff]  }
 0x601   :  { %v3459_v49 = vpop.f32.mrf.mxu0 }
 0x602   :  { %v1277_v61 = vadd.f32 %v1275_v39, %v1259_v58  ;;  %v1276_v14 = vadd.f32 %v1274_v23, %v1266_v59  ;;  %v1262_v18 = vmul.f32 %v3459_v49, %v4714_v47  ;;  %v3759_v58 = vld [vmem:[#allocation17 + $0x20] sm:$0xff]   ;;  %v3762_v23 = vld [vmem:[#allocation17 + $0x8] sm:$0xff]  }
 0x603   :  { %v1155_v35 = vpop.f32.mrf.mxu0  ;;  %3493 = vmatpush3.bf16.msra.mxu1 %v3757_v51  ;;  %v3763_v39 = vld [vmem:[#allocation17] sm:$0xff]   ;;  %v3766_v59 = vld [vmem:[#allocation19 + $0x28] sm:$0xff]  }
 0x604   :  { %v3468_v56 = vpop.f32.mrf.mxu1  ;;  %v1260_v19 = vmul.f32 %v4701_v46, %v1155_v35  ;;  %3494 = vmatprep.subr.bf16.mxu1 %v4278_v0  ;;  %v3760_v35 = vld [vmem:[#allocation17 + $0x18] sm:$0xff]  }
 0x605   :  { %v1269_v48 = vmul.f32 %v3468_v56, %v4709_v62  ;;  %v3761_v56 = vld [vmem:[#allocation17 + $0x10] sm:$0xff]  }
 0x606   :  { %v1232_v57 = vpop.f32.mrf.mxu1  ;;  %v1279_v43 = vadd.f32 %v1277_v61, %v1260_v19  ;;  %v3764_v19 = vld [vmem:[#allocation19 + $0x38] sm:$0xff]   ;;  %v3767_v61 = vld [vmem:[#allocation19 + $0x20] sm:$0xff]  }
 0x607   :  { %v1267_v7 = vmul.f32 %v4698_v38, %v1232_v57  ;;  %v3765_v57 = vld [vmem:[#allocation19 + $0x30] sm:$0xff]  }
 0x608   :  { %v3469_v10 = vpop.f32.mrf.mxu1  ;;  %v1281_v15 = vadd.f32 %v1279_v43, %v1261_v41 }
 0x609   :  { %v1278_v44 = vadd.f32 %v1276_v14, %v1267_v7  ;;  %v1270_v3 = vmul.f32 %v3469_v10, %v4714_v47  ;;  %v3768_v7 = vld [vmem:[#allocation19 + $0x18] sm:$0xff]  }
 0x60a   :  { %v1235_v20 = vpop.f32.mrf.mxu1  ;;  %v1283_v21 = vadd.f32 %v1281_v15, %v1262_v18 }
 0x60b   :  { %v1268_v52 = vmul.f32 %v4701_v46, %v1235_v20 }
 0x60d   :  { %v1280_v55 = vadd.f32 %v1278_v44, %v1268_v52 }
 0x60f   :  { %v1282_v11 = vadd.f32 %v1280_v55, %v1269_v48  ;;  %v3129_v48 = vld [vmem:[%s5038_s11] ss:$0 sm:$0xff] }
 0x611   :  { %v1284_v22 = vadd.f32 %v1282_v11, %v1270_v3  ;;  %v3130_v11 = vld [vmem:[%s5039_s12] ss:$0 sm:$0xff] }
 0x613   :  { %v1301_v24 = vpack.c.bf16 %v1284_v22, %v1283_v21 }
 0x615   :  { %3487 = vmatmul.mubr.bf16.vlgmr.msra.gmra.mxu0 %v1301_v24 }
 0x616   :  { %3526 = vmatprep.mubr.msk.bf16.mxu0 %vm4279_vm0, %v4278_v0  ;;  %3511 = vmatpush3.bf16.msra.mxu0 %v3764_v19 }
 0x617   :  { %3512 = vmatprep.subr.bf16.mxu0 %v4278_v0 }
 0x61a   :  { %3513 = vmatpush3.bf16.msra.mxu0 %v3765_v57 }
 0x61b   :  { %3514 = vmatprep.subr.bf16.mxu0 %v4278_v0 }
 0x61e   :  { %3515 = vmatpush3.bf16.msra.mxu0 %v3766_v59 }
 0x61f   :  { %3516 = vmatprep.subr.bf16.mxu0 %v4278_v0 }
 0x622   :  { %3517 = vmatpush3.bf16.msra.mxu0 %v3767_v61 }
 0x623   :  { %3518 = vmatprep.subr.bf16.mxu0 %v4278_v0 }
 0x626   :  { %3519 = vmatpush3.bf16.msra.mxu0 %v3768_v7 }
 0x627   :  { %3520 = vmatprep.subr.bf16.mxu0 %v4278_v0 }
 0x6d5   :  { %v1391_v27 = vpop.f32.mrf.mxu0 }
 0x6d6   :  { %v1392_v16 = vadd.f32 %v3120_v26, %v1391_v27  ;;  %v3769_v27 = vld [vmem:[#allocation19 + $0x10] sm:$0xff]  }
 0x6d7   :  { %v3488_v30 = vpop.f32.mrf.mxu0  ;;  %3521 = vmatpush3.bf16.msra.mxu0 %v3769_v27  ;;  %v3795_v27 = vld [vmem:[#allocation14 + $0xf8] ss:$12 sps:$4 sm:$0xff]  }
 0x6d8   :  { %v1398_v31 = vadd.f32 %v1392_v16, %v4486_v1  ;;  %3522 = vmatprep.subr.bf16.mxu0 %v4278_v0  ;;  %v3770_v16 = vld [vmem:[#allocation19 + $0x8] sm:$0xff]   ;;  %v3771_v30 = vld [vmem:[#allocation19] sm:$0xff]  }
 0x6d9   :  { %v1394_v33 = vpop.f32.mrf.mxu0 }
 0x6da   :  { %v1395_v4 = vadd.f32 %v3120_v26, %v1394_v33  ;;  %1402 = vadd.xlane.f32.xlu0 %v1398_v31 }
 0x6db   :  { %v3489_v60 = vpop.f32.mrf.mxu0  ;;  %3523 = vmatpush3.bf16.msra.mxu0 %v3770_v16  ;;  %v3798_v16 = vld [vmem:[#allocation14 + $0xdc] ss:$12 sps:$4 sm:$0xff]  }
 0x6dc   :  { %v1399_v36 = vadd.f32 %v1395_v4, %v4488_v2  ;;  %v3758_v2 = vld [vmem:[#allocation17 + $0x28] sm:$0xff]   ;;  %3524 = vmatprep.subr.bf16.mxu0 %v4278_v0 }
 0x6dd   :  { %3495 = vmatpush3.bf16.msra.mxu1 %v3758_v2 }
 0x6de   :  { %1404 = vadd.xlane.f32.xlu1 %v1399_v36  ;;  %3496 = vmatprep.subr.bf16.mxu1 %v4278_v0 }
 0x6df   :  { %3525 = vmatpush3.bf16.msra.mxu0 %v3771_v30  ;;  %v3796_v30 = vld [vmem:[#allocation14 + $0xd8] ss:$12 sps:$4 sm:$0xff]  }
 0x6e0   :  { %3530 = vmatprep.subr.bf16.mxu0 %v4278_v0 }
 0x6e1   :  { %3497 = vmatpush3.bf16.msra.mxu1 %v3759_v58 }
 0x6e2   :  { %3498 = vmatprep.subr.bf16.mxu1 %v4278_v0 }
 0x6e5   :  { %3499 = vmatpush3.bf16.msra.mxu1 %v3760_v35 }
 0x6e6   :  { %3500 = vmatprep.subr.bf16.mxu1 %v4278_v0 }
 0x6e9   :  { %3501 = vmatpush3.bf16.msra.mxu1 %v3761_v56  ;;  %v3772_v56 = vld [vmem:[#allocation14 + $0x168] ss:$12 sps:$4 sm:$0xff]  }
 0x6ea   :  { %3502 = vmatprep.subr.bf16.mxu1 %v4278_v0 }
 0x6ed   :  { %3503 = vmatpush3.bf16.msra.mxu1 %v3762_v23  ;;  %v3774_v23 = vld [vmem:[#allocation14 + $0x16c] ss:$12 sps:$4 sm:$0xff]  }
 0x6ee   :  { %3504 = vmatprep.subr.bf16.mxu1 %v4278_v0 }
 0x6f1   :  { %3505 = vmatpush3.bf16.msra.mxu1 %v3763_v39  ;;  %v3775_v39 = vld [vmem:[#allocation14 + $0x170] ss:$12 sps:$4 sm:$0xff]  }
 0x6f2   :  { %1891 = vmatprep.subr.bf16.mxu1 %v3774_v23 }
 0x763   :  { %v1403_v28 = vpop.xlane.xlu0 %1402 }
 0x764   :  { %v1407_v37 = vmul.f32 0.0078125, %v1403_v28 }
 0x766   :  { %v1409_v42 = vsub.f32 %v1398_v31, %v1407_v37  ;;  %v3131_v31 = vld [vmem:[%s5041_s14] ss:$0 sm:$0xff] }
 0x767   :  { %v1405_v17 = vpop.xlane.xlu1 %1404 }
 0x768   :  { %v1408_v45 = vmul.f32 0.0078125, %v1405_v17  ;;  %v1411_v49 = vmul.f32 %v1409_v42, %v1409_v42  ;;  %v3140_v17 = vld [vmem:[%s5043_s16] ss:$0 sm:$0xff] }
 0x76a   :  { %v1410_v50 = vsub.f32 %v1399_v36, %v1408_v45  ;;  %1413 = vadd.xlane.f32.xlu0 %v1411_v49 }
 0x76c   :  { %v1412_v1 = vmul.f32 %v1410_v50, %v1410_v50 }
 0x76e   :  { %1415 = vadd.xlane.f32.xlu1 %v1412_v1 }
 0x7f3   :  { %v1414_v10 = vpop.xlane.xlu0 %1413 }
 0x7f4   :  { %v1417_v43 = vmul.f32 0.0078125, %v1414_v10 }
 0x7f6   :  { %v1419_v14 = vadd.f32 1e-12, %v1417_v43 }
 0x7f7   :  { %v1416_v20 = vpop.xlane.xlu1 %1415 }
 0x7f8   :  { %3904 = vrsqrt.f32 %v1419_v14  ;;  %v1418_v41 = vmul.f32 0.0078125, %v1416_v20  ;;  %v3778_v20 = vld [vmem:[#allocation14 + $0x154] ss:$12 sps:$4 sm:$0xff]  }
 0x7fa   :  { %v1420_v44 = vadd.f32 1e-12, %v1418_v41  ;;  %v3776_v41 = vld [vmem:[#allocation14 + $0x150] ss:$12 sps:$4 sm:$0xff]  }
 0x7fc   :  { %3906 = vrsqrt.f32 %v1420_v44  ;;  %v3779_v44 = vld [vmem:[#allocation14 + $0x158] ss:$12 sps:$4 sm:$0xff]  }
 0x805   :  { %v3905_v52 = vpop.eup %3904 }
 0x806   :  { %v1423_v15 = vmul.f32 %v3905_v52, %v1409_v42  ;;  %v3782_v52 = vld [vmem:[#allocation14 + $0x13c] ss:$12 sps:$4 sm:$0xff]  }
 0x808   :  { %v1431_v3 = vmul.f32 %v3129_v48, %v1423_v15  ;;  %v3780_v15 = vld [vmem:[#allocation14 + $0x138] ss:$12 sps:$4 sm:$0xff]  }
 0x809   :  { %v3907_v55 = vpop.eup %3906 }
 0x80a   :  { %v1424_v18 = vmul.f32 %v3907_v55, %v1410_v50  ;;  %v1439_v22 = vadd.f32 %v3130_v11, %v1431_v3  ;;  %v3784_v55 = vld [vmem:[#allocation14 + $0x120] ss:$12 sps:$4 sm:$0xff]   ;;  %v3787_v3 = vld [vmem:[#allocation14 + $0x128] ss:$12 sps:$4 sm:$0xff]  }
 0x80c   :  { %v1432_v21 = vmul.f32 %v3129_v48, %v1424_v18  ;;  %v3783_v48 = vld [vmem:[#allocation14 + $0x140] ss:$12 sps:$4 sm:$0xff]   ;;  %v3786_v18 = vld [vmem:[#allocation14 + $0x124] ss:$12 sps:$4 sm:$0xff]  }
 0x80e   :  { %v1440_v24 = vadd.f32 %v3130_v11, %v1432_v21  ;;  %v3790_v11 = vld [vmem:[#allocation14 + $0x10c] ss:$12 sps:$4 sm:$0xff]   ;;  %v3788_v21 = vld [vmem:[#allocation14 + $0x108] ss:$12 sps:$4 sm:$0xff]  }
 0x810   :  { %v1457_v26 = vpack.c.bf16 %v1440_v24, %v1439_v22 }
 0x812   :  { %3507 = vmatmul.mubr.bf16.vlgmr.msra.gmra.mxu1 %v1457_v26  ;;  %v3792_v26 = vld [vmem:[#allocation14 + $0xf0] ss:$12 sps:$4 sm:$0xff]  }
 0x813   :  { %1923 = vmatprep.mubr.bf16.mxu1 %v4280_v54  ;;  %1892 = vmatpush1.bf16.msra.mxu1 %v3772_v56 }
 0x814   :  { %1893 = vmatprep.subr.bf16.mxu1 %v3778_v20 }
 0x817   :  { %1894 = vmatpush1.bf16.msra.mxu1 %v3776_v41 }
 0x818   :  { %1895 = vmatprep.subr.bf16.mxu1 %v3782_v52 }
 0x81b   :  { %1896 = vmatpush1.bf16.msra.mxu1 %v3780_v15 }
 0x81c   :  { %1897 = vmatprep.subr.bf16.mxu1 %v3786_v18 }
 0x81f   :  { %1898 = vmatpush1.bf16.msra.mxu1 %v3784_v55 }
 0x820   :  { %1899 = vmatprep.subr.bf16.mxu1 %v3790_v11 }
 0x823   :  { %1900 = vmatpush1.bf16.msra.mxu1 %v3788_v21 }
 0x8d2   :  { %v1547_v33 = vpop.f32.mrf.mxu1 }
 0x8d3   :  { %v1548_v60 = vadd.f32 %v3131_v31, %v1547_v33  ;;  %v3802_v33 = vld [vmem:[#allocation14 + $0xc4] ss:$12 sps:$4 sm:$0xff]  }
 0x8d4   :  { %v3508_v4 = vpop.f32.mrf.mxu1 }
 0x8d5   :  { %v1554_v28 = vmax.f32 %v1548_v60, 0.0  ;;  %v3800_v4 = vld [vmem:[#allocation14 + $0xc0] ss:$12 sps:$4 sm:$0xff]   ;;  %v3803_v60 = vld [vmem:[#allocation14 + $0xc8] ss:$12 sps:$4 sm:$0xff]  }
 0x8d6   :  { %v1550_v54 = vpop.f32.mrf.mxu1 }
 0x8d7   :  { %v1551_v36 = vadd.f32 %v3131_v31, %v1550_v54  ;;  %v3799_v31 = vld [vmem:[#allocation14 + $0xe0] ss:$12 sps:$4 sm:$0xff]  }
 0x8d8   :  { %v3509_v63 = vpop.f32.mrf.mxu1 }
 0x8d9   :  { %v1555_v37 = vmax.f32 %v1551_v36, 0.0 }
 0x8db   :  { %v1572_v42 = vpack.c.bf16 %v1555_v37, %v1554_v28 }
 0x8dd   :  { %3527 = vmatmul.mubr.bf16.vlgmr.msra.gmra.mxu0 %v1572_v42 }
 0x8de   :  { %3546 = vmatprep.mubr.msk.bf16.mxu0 %vm4279_vm0, %v4278_v0  ;;  %3531 = vmatpush3.bf16.msra.mxu0 %v3775_v39  ;;  %v3151_v39 = vld [vmem:[%s5035_s8 + $0x3] sm:$0x7] }
 0x8df   :  { %3532 = vmatprep.subr.bf16.mxu0 %v4278_v0 }
 0x8e2   :  { %3533 = vmatpush3.bf16.msra.mxu0 %v3779_v44 }
 0x8e3   :  { %3534 = vmatprep.subr.bf16.mxu0 %v4278_v0 }
 0x8e6   :  { %3535 = vmatpush3.bf16.msra.mxu0 %v3783_v48 }
 0x8e7   :  { %3536 = vmatprep.subr.bf16.mxu0 %v4278_v0 }
 0x8ea   :  { %3537 = vmatpush3.bf16.msra.mxu0 %v3787_v3 }
 0x8eb   :  { %3538 = vmatprep.subr.bf16.mxu0 %v4278_v0 }
 0x99d   :  { %v1662_v45 = vpop.f32.mrf.mxu0 }
 0x99e   :  { %v1663_v49 = vadd.f32 %v3140_v17, %v1662_v45 }
 0x99f   :  { %v3528_v50 = vpop.f32.mrf.mxu0 }
 0x9a0   :  { %v1669_v1 = vadd.f32 %v1663_v49, %v1439_v22  ;;  %v3791_v22 = vld [vmem:[#allocation14 + $0x110] ss:$12 sps:$4 sm:$0xff]  }
 0x9a1   :  { %v1665_v51 = vpop.f32.mrf.mxu0  ;;  %3539 = vmatpush3.bf16.msra.mxu0 %v3791_v22  ;;  %v3149_v49 = vld [vmem:[%s5044_s17] ss:$0 sm:$0xff] }
 0x9a2   :  { %v1666_v2 = vadd.f32 %v3140_v17, %v1665_v51  ;;  %1673 = vadd.xlane.f32.xlu0 %v1669_v1  ;;  %3540 = vmatprep.subr.bf16.mxu0 %v4278_v0 }
 0x9a3   :  { %v3529_v58 = vpop.f32.mrf.mxu0 }
 0x9a4   :  { %v1670_v35 = vadd.f32 %v1666_v2, %v1440_v24  ;;  %v3794_v24 = vld [vmem:[#allocation14 + $0xf4] ss:$12 sps:$4 sm:$0xff]   ;;  %v3150_v2 = vld [vmem:[%s5045_s18] ss:$0 sm:$0xff] }
 0x9a5   :  { %1901 = vmatprep.subr.bf16.mxu1 %v3794_v24  ;;  %3541 = vmatpush3.bf16.msra.mxu0 %v3795_v27 }
 0x9a6   :  { %1675 = vadd.xlane.f32.xlu1 %v1670_v35  ;;  %1902 = vmatpush1.bf16.msra.mxu1 %v3792_v26 }
 0x9a7   :  { %1903 = vmatprep.subr.bf16.mxu1 %v3798_v16  ;;  %3542 = vmatprep.subr.bf16.mxu0 %v4278_v0 }
 0x9a9   :  { %3543 = vmatpush3.bf16.msra.mxu0 %v3799_v31 }
 0x9aa   :  { %1904 = vmatpush1.bf16.msra.mxu1 %v3796_v30  ;;  %3544 = vmatprep.subr.bf16.mxu0 %v4278_v0 }
 0x9ab   :  { %1905 = vmatprep.subr.bf16.mxu1 %v3802_v33 }
 0x9ad   :  { %3545 = vmatpush3.bf16.msra.mxu0 %v3803_v60 }
 0x9ae   :  { %1906 = vmatpush1.bf16.msra.mxu1 %v3800_v4 }
 0xa2b   :  { %v1674_v19 = vpop.xlane.xlu0 %1673 }
 0xa2c   :  { %v1677_v57 = vmul.f32 0.0078125, %v1674_v19  ;;  %v1751_v19 = vrot.slane %v3151_v39, %v508_v6 }
 0xa2e   :  { %v4758_v59 = vsub.f32 %v1669_v1, %v1677_v57  ;;  %v1759_v57 = vrot.slane %v3151_v39, %v516_v8 }
 0xa2f   :  { %v1676_v61 = vpop.xlane.xlu1 %1675 }
 0xa30   :  { %v1678_v7 = vmul.f32 0.0078125, %v1676_v61  ;;  %v1681_v10 = vmul.f32 %v4758_v59, %v4758_v59 }
 0xa32   :  { %v4762_v43 = vsub.f32 %v1670_v35, %v1678_v7  ;;  %1683 = vadd.xlane.f32.xlu0 %v1681_v10 }
 0xa34   :  { %v1682_v14 = vmul.f32 %v4762_v43, %v4762_v43 }
 0xa36   :  { %1685 = vadd.xlane.f32.xlu1 %v1682_v14 }
 0xabb   :  { %v1684_v54 = vpop.xlane.xlu0 %1683 }
 0xabc   :  { %v1687_v36 = vmul.f32 0.0078125, %v1684_v54 }
 0xabe   :  { %v1689_v63 = vadd.f32 1e-12, %v1687_v36 }
 0xabf   :  { %v1686_v28 = vpop.xlane.xlu1 %1685 }
 0xac0   :  { %3908 = vrsqrt.f32 %v1689_v63  ;;  %v1688_v37 = vmul.f32 0.0078125, %v1686_v28 }
 0xac2   :  { %v1690_v42 = vadd.f32 1e-12, %v1688_v37 }
 0xac4   :  { %3910 = vrsqrt.f32 %v1690_v42 }
 0xacd   :  { %v3909_v17 = vpop.eup %3908 }
 0xace   :  { %v1693_v45 = vmul.f32 %v3909_v17, %v4758_v59  ;;  %v1755_v59 = vrot.slane %v3151_v39, %v512_v9 }
 0xad0   :  { %v1701_v51 = vmul.f32 %v3149_v49, %v1693_v45 }
 0xad1   :  { %v3911_v50 = vpop.eup %3910 }
 0xad2   :  { %v1694_v1 = vmul.f32 %v3911_v50, %v4762_v43  ;;  %v4780_v35 = vadd.f32 %v3150_v2, %v1701_v51 }
 0xad4   :  { %v1702_v58 = vmul.f32 %v3149_v49, %v1694_v1 }
 0xad6   :  { %v4782_v56 = vadd.f32 %v3150_v2, %v1702_v58 }
 0xad8   :  { %v1744_v23 = vpack.c.bf16 %v4782_v56, %v4780_v35 }
 0xada   :  { %1924 = vmatmul.mubr.bf16.vlgmr.msra.gmra.mxu1 %v1744_v23  ;;  %3547 = vmatmul.mubr.bf16.vlgmr.msra.gmra.mxu0 %v1744_v23 }
 0xb9a   :  { %v1925_v61 = vpop.f32.mrf.mxu1  ;;  %v1968_v7 = vpop.f32.mrf.mxu0 }
 0xb9b   :  { %v1926_v10 = vadd.f32 %v1925_v61, %v1751_v19  ;;  %v1969_v43 = vadd.f32 %v1968_v7, %v1759_v57 }
 0xb9c   :  { %v1927_v14 = vpop.f32.mrf.mxu1  ;;  %v3548_v20 = vpop.f32.mrf.mxu0 }
 0xb9d   :  { %v1979_v41 = vpack.c.bf16 %v1926_v10, %v1926_v10  ;;  %v1977_v44 = vpack.c.bf16 %v1969_v43, %v1969_v43  ;;  %v1928_v52 = vadd.f32 %v1927_v14, %v1755_v59 }
 0xb9e   :  { %v1929_v15 = vpop.f32.mrf.mxu1  ;;  %v1971_v48 = vpop.f32.mrf.mxu0 }
 0xb9f   :  { %v2316_v55 = vsel %vm1098_vm1, %v1977_v44, 0  ;;  %v1975_v6 = vpack.c.bf16 %v1928_v52, %v1928_v52  ;;  %3672 = vmatprep.subr.msk.bf16.mxu0 %vm1098_vm1, %v1977_v44  ;;  %v1981_v5 = vmul.bf16 %v1979_v41, %v4506_v13  ;;  %v1972_v11 = vadd.f32 %v1971_v48, %v1759_v57 }
 0xba0   :  { %v1931_v8 = vpop.f32.mrf.mxu1  ;;  %v3549_v18 = vpop.f32.mrf.mxu0  ;;  %3571 = vmatpush3.bf16.msra.mxu0 %v2316_v55  ;;  %v1982_v21 = vmul.bf16 %v1979_v41, %v4509_v29  ;;  %v1930_v22 = vadd.f32 %v1929_v15, %v1751_v19  ;;  %v1983_v24 = vmul.bf16 %v1979_v41, %v4511_v34  ;;  %v1984_v16 = vmul.bf16 %v1979_v41, %v4518_v40 }
 0xba1   :  { %v1932_v9 = vadd.f32 %v1931_v8, %v1755_v59  ;;  %3550 = vmatprep.subr.bf16.mxu1 %v1975_v6  ;;  %3590 = vmatprep.subr.bf16.mxu0 %v4278_v0  ;;  %v1978_v26 = vpack.c.bf16 %v1972_v11, %v1972_v11 }
 0xba2   :  { %3552 = vmatprep.mubr.bf16.mxu1 %v1981_v5  ;;  %3551 = vmatpush3.bf16.xpose.msra.mxu1 %v1975_v6  ;;  %v1980_v27 = vpack.c.bf16 %v1930_v22, %v1930_v22 }
 0xba3   :  { %v1976_v3 = vpack.c.bf16 %v1932_v9, %v1932_v9  ;;  %v2396_v4 = vsel %vm1098_vm1, %v1978_v26, 0 }
 0xba4   :  { %v1985_v30 = vmul.bf16 %v1980_v27, %v4506_v13  ;;  %v1986_v31 = vmul.bf16 %v1980_v27, %v4509_v29  ;;  %v1987_v33 = vmul.bf16 %v1980_v27, %v4511_v34  ;;  %v1988_v60 = vmul.bf16 %v1980_v27, %v4518_v40 }
 0xba5   :  { %3560 = vmatprep.subr.bf16.mxu1 %v1976_v3 }
 0xba9   :  { %3553 = vmatmul.mubr.bf16.vlgmr.msra.gmra.mxu1 %v1982_v21 }
 0xbaa   :  { %3556 = vmatprep.mubr.bf16.mxu1 %v1983_v24  ;;  %3561 = vmatpush3.bf16.xpose.msra.mxu1 %v1976_v3 }
 0xbab   :  { %3673 = vmatprep.subr.msk.bf16.mxu1 %vm1098_vm1, %v1978_v26 }
 0xbb1   :  { %3557 = vmatmul.mubr.bf16.gmra.mxu1 %v1984_v16 }
 0xbb2   :  { %3562 = vmatprep.mubr.bf16.mxu1 %v1985_v30 }
 0xbb9   :  { %3563 = vmatmul.mubr.bf16.vlgmr.msra.gmra.mxu1 %v1986_v31 }
 0xbba   :  { %3581 = vmatpush3.bf16.msra.mxu1 %v2396_v4  ;;  %3566 = vmatprep.mubr.bf16.mxu1 %v1987_v33 }
 0xbbb   :  { %3610 = vmatprep.subr.bf16.mxu1 %v4278_v0 }
 0xbc1   :  { %3567 = vmatmul.mubr.bf16.gmra.mxu1 %v1988_v60 }
 0xc69   :  { %v3554_v54 = vpop.f32.mrf.mxu1 }
 0xc6a   :  { %v2125_v36 = vsel %vm901_vm2, %v3554_v54, -inf }
 0xc6b   :  { %2126 = vmax.xlane.f32.xlu0 %v2125_v36  ;;  %v2023_v13 = vpop.f32.mrf.mxu1 }
 0xc6c   :  { %v2119_v29 = vsel %vm901_vm2, %v2023_v13, -inf }
 0xc6d   :  { %v3555_v63 = vpop.f32.mrf.mxu1 }
 0xc6e   :  { %v2128_v34 = vsel %vm901_vm2, %v3555_v63, -inf }
 0xc6f   :  { %2120 = vmax.xlane.f32.xlu0 %v2119_v29  ;;  %2129 = vmax.xlane.f32.xlu1 %v2128_v34  ;;  %v2026_v28 = vpop.f32.mrf.mxu1 }
 0xc70   :  { %v2122_v42 = vsel %vm901_vm2, %v2026_v28, -inf }
 0xc71   :  { %v4812_v37 = vpop.f32.mrf.mxu1 }
 0xc72   :  { %v2137_v59 = vsel %vm901_vm2, %v4812_v37, -inf }
 0xc73   :  { %2123 = vmax.xlane.f32.xlu1 %v2122_v42  ;;  %v2039_v40 = vpop.f32.mrf.mxu1 }
 0xc74   :  { %v2131_v17 = vsel %vm901_vm2, %v2039_v40, -inf }
 0xc75   :  { %2132 = vmax.xlane.f32.xlu0 %v2131_v17  ;;  %v4816_v45 = vpop.f32.mrf.mxu1 }
 0xc76   :  { %v2140_v43 = vsel %vm901_vm2, %v4816_v45, -inf }
 0xc77   :  { %v2042_v49 = vpop.f32.mrf.mxu1 }
 0xc78   :  { %v2134_v50 = vsel %vm901_vm2, %v2042_v49, -inf }
 0xc79   :  { %2135 = vmax.xlane.f32.xlu1 %v2134_v50  ;;  %v3564_v1 = vpop.f32.mrf.mxu1 }
 0xc7a   :  { %v2149_v51 = vsel %vm901_vm2, %v3564_v1, -inf }
 0xc7b   :  { %2150 = vmax.xlane.f32.xlu0 %v2149_v51  ;;  %v2088_v2 = vpop.f32.mrf.mxu1 }
 0xc7c   :  { %v2143_v23 = vsel %vm901_vm2, %v2088_v2, -inf }
 0xc7d   :  { %v3565_v58 = vpop.f32.mrf.mxu1 }
 0xc7e   :  { %v2152_v39 = vsel %vm901_vm2, %v3565_v58, -inf }
 0xc7f   :  { %2144 = vmax.xlane.f32.xlu0 %v2143_v23  ;;  %2153 = vmax.xlane.f32.xlu1 %v2152_v39  ;;  %v4822_v19 = vpop.f32.mrf.mxu1 }
 0xc80   :  { %v2146_v61 = vsel %vm901_vm2, %v4822_v19, -inf }
 0xc81   :  { %v4824_v57 = vpop.f32.mrf.mxu1 }
 0xc82   :  { %v2161_v41 = vsel %vm901_vm2, %v4824_v57, -inf }
 0xc83   :  { %2138 = vmax.xlane.f32.xlu0 %v2137_v59  ;;  %2147 = vmax.xlane.f32.xlu1 %v2146_v61  ;;  %v4830_v7 = vpop.f32.mrf.mxu1 }
 0xc84   :  { %v2155_v14 = vsel %vm901_vm2, %v4830_v7, -inf }
 0xc85   :  { %v4832_v10 = vpop.f32.mrf.mxu1 }
 0xc86   :  { %v2164_v52 = vsel %vm901_vm2, %v4832_v10, -inf }
 0xc87   :  { %2141 = vmax.xlane.f32.xlu1 %v2140_v43  ;;  %2156 = vmax.xlane.f32.xlu0 %v2155_v14  ;;  %v4838_v20 = vpop.f32.mrf.mxu1 }
 0xc88   :  { %v2158_v44 = vsel %vm901_vm2, %v4838_v20, -inf }
 0xc8b   :  { %2162 = vmax.xlane.f32.xlu0 %v2161_v41  ;;  %2159 = vmax.xlane.f32.xlu1 %v2158_v44 }
 0xc8f   :  { %2165 = vmax.xlane.f32.xlu1 %v2164_v52 }
 0xcf4   :  { %v2127_v15 = vpop.xlane.xlu0 %2126 }
 0xcf5   :  { %v2169_v48 = vsub.f32 %v3554_v54, %v2127_v15 }
 0xcf7   :  { %v2187_v55 = vmul.f32 1.442695, %v2169_v48 }
 0xcf8   :  { %v2121_v6 = vpop.xlane.xlu0 %2120  ;;  %v2130_v8 = vpop.xlane.xlu1 %2129 }
 0xcf9   :  { %3912 = vpow2.f32 %v2187_v55  ;;  %v2167_v18 = vsub.f32 %v2023_v13, %v2121_v6  ;;  %v2170_v5 = vsub.f32 %v3555_v63, %v2130_v8 }
 0xcfb   :  { %v2183_v9 = vmul.f32 1.442695, %v2167_v18  ;;  %v2189_v3 = vmul.f32 1.442695, %v2170_v5 }
 0xcfc   :  { %v2124_v11 = vpop.xlane.xlu1 %2123 }
 0xcfd   :  { %3914 = vpow2.f32 %v2183_v9  ;;  %v2168_v21 = vsub.f32 %v2026_v28, %v2124_v11 }
 0xcfe   :  { %3916 = vpow2.f32 %v2189_v3  ;;  %v2133_v22 = vpop.xlane.xlu0 %2132 }
 0xcff   :  { %v2185_v24 = vmul.f32 1.442695, %v2168_v21  ;;  %v2171_v26 = vsub.f32 %v2039_v40, %v2133_v22 }
 0xd01   :  { %3918 = vpow2.f32 %v2185_v24  ;;  %v2191_v27 = vmul.f32 1.442695, %v2171_v26 }
 0xd02   :  { %v2136_v16 = vpop.xlane.xlu1 %2135 }
 0xd03   :  { %3920 = vpow2.f32 %v2191_v27  ;;  %v2172_v30 = vsub.f32 %v2042_v49, %v2136_v16 }
 0xd04   :  { %v2151_v31 = vpop.xlane.xlu0 %2150 }
 0xd05   :  { %v2193_v33 = vmul.f32 1.442695, %v2172_v30  ;;  %v2177_v4 = vsub.f32 %v3564_v1, %v2151_v31 }
 0xd06   :  { %v4846_v60 = vpop.eup %3912 }
 0xd07   :  { %3922 = vpow2.f32 %v2193_v33  ;;  %v2203_v54 = vmul.f32 1.442695, %v2177_v4  ;;  %v2221_v36 = vsel %vm901_vm2, %v4846_v60, 0.0 }
 0xd08   :  { %v2145_v13 = vpop.xlane.xlu0 %2144  ;;  %v2154_v63 = vpop.xlane.xlu1 %2153  ;;  %2222 = vadd.xlane.f32.xlu0 %v2221_v36 }
 0xd09   :  { %3924 = vpow2.f32 %v2203_v54  ;;  %v2175_v29 = vsub.f32 %v2088_v2, %v2145_v13  ;;  %v2178_v34 = vsub.f32 %v3565_v58, %v2154_v63 }
 0xd0a   :  { %v4850_v28 = vpop.eup %3914 }
 0xd0b   :  { %v4852_v42 = vpop.eup %3916  ;;  %v2199_v40 = vmul.f32 1.442695, %v2175_v29  ;;  %v2205_v17 = vmul.f32 1.442695, %v2178_v34  ;;  %v2215_v49 = vsel %vm901_vm2, %v4850_v28, 0.0 }
 0xd0c   :  { %v2139_v50 = vpop.xlane.xlu0 %2138  ;;  %v2148_v1 = vpop.xlane.xlu1 %2147  ;;  %2216 = vadd.xlane.f32.xlu0 %v2215_v49  ;;  %v2224_v51 = vsel %vm901_vm2, %v4852_v42, 0.0 }
 0xd0d   :  { %3926 = vpow2.f32 %v2199_v40  ;;  %v2173_v23 = vsub.f32 %v4812_v37, %v2139_v50  ;;  %v2176_v2 = vsub.f32 %v4822_v19, %v2148_v1  ;;  %2225 = vadd.xlane.f32.xlu1 %v2224_v51 }
 0xd0e   :  { %v4860_v58 = vpop.eup %3918  ;;  %3928 = vpow2.f32 %v2205_v17 }
 0xd0f   :  { %v2195_v39 = vmul.f32 1.442695, %v2173_v23  ;;  %v2201_v59 = vmul.f32 1.442695, %v2176_v2  ;;  %v2218_v61 = vsel %vm901_vm2, %v4860_v58, 0.0 }
 0xd10   :  { %v4864_v43 = vpop.eup %3920  ;;  %v2142_v14 = vpop.xlane.xlu1 %2141 }
 0xd11   :  { %v2157_v41 = vpop.xlane.xlu0 %2156  ;;  %3930 = vpow2.f32 %v2195_v39  ;;  %v2174_v44 = vsub.f32 %v4816_v45, %v2142_v14  ;;  %2219 = vadd.xlane.f32.xlu1 %v2218_v61  ;;  %v2227_v19 = vsel %vm901_vm2, %v4864_v43, 0.0 }
 0xd12   :  { %v2179_v37 = vsub.f32 %v4830_v7, %v2157_v41  ;;  %3932 = vpow2.f32 %v2201_v59  ;;  %2228 = vadd.xlane.f32.xlu0 %v2227_v19 }
 0xd13   :  { %v2197_v52 = vmul.f32 1.442695, %v2174_v44 }
 0xd14   :  { %v2207_v15 = vmul.f32 1.442695, %v2179_v37  ;;  %v4870_v48 = vpop.eup %3922  ;;  %v2160_v6 = vpop.xlane.xlu1 %2159 }
 0xd15   :  { %v2163_v55 = vpop.xlane.xlu0 %2162  ;;  %3934 = vpow2.f32 %v2197_v52  ;;  %v2180_v18 = vsub.f32 %v4838_v20, %v2160_v6  ;;  %v2230_v45 = vsel %vm901_vm2, %v4870_v48, 0.0 }
 0xd16   :  { %v2181_v8 = vsub.f32 %v4824_v57, %v2163_v55  ;;  %v4876_v7 = vpop.eup %3924  ;;  %3936 = vpow2.f32 %v2207_v15  ;;  %2231 = vadd.xlane.f32.xlu1 %v2230_v45 }
 0xd17   :  { %v2209_v9 = vmul.f32 1.442695, %v2180_v18  ;;  %v2245_v3 = vsel %vm901_vm2, %v4876_v7, 0.0 }
 0xd18   :  { %v2211_v5 = vmul.f32 1.442695, %v2181_v8  ;;  %2246 = vadd.xlane.f32.xlu0 %v2245_v3  ;;  %v2166_v11 = vpop.xlane.xlu1 %2165 }
 0xd19   :  { %v2182_v21 = vsub.f32 %v4832_v10, %v2166_v11 }
 0xd1a   :  { %3938 = vpow2.f32 %v2211_v5  ;;  %v4881_v57 = vpop.eup %3926 }
 0xd1b   :  { %3940 = vpow2.f32 %v2209_v9  ;;  %v4883_v20 = vpop.eup %3928  ;;  %v2213_v22 = vmul.f32 1.442695, %v2182_v21  ;;  %v2239_v24 = vsel %vm901_vm2, %v4881_v57, 0.0 }
 0xd1c   :  { %2240 = vadd.xlane.f32.xlu0 %v2239_v24  ;;  %v2248_v26 = vsel %vm901_vm2, %v4883_v20, 0.0 }
 0xd1d   :  { %3942 = vpow2.f32 %v2213_v22  ;;  %2249 = vadd.xlane.f32.xlu1 %v2248_v26 }
 0xd1e   :  { %v4889_v27 = vpop.eup %3930 }
 0xd1f   :  { %v4891_v16 = vpop.eup %3932  ;;  %v2233_v10 = vsel %vm901_vm2, %v4889_v27, 0.0 }
 0xd20   :  { %2234 = vadd.xlane.f32.xlu0 %v2233_v10  ;;  %v2242_v30 = vsel %vm901_vm2, %v4891_v16, 0.0 }
 0xd21   :  { %2243 = vadd.xlane.f32.xlu1 %v2242_v30 }
 0xd22   :  { %v4897_v31 = vpop.eup %3934 }
 0xd23   :  { %v4899_v33 = vpop.eup %3936  ;;  %v2236_v4 = vsel %vm901_vm2, %v4897_v31, 0.0 }
 0xd24   :  { %v2251_v54 = vsel %vm901_vm2, %v4899_v33, 0.0 }
 0xd25   :  { %2252 = vadd.xlane.f32.xlu0 %v2251_v54  ;;  %2237 = vadd.xlane.f32.xlu1 %v2236_v4 }
 0xd27   :  { %v4905_v36 = vpop.eup %3938 }
 0xd28   :  { %v4907_v13 = vpop.eup %3940  ;;  %v2257_v63 = vsel %vm901_vm2, %v4905_v36, 0.0 }
 0xd29   :  { %v2254_v29 = vsel %vm901_vm2, %v4907_v13, 0.0  ;;  %2258 = vadd.xlane.f32.xlu0 %v2257_v63 }
 0xd2a   :  { %2255 = vadd.xlane.f32.xlu1 %v2254_v29  ;;  %v4913_v34 = vpop.eup %3942 }
 0xd2b   :  { %v2260_v40 = vsel %vm901_vm2, %v4913_v34, 0.0 }
 0xd2e   :  { %2261 = vadd.xlane.f32.xlu1 %v2260_v40 }
 0xd91   :  { %v2223_v17 = vpop.xlane.xlu0 %2222 }
 0xd95   :  { %v2217_v49 = vpop.xlane.xlu0 %2216 }
 0xd96   :  { %v2226_v50 = vpop.xlane.xlu1 %2225 }
 0xd97   :  { %3944 = vrcp.f32 %v2226_v50 }
 0xd98   :  { %3946 = vrcp.f32 %v2217_v49 }
 0xd99   :  { %3948 = vrcp.f32 %v2223_v17 }
 0xd9a   :  { %v2220_v1 = vpop.xlane.xlu1 %2219 }
 0xd9b   :  { %3950 = vrcp.f32 %v2220_v1  ;;  %v2229_v51 = vpop.xlane.xlu0 %2228 }
 0xd9c   :  { %3952 = vrcp.f32 %v2229_v51 }
 0xd9f   :  { %v2232_v23 = vpop.xlane.xlu1 %2231 }
 0xda0   :  { %3954 = vrcp.f32 %v2232_v23 }
 0xda1   :  { %v2247_v2 = vpop.xlane.xlu0 %2246 }
 0xda4   :  { %v3945_v39 = vpop.eup %3944 }
 0xda5   :  { %v2241_v59 = vpop.xlane.xlu0 %2240  ;;  %v3947_v61 = vpop.eup %3946  ;;  %v2282_v37 = vmul.f32 %v3945_v39, %v4852_v42  ;;  %v3806_v39 = vld [vmem:[#allocation16 + $0x68] sm:$0xff]  }
 0xda6   :  { %v2250_v14 = vpop.xlane.xlu1 %2249  ;;  %v3949_v41 = vpop.eup %3948  ;;  %v2279_v52 = vmul.f32 %v3947_v61, %v4850_v28  ;;  %v3810_v61 = vld [vmem:[#allocation16 + $0x48] sm:$0xff]  }
 0xda7   :  { %3956 = vrcp.f32 %v2250_v14  ;;  %v2281_v6 = vmul.f32 %v3949_v41, %v4846_v60  ;;  %v3811_v14 = vld [vmem:[#allocation16 + $0x40] sm:$0xff]  }
 0xda8   :  { %v3951_v44 = vpop.eup %3950  ;;  %3958 = vrcp.f32 %v2241_v59  ;;  %v3809_v59 = vld [vmem:[#allocation16 + $0x50] sm:$0xff]  }
 0xda9   :  { %v2235_v19 = vpop.xlane.xlu0 %2234  ;;  %v2280_v15 = vmul.f32 %v3951_v44, %v4860_v58  ;;  %3960 = vrcp.f32 %v2247_v2  ;;  %v3953_v8 = vpop.eup %3952  ;;  %v2296_v45 = vpack.c.bf16 %v2282_v37, %v2281_v6 }
 0xdaa   :  { %v2244_v55 = vpop.xlane.xlu1 %2243  ;;  %v2283_v28 = vmul.f32 %v3953_v8, %v4864_v43 }
 0xdab   :  { %3962 = vrcp.f32 %v2244_v55  ;;  %v2295_v18 = vpack.c.bf16 %v2280_v15, %v2279_v52 }
 0xdac   :  { %3964 = vrcp.f32 %v2235_v19 }
 0xdad   :  { %v3955_v5 = vpop.eup %3954  ;;  %3572 = vmatprep.mubr.msk.bf16.mxu0 %vm901_vm2, %v2295_v18 }
 0xdae   :  { %v2253_v9 = vpop.xlane.xlu0 %2252  ;;  %v2238_v42 = vpop.xlane.xlu1 %2237  ;;  %3573 = vmatmul.mubr.msk.bf16.vlgmr.msra.gmra.mxu0 %vm901_vm2, %v2296_v45  ;;  %v2284_v58 = vmul.f32 %v3955_v5, %v4870_v48 }
 0xdaf   :  { %3966 = vrcp.f32 %v2238_v42 }
 0xdb0   :  { %v2297_v3 = vpack.c.bf16 %v2284_v58, %v2283_v28  ;;  %3968 = vrcp.f32 %v2253_v9 }
 0xdb2   :  { %v2259_v60 = vpop.xlane.xlu0 %2258  ;;  %3576 = vmatprep.mubr.msk.bf16.mxu0 %vm901_vm2, %v2297_v3 }
 0xdb3   :  { %v2256_v11 = vpop.xlane.xlu1 %2255 }
 0xdb4   :  { %3970 = vrcp.f32 %v2256_v11  ;;  %v3957_v21 = vpop.eup %3956 }
 0xdb5   :  { %3972 = vrcp.f32 %v2259_v60  ;;  %v3959_v22 = vpop.eup %3958  ;;  %v2290_v30 = vmul.f32 %v3957_v21, %v4883_v20 }
 0xdb6   :  { %v3961_v26 = vpop.eup %3960  ;;  %v2287_v43 = vmul.f32 %v3959_v22, %v4881_v57 }
 0xdb7   :  { %v2262_v24 = vpop.xlane.xlu1 %2261  ;;  %v2289_v4 = vmul.f32 %v3961_v26, %v4876_v7 }
 0xdb8   :  { %3974 = vrcp.f32 %v2262_v24  ;;  %v3963_v10 = vpop.eup %3962 }
 0xdb9   :  { %v2288_v48 = vmul.f32 %v3963_v10, %v4891_v16  ;;  %v3965_v54 = vpop.eup %3964  ;;  %v2300_v29 = vpack.c.bf16 %v2290_v30, %v2289_v4 }
 0xdba   :  { %v2285_v17 = vmul.f32 %v3965_v54, %v4889_v27 }
 0xdbb   :  { %v2299_v63 = vpack.c.bf16 %v2288_v48, %v2287_v43 }
 0xdbc   :  { %v3967_v40 = vpop.eup %3966 }
 0xdbd   :  { %3582 = vmatprep.mubr.msk.bf16.mxu1 %vm901_vm2, %v2299_v63  ;;  %v2286_v49 = vmul.f32 %v3967_v40, %v4897_v31  ;;  %v3969_v50 = vpop.eup %3968 }
 0xdbe   :  { %3583 = vmatmul.mubr.msk.bf16.vlgmr.msra.gmra.mxu1 %vm901_vm2, %v2300_v29  ;;  %v2291_v7 = vmul.f32 %v3969_v50, %v4899_v33  ;;  %v3804_v33 = vld [vmem:[#allocation16 + $0x78] sm:$0xff]  }
 0xdbf   :  { %v2298_v20 = vpack.c.bf16 %v2286_v49, %v2285_v17  ;;  %3591 = vmatpush3.bf16.msra.mxu0 %v3804_v33 }
 0xdc0   :  { %3592 = vmatprep.subr.bf16.mxu0 %v4278_v0 }
 0xdc1   :  { %v3971_v1 = vpop.eup %3970  ;;  %3577 = vmatmul.mubr.msk.bf16.gmra.mxu0 %vm901_vm2, %v2298_v20 }
 0xdc2   :  { %v3973_v57 = vpop.eup %3972  ;;  %v2292_v16 = vmul.f32 %v3971_v1, %v4907_v13  ;;  %3606 = vmatprep.mubr.msk.bf16.mxu0 %vm4279_vm0, %v4278_v0  ;;  %v3805_v13 = vld [vmem:[#allocation16 + $0x70] sm:$0xff]  }
 0xdc3   :  { %v2293_v2 = vmul.f32 %v3973_v57, %v4905_v36  ;;  %3593 = vmatpush3.bf16.msra.mxu0 %v3805_v13  ;;  %v3807_v36 = vld [vmem:[#allocation16 + $0x60] sm:$0xff]  }
 0xdc4   :  { %v2301_v23 = vpack.c.bf16 %v2292_v16, %v2291_v7  ;;  %3594 = vmatprep.subr.bf16.mxu0 %v4278_v0 }
 0xdc5   :  { %v3975_v51 = vpop.eup %3974 }
 0xdc6   :  { %v2294_v27 = vmul.f32 %v3975_v51, %v4913_v34  ;;  %3586 = vmatprep.mubr.msk.bf16.mxu1 %vm901_vm2, %v2301_v23  ;;  %v3808_v34 = vld [vmem:[#allocation16 + $0x58] sm:$0xff]  }
 0xdc7   :  { %3595 = vmatpush3.bf16.msra.mxu0 %v3806_v39 }
 0xdc8   :  { %v2302_v31 = vpack.c.bf16 %v2294_v27, %v2293_v2  ;;  %3596 = vmatprep.subr.bf16.mxu0 %v4278_v0 }
 0xdca   :  { %3587 = vmatmul.mubr.msk.bf16.gmra.mxu1 %vm901_vm2, %v2302_v31 }
 0xdcb   :  { %3626 = vmatprep.mubr.msk.bf16.mxu1 %vm4279_vm0, %v4278_v0  ;;  %3597 = vmatpush3.bf16.msra.mxu0 %v3807_v36  ;;  %v3812_v36 = vld [vmem:[#allocation17 + $0x78] sm:$0xff]  }
 0xdcc   :  { %3598 = vmatprep.subr.bf16.mxu0 %v4278_v0  ;;  %3611 = vmatpush3.bf16.msra.mxu1 %v3812_v36 }
 0xdcd   :  { %3612 = vmatprep.subr.bf16.mxu1 %v4278_v0 }
 0xdcf   :  { %3599 = vmatpush3.bf16.msra.mxu0 %v3808_v34 }
 0xdd0   :  { %3600 = vmatprep.subr.bf16.mxu0 %v4278_v0 }
 0xdd3   :  { %3601 = vmatpush3.bf16.msra.mxu0 %v3809_v59 }
 0xdd4   :  { %3602 = vmatprep.subr.bf16.mxu0 %v4278_v0 }
 0xdd7   :  { %3603 = vmatpush3.bf16.msra.mxu0 %v3810_v61 }
 0xdd8   :  { %3604 = vmatprep.subr.bf16.mxu0 %v4278_v0 }
 0xddb   :  { %3605 = vmatpush3.bf16.msra.mxu0 %v3811_v14 }
 0xddc   :  { %3630 = vmatprep.subr.bf16.mxu0 %v4278_v0 }
 0xe6e   :  { %v3574_v41 = vpop.f32.mrf.mxu0 }
 0xe6f   :  { %v2465_v5 = vmul.f32 %v3574_v41, %v4688_v32 }
 0xe70   :  { %v2352_v44 = vpop.f32.mrf.mxu0 }
 0xe71   :  { %v2463_v55 = vmul.f32 %v2352_v44, %v4684_v12 }
 0xe72   :  { %v3575_v37 = vpop.f32.mrf.mxu0 }
 0xe73   :  { %v2466_v22 = vmul.f32 %v3575_v37, %v4694_v53 }
 0xe74   :  { %v2355_v19 = vpop.f32.mrf.mxu0 }
 0xe75   :  { %v2464_v52 = vmul.f32 %v2355_v19, %v4681_v25  ;;  %v3813_v19 = vld [vmem:[#allocation17 + $0x70] sm:$0xff]  }
 0xe76   :  { %3613 = vmatpush3.bf16.msra.mxu1 %v3813_v19  ;;  %v3832_v19 = vld [vmem:[#allocation20 + $0x18] sm:$0xff]  }
 0xe77   :  { %v2479_v8 = vadd.f32 %v2464_v52, %v2463_v55  ;;  %3614 = vmatprep.subr.bf16.mxu1 %v4278_v0  ;;  %v3815_v52 = vld [vmem:[#allocation17 + $0x60] sm:$0xff]   ;;  %v3817_v55 = vld [vmem:[#allocation17 + $0x50] sm:$0xff]  }
 0xe79   :  { %v2481_v3 = vadd.f32 %v2479_v8, %v2465_v5  ;;  %v3819_v8 = vld [vmem:[#allocation17 + $0x40] sm:$0xff]   ;;  %v3822_v5 = vld [vmem:[#allocation19 + $0x68] sm:$0xff]  }
 0xe7b   :  { %v2483_v48 = vadd.f32 %v2481_v3, %v2466_v22 }
 0xe7e   :  { %v3584_v15 = vpop.f32.mrf.mxu1 }
 0xe7f   :  { %v2473_v11 = vmul.f32 %v3584_v15, %v4688_v32  ;;  %v3816_v15 = vld [vmem:[#allocation17 + $0x58] sm:$0xff]  }
 0xe80   :  { %v2432_v6 = vpop.f32.mrf.mxu1 }
 0xe81   :  { %v3578_v18 = vpop.f32.mrf.mxu0  ;;  %v2471_v28 = vmul.f32 %v2432_v6, %v4684_v12  ;;  %v3818_v6 = vld [vmem:[#allocation17 + $0x48] sm:$0xff]  }
 0xe82   :  { %v3585_v45 = vpop.f32.mrf.mxu1  ;;  %v2469_v17 = vmul.f32 %v3578_v18, %v4709_v62  ;;  %v3820_v18 = vld [vmem:[#allocation19 + $0x78] sm:$0xff]  }
 0xe83   :  { %v2368_v9 = vpop.f32.mrf.mxu0  ;;  %v2474_v43 = vmul.f32 %v3585_v45, %v4694_v53  ;;  %v3821_v45 = vld [vmem:[#allocation19 + $0x70] sm:$0xff]  }
 0xe84   :  { %v2435_v42 = vpop.f32.mrf.mxu1  ;;  %v2467_v24 = vmul.f32 %v2368_v9, %v4698_v38  ;;  %v3823_v9 = vld [vmem:[#allocation19 + $0x60] sm:$0xff]  }
 0xe85   :  { %v2472_v58 = vmul.f32 %v2435_v42, %v4681_v25  ;;  %v3579_v60 = vpop.f32.mrf.mxu0  ;;  %v3824_v42 = vld [vmem:[#allocation19 + $0x58] sm:$0xff]  }
 0xe86   :  { %v2485_v54 = vadd.f32 %v2483_v48, %v2467_v24  ;;  %v2470_v57 = vmul.f32 %v3579_v60, %v4714_v47  ;;  %v3197_v48 = vld [vmem:[%s5039_s12 + $0x1] ss:$0 sm:$0xff] }
 0xe87   :  { %v2480_v21 = vadd.f32 %v2472_v58, %v2471_v28  ;;  %v2371_v26 = vpop.f32.mrf.mxu0 }
 0xe88   :  { %v2468_v4 = vmul.f32 %v2371_v26, %v4701_v46  ;;  %v3196_v26 = vld [vmem:[%s5038_s11 + $0x1] ss:$0 sm:$0xff] }
 0xe89   :  { %v2482_v10 = vadd.f32 %v2480_v21, %v2473_v11 }
 0xe8a   :  { %v3588_v30 = vpop.f32.mrf.mxu1  ;;  %v2487_v32 = vadd.f32 %v2485_v54, %v2468_v4 }
 0xe8b   :  { %v2484_v63 = vadd.f32 %v2482_v10, %v2474_v43  ;;  %v2477_v1 = vmul.f32 %v3588_v30, %v4709_v62 }
 0xe8c   :  { %v2448_v12 = vpop.f32.mrf.mxu1  ;;  %v2489_v20 = vadd.f32 %v2487_v32, %v2469_v17  ;;  %v3827_v32 = vld [vmem:[#allocation19 + $0x40] sm:$0xff]  }
 0xe8d   :  { %v2475_v25 = vmul.f32 %v2448_v12, %v4698_v38 }
 0xe8e   :  { %v3589_v29 = vpop.f32.mrf.mxu1  ;;  %v2491_v51 = vadd.f32 %v2489_v20, %v2470_v57 }
 0xe8f   :  { %v2486_v49 = vadd.f32 %v2484_v63, %v2475_v25  ;;  %v2478_v7 = vmul.f32 %v3589_v29, %v4714_v47  ;;  %v3825_v63 = vld [vmem:[#allocation19 + $0x50] sm:$0xff]   ;;  %v3826_v29 = vld [vmem:[#allocation19 + $0x48] sm:$0xff]  }
 0xe90   :  { %v2451_v40 = vpop.f32.mrf.mxu1 }
 0xe91   :  { %v2476_v50 = vmul.f32 %v2451_v40, %v4701_v46  ;;  %v3185_v46 = vld [vmem:[%s5037_s10 + $0x1] ss:$0 sm:$0xff] }
 0xe92   :  { %v3199_v40 = vld [vmem:[%s5041_s14 + $0x1] ss:$0 sm:$0xff] }
 0xe93   :  { %v2488_v53 = vadd.f32 %v2486_v49, %v2476_v50 }
 0xe95   :  { %v2490_v16 = vadd.f32 %v2488_v53, %v2477_v1 }
 0xe97   :  { %v2492_v38 = vadd.f32 %v2490_v16, %v2478_v7 }
 0xe99   :  { %v2510_v23 = vpack.c.bf16 %v2492_v38, %v2491_v51  ;;  %v3209_v51 = vld [vmem:[%s5043_s16 + $0x1] ss:$0 sm:$0xff] }
 0xe9b   :  { %3607 = vmatmul.mubr.bf16.vlgmr.msra.gmra.mxu0 %v2510_v23 }
 0xe9c   :  { %3646 = vmatprep.mubr.msk.bf16.mxu0 %vm4279_vm0, %v4278_v0  ;;  %3631 = vmatpush3.bf16.msra.mxu0 %v3820_v18 }
 0xe9d   :  { %3632 = vmatprep.subr.bf16.mxu0 %v4278_v0 }
 0xea0   :  { %3633 = vmatpush3.bf16.msra.mxu0 %v3821_v45 }
 0xea1   :  { %3634 = vmatprep.subr.bf16.mxu0 %v4278_v0 }
 0xea4   :  { %3635 = vmatpush3.bf16.msra.mxu0 %v3822_v5 }
 0xea5   :  { %3636 = vmatprep.subr.bf16.mxu0 %v4278_v0 }
 0xea8   :  { %3637 = vmatpush3.bf16.msra.mxu0 %v3823_v9 }
 0xea9   :  { %3638 = vmatprep.subr.bf16.mxu0 %v4278_v0 }
 0xeac   :  { %3639 = vmatpush3.bf16.msra.mxu0 %v3824_v42 }
 0xead   :  { %3640 = vmatprep.subr.bf16.mxu0 %v4278_v0 }
 0xeb0   :  { %3641 = vmatpush3.bf16.msra.mxu0 %v3825_v63 }
 0xeb1   :  { %3642 = vmatprep.subr.bf16.mxu0 %v4278_v0 }
 0xeb4   :  { %3643 = vmatpush3.bf16.msra.mxu0 %v3826_v29 }
 0xeb5   :  { %3644 = vmatprep.subr.bf16.mxu0 %v4278_v0 }
 0xeb8   :  { %3645 = vmatpush3.bf16.msra.mxu0 %v3827_v32 }
 0xf5b   :  { %v2601_v2 = vpop.f32.mrf.mxu0 }
 0xf5c   :  { %v2602_v27 = vadd.f32 %v3185_v46, %v2601_v2 }
 0xf5d   :  { %v3608_v62 = vpop.f32.mrf.mxu0 }
 0xf5e   :  { %v2608_v31 = vadd.f32 %v2602_v27, %v4780_v35 }
 0xf5f   :  { %v2604_v33 = vpop.f32.mrf.mxu0 }
 0xf60   :  { %v2605_v13 = vadd.f32 %v3185_v46, %v2604_v33  ;;  %2614 = vadd.xlane.f32.xlu0 %v2608_v31 }
 0xf61   :  { %v3609_v47 = vpop.f32.mrf.mxu0 }
 0xf62   :  { %v2609_v39 = vadd.f32 %v2605_v13, %v4782_v56  ;;  %v3814_v56 = vld [vmem:[#allocation17 + $0x68] sm:$0xff]   ;;  %v3828_v13 = vld [vmem:[#allocation20 + $0x38] sm:$0xff]  }
 0xf63   :  { %3615 = vmatpush3.bf16.msra.mxu1 %v3814_v56  ;;  %v3833_v56 = vld [vmem:[#allocation20 + $0x10] sm:$0xff]  }
 0xf64   :  { %2616 = vadd.xlane.f32.xlu1 %v2609_v39  ;;  %3616 = vmatprep.subr.bf16.mxu1 %v4278_v0 }
 0xf67   :  { %3617 = vmatpush3.bf16.msra.mxu1 %v3815_v52  ;;  %v3834_v52 = vld [vmem:[#allocation20 + $0x8] sm:$0xff]  }
 0xf68   :  { %3618 = vmatprep.subr.bf16.mxu1 %v4278_v0 }
 0xf6b   :  { %3619 = vmatpush3.bf16.msra.mxu1 %v3816_v15  ;;  %v3835_v15 = vld [vmem:[#allocation20] sm:$0xff]  }
 0xf6c   :  { %3620 = vmatprep.subr.bf16.mxu1 %v4278_v0 }
 0xf6f   :  { %3621 = vmatpush3.bf16.msra.mxu1 %v3817_v55 }
 0xf70   :  { %3622 = vmatprep.subr.bf16.mxu1 %v4278_v0 }
 0xf73   :  { %3623 = vmatpush3.bf16.msra.mxu1 %v3818_v6 }
 0xf74   :  { %3624 = vmatprep.subr.bf16.mxu1 %v4278_v0 }
 0xf77   :  { %3625 = vmatpush3.bf16.msra.mxu1 %v3819_v8 }
 0xf78   :  { %3650 = vmatprep.subr.bf16.mxu1 %v4278_v0 }
 0xfe9   :  { %v2615_v34 = vpop.xlane.xlu0 %2614 }
 0xfea   :  { %v2618_v59 = vmul.f32 0.0078125, %v2615_v34 }
 0xfec   :  { %v2620_v61 = vsub.f32 %v2608_v31, %v2618_v59 }
 0xfed   :  { %v2617_v14 = vpop.xlane.xlu1 %2616 }
 0xfee   :  { %v2619_v41 = vmul.f32 0.0078125, %v2617_v14  ;;  %v2622_v44 = vmul.f32 %v2620_v61, %v2620_v61 }
 0xff0   :  { %v2621_v37 = vsub.f32 %v2609_v39, %v2619_v41  ;;  %2624 = vadd.xlane.f32.xlu0 %v2622_v44  ;;  %v3829_v44 = vld [vmem:[#allocation20 + $0x30] sm:$0xff]  }
 0xff2   :  { %v2623_v35 = vmul.f32 %v2621_v37, %v2621_v37 }
 0xff4   :  { %2626 = vadd.xlane.f32.xlu1 %v2623_v35  ;;  %v3831_v35 = vld [vmem:[#allocation20 + $0x20] sm:$0xff]  }
0x1079   :  { %v2625_v28 = vpop.xlane.xlu0 %2624 }
0x107a   :  { %v2628_v58 = vmul.f32 0.0078125, %v2625_v28  ;;  %v3220_v28 = vld [vmem:[%s5044_s17 + $0x1] ss:$0 sm:$0xff]  ;;  %s4281_s17 = smov [#allocation22]  }
0x107b   :  { %s3048_s22 = sshll.u32 %s4281_s17, 4  ;;  %s3049_s22 = int_to_ptr.vmem [resolvable:$true] %s3048_s22 }
0x107c   :  { %v2630_v3 = vadd.f32 1e-12, %v2628_v58  ;;  %p4229_p5 = scmp.lt.s32.totalorder %s3049_s22, %s3049_s22 }
0x107d   :  { %v2627_v60 = vpop.xlane.xlu1 %2626 }
0x107e   :  { %3976 = vrsqrt.f32 %v2630_v3  ;;  %v2629_v11 = vmul.f32 0.0078125, %v2627_v60 }
0x1080   :  { %v2631_v21 = vadd.f32 1e-12, %v2629_v11 }
0x1082   :  { %3978 = vrsqrt.f32 %v2631_v21 }
0x108b   :  { %v3977_v22 = vpop.eup %3976 }
0x108c   :  { %v2634_v24 = vmul.f32 %v3977_v22, %v2620_v61 }
0x108e   :  { %v2642_v43 = vmul.f32 %v3196_v26, %v2634_v24 }
0x108f   :  { %v3979_v10 = vpop.eup %3978 }
0x1090   :  { %v2635_v30 = vmul.f32 %v3979_v10, %v2621_v37  ;;  %v2650_v12 = vadd.f32 %v3197_v48, %v2642_v43  ;;  %v3830_v37 = vld [vmem:[#allocation20 + $0x28] sm:$0xff]  }
0x1092   :  { %v2643_v4 = vmul.f32 %v3196_v26, %v2635_v30  ;;  %v3222_v26 = vld [vmem:[%s5047_s20] ss:$0 sm:$0xff] }
0x1094   :  { %v2651_v54 = vadd.f32 %v3197_v48, %v2643_v4 }
0x1096   :  { %v2669_v25 = vpack.c.bf16 %v2651_v54, %v2650_v12 }
0x1098   :  { %3627 = vmatmul.mubr.bf16.vlgmr.msra.gmra.mxu1 %v2669_v25 }
0x1099   :  { %3666 = vmatprep.mubr.msk.bf16.mxu1 %vm4279_vm0, %v4278_v0  ;;  %3651 = vmatpush3.bf16.msra.mxu1 %v3828_v13 }
0x109a   :  { %3652 = vmatprep.subr.bf16.mxu1 %v4278_v0 }
0x109d   :  { %3653 = vmatpush3.bf16.msra.mxu1 %v3829_v44 }
0x109e   :  { %3654 = vmatprep.subr.bf16.mxu1 %v4278_v0 }
0x10a1   :  { %3655 = vmatpush3.bf16.msra.mxu1 %v3830_v37 }
0x10a2   :  { %3656 = vmatprep.subr.bf16.mxu1 %v4278_v0 }
0x10a5   :  { %3657 = vmatpush3.bf16.msra.mxu1 %v3831_v35 }
0x10a6   :  { %3658 = vmatprep.subr.bf16.mxu1 %v4278_v0 }
0x10a9   :  { %3659 = vmatpush3.bf16.msra.mxu1 %v3832_v19 }
0x10aa   :  { %3660 = vmatprep.subr.bf16.mxu1 %v4278_v0 }
0x10ad   :  { %3661 = vmatpush3.bf16.msra.mxu1 %v3833_v56 }
0x10ae   :  { %3662 = vmatprep.subr.bf16.mxu1 %v4278_v0 }
0x10b1   :  { %3663 = vmatpush3.bf16.msra.mxu1 %v3834_v52 }
0x10b2   :  { %3664 = vmatprep.subr.bf16.mxu1 %v4278_v0  ;;  %v3221_v0 = vld [vmem:[%s5045_s18 + $0x1] ss:$0 sm:$0xff]  ;;  %s4224_s18 = scalar_lea.vmem %s3049_s22, 256 }
0x10b3   :  { %p4225_p4 = scmp.ne.s32.totalorder %s3049_s22, %s4224_s18  ;;  %p4230_p6 = scmp.lt.s32.totalorder %s4224_s18, %s4224_s18 }
0x10b5   :  { %3665 = vmatpush3.bf16.msra.mxu1 %v3835_v15  ;;  %p4231_p7 = por %p4230_p6, %p4229_p5 }
0x10b7   :  { %p4232_p8 = pnand %p4231_p7, %p4225_p4 }
0x1158   :  { %v2760_v17 = vpop.f32.mrf.mxu1 }
0x1159   :  { %v2761_v50 = vadd.f32 %v3199_v40, %v2760_v17 }
0x115a   :  { %v3628_v49 = vpop.f32.mrf.mxu1 }
0x115b   :  { %v2767_v57 = vmax.f32 %v2761_v50, 0.0 }
0x115c   :  { %v2763_v20 = vpop.f32.mrf.mxu1 }
0x115d   :  { %v2764_v1 = vadd.f32 %v3199_v40, %v2763_v20 }
0x115e   :  { %v3629_v53 = vpop.f32.mrf.mxu1 }
0x115f   :  { %v2768_v7 = vmax.f32 %v2764_v1, 0.0 }
0x1161   :  { %v2786_v16 = vpack.c.bf16 %v2768_v7, %v2767_v57 }
0x1163   :  { %3647 = vmatmul.mubr.bf16.vlgmr.msra.gmra.mxu0 %v2786_v16 }
0x1223   :  { %v2877_v38 = vpop.f32.mrf.mxu0 }
0x1224   :  { %v2878_v23 = vadd.f32 %v3209_v51, %v2877_v38 }
0x1225   :  { %v3648_v46 = vpop.f32.mrf.mxu0 }
0x1226   :  { %v2884_v2 = vadd.f32 %v2878_v23, %v2650_v12 }
0x1227   :  { %v2880_v27 = vpop.f32.mrf.mxu0 }
0x1228   :  { %v2881_v62 = vadd.f32 %v3209_v51, %v2880_v27  ;;  %2890 = vadd.xlane.f32.xlu0 %v2884_v2 }
0x1229   :  { %v3649_v31 = vpop.f32.mrf.mxu0 }
0x122a   :  { %v2885_v33 = vadd.f32 %v2881_v62, %v2651_v54 }
0x122c   :  { %2892 = vadd.xlane.f32.xlu1 %v2885_v33 }
0x12b1   :  { %v2891_v47 = vpop.xlane.xlu0 %2890 }
0x12b2   :  { %v2894_v39 = vmul.f32 0.0078125, %v2891_v47 }
0x12b4   :  { %v2896_v36 = vsub.f32 %v2884_v2, %v2894_v39 }
0x12b5   :  { %v2893_v34 = vpop.xlane.xlu1 %2892 }
0x12b6   :  { %v2895_v59 = vmul.f32 0.0078125, %v2893_v34  ;;  %v2898_v61 = vmul.f32 %v2896_v36, %v2896_v36 }
0x12b8   :  { %v2897_v14 = vsub.f32 %v2885_v33, %v2895_v59  ;;  %2900 = vadd.xlane.f32.xlu0 %v2898_v61 }
0x12ba   :  { %v2899_v41 = vmul.f32 %v2897_v14, %v2897_v14 }
0x12bc   :  { %2902 = vadd.xlane.f32.xlu1 %v2899_v41 }
0x1341   :  { %v2901_v55 = vpop.xlane.xlu0 %2900 }
0x1342   :  { %v2904_v6 = vmul.f32 0.0078125, %v2901_v55 }
0x1344   :  { %v2906_v8 = vadd.f32 1e-12, %v2904_v6 }
0x1345   :  { %v2903_v18 = vpop.xlane.xlu1 %2902 }
0x1346   :  { %3980 = vrsqrt.f32 %v2906_v8  ;;  %v2905_v45 = vmul.f32 0.0078125, %v2903_v18 }
0x1348   :  { %v2907_v5 = vadd.f32 1e-12, %v2905_v45 }
0x134a   :  { %3982 = vrsqrt.f32 %v2907_v5 }
0x1353   :  { %v3981_v9 = vpop.eup %3980 }
0x1354   :  { %v2910_v42 = vmul.f32 %v3981_v9, %v2896_v36 }
0x1356   :  { %v2918_v60 = vmul.f32 %v3220_v28, %v2910_v42 }
0x1357   :  { %v3983_v58 = vpop.eup %3982 }
0x1358   :  { %v2911_v3 = vmul.f32 %v3983_v58, %v2897_v14  ;;  %v2926_v21 = vadd.f32 %v3221_v0, %v2918_v60 }
0x135a   :  { %v2919_v11 = vmul.f32 %v3220_v28, %v2911_v3 }
0x135c   :  { %v2927_v22 = vadd.f32 %v3221_v0, %v2919_v11 }
0x135e   :  { %v2944_v24 = vpack.c.bf16 %v2927_v22, %v2926_v21 }
0x1360   :  { %3667 = vmatmul.mubr.bf16.vlgmr.msra.gmra.mxu1 %v2944_v24 }
0x1420   :  { %v3034_v10 = vpop.f32.mrf.mxu1 }
0x1421   :  { %v3035_v30 = vadd.f32 %v3222_v26, %v3034_v10 }
0x1422   :  { %v3668_v43 = vpop.f32.mrf.mxu1 }
0x1423   :  { %3041 = vst [vmem:[#allocation22] sm:$0xff] %v3035_v30 }
0x1424   :  { %v3037_v48 = vpop.f32.mrf.mxu1 }
0x1425   :  { %v3038_v4 = vadd.f32 %v3222_v26, %v3037_v48 }
0x1426   :  { %v3669_v12 = vpop.f32.mrf.mxu1 }
0x1427   :  { %3042 = vst [vmem:[#allocation22 + $0x8] sm:$0xff] %v3038_v4 }
0x1428   :  { %4235 = shalt.err (!%p4232_p8)
}
0x1429   :  { %s5068_s21 = sld [smem:[#allocation37_spill]] }
0x142f   :  { %3054 = dma.vmem_to_hbm [thread:$0]  %s3049_s22, 256, %s5068_s21, [#allocation4], %s4266_s29, %s4266_s29, %s4267_s0  }
0x1430   :  { %4258 = dma.done.wait [#allocation4], 256  }
0x1431   :  { %4259 = vsyncadd [#allocation4], 4294967040 }
0x1432   :  { %3058 = vsyncpa [#allocation3], 1 }
0x1433   :  { %3059 = vsyncpa [#allocation6], 1 }
0x1434   :  { %3060 = vsyncpa [#allocation9], 1 }
0x1435   :  { %3061 = vsyncpa [#allocation12], 1 }
0x1436   :  { %3062 = vsyncpa [#allocation15], 1 }
0x1437   :  { %3063 = vsyncpa [#allocation18], 1 }
0x1438   :  { %3064 = vsyncpa [#allocation21], 1 }
0x1439   :  { %3065 = vsyncpa [#allocation4], 1 }

</bundles_post_ra>
